<compile_context>
chip_gen: v5e
topology: v5e:2x2
jax: 0.10.0
libtpu: 0.0.40
codegen_flags: <defaults>
</compile_context>

<pallas_src>
import functools

import jax
import jax.numpy as jnp
from jax.experimental import pallas as pl
from jax.experimental.pallas import tpu as pltpu


# ---------------------------------------------------------------------------
# Kernel 1: qkv projection (bias-free), single block.
# ---------------------------------------------------------------------------

def _qkv_kernel(x_ref, w_ref, o_ref):
    # x: (M, C), w: (C, 3C) -> o: (M, 3C)
    o_ref[...] = jnp.dot(x_ref[...], w_ref[...],
                         preferred_element_type=jnp.float32)


def qkv_projection(x2d, w_qkv_t):
    M, Cin = x2d.shape
    Cout = w_qkv_t.shape[1]
    return pl.pallas_call(
        _qkv_kernel,
        out_shape=jax.ShapeDtypeStruct((M, Cout), jnp.float32),
        grid=(1,),
        in_specs=[
            pl.BlockSpec((M, Cin), lambda i: (0, 0)),
            pl.BlockSpec((Cin, Cout), lambda i: (0, 0)),
        ],
        out_specs=pl.BlockSpec((M, Cout), lambda i: (0, 0)),
    )(x2d, w_qkv_t)


# ---------------------------------------------------------------------------
# Kernel 2: attention (all batches, all heads) + output projection,
#           single grid step.
# ---------------------------------------------------------------------------

def _attn_proj_kernel(qkv_ref, wpt_ref, bp_ref, o_ref, ctx_ref, *,
                      scale, num_heads, batch):
    # qkv_ref: (3, G=B*H, N, Dh)  flat-view q/k/v, one DMA
    # wpt_ref: (C, C)             W_proj^T (un-split)
    # bp_ref:  (1, C)             proj bias
    # o_ref:   (B, N, C)          lane-dense output
    # ctx_ref: (B*N, C)           VMEM scratch for the head-interleaved context
    q = qkv_ref[0] * scale                                   # (G, N, Dh)
    k = qkv_ref[1]                                           # (G, N, Dh)
    v = qkv_ref[2]                                           # (G, N, Dh)

    # scores: contract on Dh of both operands (no explicit transpose)
    s = jnp.einsum("gnd,gmd->gnm", q, k,
                   preferred_element_type=jnp.float32)       # (G, N, N)

    # softmax over the last dim
    m = jnp.max(s, axis=-1, keepdims=True)
    p = jnp.exp(s - m)
    l = jnp.sum(p, axis=-1, keepdims=True)
    p = p * pl.reciprocal(l, approx=False)                   # exact: 1e-4 tol

    # per-(batch, head) context, one batched MXU pass
    ctx = jnp.einsum("gnm,gmd->gnd", p, v,
                     preferred_element_type=jnp.float32)     # (G, N, Dh)

    # Interleave heads into a lane-dense (B*N, C) layout with static slice
    # stores (equivalent to torch's .transpose(1, 2).reshape(B, N, C)).
    G, N, Dh = ctx.shape
    H = num_heads
    for b in range(batch):
        for h in range(H):
            ctx_ref[b * N:(b + 1) * N, h * Dh:(h + 1) * Dh] = ctx[b * H + h]

    # Single output projection matmul for both batches (contraction dim = C).
    out2d = jnp.dot(ctx_ref[...], wpt_ref[...],
                    preferred_element_type=jnp.float32) + bp_ref[...]

    for b in range(batch):
        o_ref[b] = out2d[b * N:(b + 1) * N, :]


def attention_and_proj(qkv4, w_proj_t, b_proj2, scale, num_heads, batch):
    # qkv4: (3, B*H, N, Dh) -- flat reinterpretation of the qkv linear output
    _, G, N, Dh = qkv4.shape
    C = num_heads * Dh
    kernel = functools.partial(_attn_proj_kernel, scale=scale,
                               num_heads=num_heads, batch=batch)
    return pl.pallas_call(
        kernel,
        out_shape=jax.ShapeDtypeStruct((batch, N, C), jnp.float32),
        grid=(1,),
        in_specs=[
            pl.BlockSpec((3, G, N, Dh), lambda i: (0, 0, 0, 0)),  # q/k/v once
            pl.BlockSpec((C, C), lambda i: (0, 0)),               # W_proj^T
            pl.BlockSpec((1, C), lambda i: (0, 0)),               # proj bias
        ],
        out_specs=pl.BlockSpec((batch, N, C), lambda i: (0, 0, 0)),
        scratch_shapes=[pltpu.VMEM((batch * N, C), jnp.float32)],
        compiler_params=pltpu.CompilerParams(
            dimension_semantics=("arbitrary",)),
    )(qkv4, w_proj_t, b_proj2)


# ---------------------------------------------------------------------------
# Forward pass
# ---------------------------------------------------------------------------

def mhsa_forward(x, w_qkv_t, w_proj_t, b_proj, num_heads):
    """x: (B, N, C); w_qkv_t: (C, 3C); w_proj_t: (C, C); b_proj: (C,)."""
    B, N, C = x.shape
    Dh = C // num_heads
    scale = Dh ** (-0.5)

    # qkv = nn.Linear(dim, 3*dim, bias=False):  y = x @ W^T
    qkv = qkv_projection(x.reshape(B * N, C), w_qkv_t)           # (B*N, 3C)

    # Exact reproduction of torch `.view(3, B, H, N, Dh)` on the contiguous
    # (B, N, 3C) buffer -- one flat reinterpretation (B, H merged).
    # TODO(synk): this lane-splitting relayout has no in-kernel Mosaic
    # equivalent, so it stays as one tiny XLA reshape between the two calls.
    qkv4 = qkv.reshape(3, B * num_heads, N, Dh)

    # fused attention + head interleave + output projection
    out = attention_and_proj(qkv4, w_proj_t, b_proj.reshape(1, C),
                             scale, num_heads, B)
    return out                                                   # (B, N, C)


# ---------------------------------------------------------------------------
# Pure-JAX reference (mirrors the PyTorch forward exactly)
# ---------------------------------------------------------------------------

def mhsa_reference(x, w_qkv, w_proj, b_proj, num_heads):
    B, N, C = x.shape
    Dh = C // num_heads
    scale = Dh ** (-0.5)
    qkv = jnp.einsum("bnc,oc->bno", x, w_qkv)                    # (B, N, 3C)
    qkv = qkv.reshape(3, B, num_heads, N, Dh)
    q, k, v = qkv[0], qkv[1], qkv[2]
    attn = jnp.einsum("bhnd,bhmd->bhnm", q * scale, k)
    attn = jax.nn.softmax(attn, axis=-1)
    ctx = jnp.einsum("bhnm,bhmd->bhnd", attn, v)
    ctx = jnp.transpose(ctx, (0, 2, 1, 3)).reshape(B, N, C)
    return jnp.einsum("bnc,oc->bno", ctx, w_proj) + b_proj


# ---------------------------------------------------------------------------
# Main
# ---------------------------------------------------------------------------

if __name__ == "__main__":
    B, N, dim, num_heads = 2, 16, 96, 12     # head_dim = 8

    key = jax.random.PRNGKey(0)
    kx, kq, kp, kb = jax.random.split(key, 4)

    x = jax.random.normal(kx, (B, N, dim), dtype=jnp.float32)
    # torch Linear layout: weight is (out, in)
    w_qkv = jax.random.normal(kq, (3 * dim, dim), dtype=jnp.float32) * (dim ** -0.5)
    w_proj = jax.random.normal(kp, (dim, dim), dtype=jnp.float32) * (dim ** -0.5)
    b_proj = jax.random.normal(kb, (dim,), dtype=jnp.float32) * 0.01

    # One-time weight prep (outside the hot path): transpose both weights.
    w_qkv_t = jnp.transpose(w_qkv)                               # (C, 3C)
    w_proj_t = jnp.transpose(w_proj)                             # (C, C)

    fwd = jax.jit(functools.partial(mhsa_forward, num_heads=num_heads))
    out = fwd(x, w_qkv_t, w_proj_t, b_proj)
    out = jax.block_until_ready(out)

    ref = mhsa_reference(x, w_qkv, w_proj, b_proj, num_heads)
    assert out.shape == (B, N, dim)
    assert jnp.allclose(out, ref, atol=1e-4, rtol=1e-4), "mismatch vs reference"

    print("KERNEL_OK")
</pallas_src>

<mosaic_0001>
module attributes {stable_mosaic.version = 11 : i64} {
  func.func @_attn_proj_kernel(%arg0: i32, %arg1: memref<3x24x16x8xf32, #tpu.memory_space<vmem>>, %arg2: memref<96x96xf32, #tpu.memory_space<vmem>>, %arg3: memref<1x96xf32, #tpu.memory_space<vmem>>, %arg4: memref<2x16x96xf32, #tpu.memory_space<vmem>>, %arg5: memref<32x96xf32, #tpu.memory_space<vmem>>) attributes {dimension_semantics = [#tpu.dimension_semantics<arbitrary>], iteration_bounds = array<i64: 1>, scalar_prefetch = 0 : i64, scratch_operands = 1 : i64, tpu.core_type = #tpu.core_type<tc>, window_params = [{pipeline_mode = #tpu.pipeline_mode<synchronous>, transform_indices = @transform_0, window_bounds = array<i64: 3, 24, 16, 8>}, {pipeline_mode = #tpu.pipeline_mode<synchronous>, transform_indices = @transform_1, window_bounds = array<i64: 96, 96>}, {pipeline_mode = #tpu.pipeline_mode<synchronous>, transform_indices = @transform_2, window_bounds = array<i64: 1, 96>}, {pipeline_mode = #tpu.pipeline_mode<synchronous>, transform_indices = @transform_3, window_bounds = array<i64: 2, 16, 96>}]} {
    %c0 = arith.constant 0 : index
    %c0_0 = arith.constant 0 : index
    %c0_1 = arith.constant 0 : index
    %c0_2 = arith.constant 0 : index
    %0 = vector.load %arg1[%c0, %c0_0, %c0_1, %c0_2] : memref<3x24x16x8xf32, #tpu.memory_space<vmem>>, vector<1x24x16x8xf32>
    %1 = vector.shape_cast %0 : vector<1x24x16x8xf32> to vector<24x16x8xf32>
    %cst = arith.constant 0.353553385 : f32
    %2 = vector.broadcast %cst : f32 to vector<24x16x8xf32>
    %3 = arith.mulf %1, %2 : vector<24x16x8xf32>
    %c1 = arith.constant 1 : index
    %c0_3 = arith.constant 0 : index
    %c0_4 = arith.constant 0 : index
    %c0_5 = arith.constant 0 : index
    %4 = vector.load %arg1[%c1, %c0_3, %c0_4, %c0_5] : memref<3x24x16x8xf32, #tpu.memory_space<vmem>>, vector<1x24x16x8xf32>
    %5 = vector.shape_cast %4 : vector<1x24x16x8xf32> to vector<24x16x8xf32>
    %c2 = arith.constant 2 : index
    %c0_6 = arith.constant 0 : index
    %c0_7 = arith.constant 0 : index
    %c0_8 = arith.constant 0 : index
    %6 = vector.load %arg1[%c2, %c0_6, %c0_7, %c0_8] : memref<3x24x16x8xf32, #tpu.memory_space<vmem>>, vector<1x24x16x8xf32>
    %7 = vector.shape_cast %6 : vector<1x24x16x8xf32> to vector<24x16x8xf32>
    "tpu.trace_start"() <{level = 10 : i32, message = "gnd,gmd->gnm"}> : () -> ()
    %cst_9 = arith.constant dense<0.000000e+00> : vector<24x16x16xf32>
    %8 = tpu.matmul %3, %5, %cst_9 {dimension_numbers = #tpu.dot_dimension_numbers<[2], [2], [1], [1], [0, 0, 0, 1, 1, 1], [0], [0]>} : vector<24x16x8xf32>, vector<24x16x8xf32>, vector<24x16x16xf32> -> vector<24x16x16xf32>
    "tpu.trace_stop"() : () -> ()
    %cst_10 = arith.constant dense<0xFF800000> : vector<24x16xf32>
    %9 = vector.multi_reduction <maximumf>, %8, %cst_10 [2] : vector<24x16x16xf32> to vector<24x16xf32>
    %10 = vector.shape_cast %9 : vector<24x16xf32> to vector<24x16x1xf32>
    %11 = vector.broadcast %10 : vector<24x16x1xf32> to vector<24x16x16xf32>
    %12 = arith.subf %8, %11 : vector<24x16x16xf32>
    %13 = math.exp %12 : vector<24x16x16xf32>
    %cst_11 = arith.constant dense<0.000000e+00> : vector<24x16xf32>
    %14 = vector.multi_reduction <add>, %13, %cst_11 [2] : vector<24x16x16xf32> to vector<24x16xf32>
    %15 = vector.shape_cast %14 : vector<24x16xf32> to vector<24x16x1xf32>
    %16 = tpu.reciprocal %15 : vector<24x16x1xf32> -> vector<24x16x1xf32>
    %17 = vector.broadcast %16 : vector<24x16x1xf32> to vector<24x16x16xf32>
    %18 = arith.mulf %13, %17 : vector<24x16x16xf32>
    "tpu.trace_start"() <{level = 10 : i32, message = "gnm,gmd->gnd"}> : () -> ()
    %cst_12 = arith.constant dense<0.000000e+00> : vector<24x16x8xf32>
    %19 = tpu.matmul %18, %7, %cst_12 {dimension_numbers = #tpu.dot_dimension_numbers<[2], [1], [1], [2], [0, 0, 0, 1, 1, 2], [0], [0]>} : vector<24x16x16xf32>, vector<24x16x8xf32>, vector<24x16x8xf32> -> vector<24x16x8xf32>
    "tpu.trace_stop"() : () -> ()
    %20 = vector.extract_strided_slice %19 {offsets = [0, 0, 0], sizes = [1, 16, 8], strides = [1, 1, 1]} : vector<24x16x8xf32> to vector<1x16x8xf32>
    %21 = vector.shape_cast %20 : vector<1x16x8xf32> to vector<16x8xf32>
    %c0_13 = arith.constant 0 : index
    %c0_14 = arith.constant 0 : index
    %22 = vector.load %arg5[%c0_13, %c0_14] : memref<32x96xf32, #tpu.memory_space<vmem>>, vector<16x8xf32>
    tpu.vector_store %arg5[%c0_13, %c0_14], %21 {strides = array<i32>} : memref<32x96xf32, #tpu.memory_space<vmem>>, vector<16x8xf32>,
    %23 = vector.extract_strided_slice %19 {offsets = [1, 0, 0], sizes = [1, 16, 8], strides = [1, 1, 1]} : vector<24x16x8xf32> to vector<1x16x8xf32>
    %24 = vector.shape_cast %23 : vector<1x16x8xf32> to vector<16x8xf32>
    %c0_15 = arith.constant 0 : index
    %c8 = arith.constant 8 : index
    %25 = vector.load %arg5[%c0_15, %c8] : memref<32x96xf32, #tpu.memory_space<vmem>>, vector<16x8xf32>
    tpu.vector_store %arg5[%c0_15, %c8], %24 {strides = array<i32>} : memref<32x96xf32, #tpu.memory_space<vmem>>, vector<16x8xf32>,
    %26 = vector.extract_strided_slice %19 {offsets = [2, 0, 0], sizes = [1, 16, 8], strides = [1, 1, 1]} : vector<24x16x8xf32> to vector<1x16x8xf32>
    %27 = vector.shape_cast %26 : vector<1x16x8xf32> to vector<16x8xf32>
    %c0_16 = arith.constant 0 : index
    %c16 = arith.constant 16 : index
    %28 = vector.load %arg5[%c0_16, %c16] : memref<32x96xf32, #tpu.memory_space<vmem>>, vector<16x8xf32>
    tpu.vector_store %arg5[%c0_16, %c16], %27 {strides = array<i32>} : memref<32x96xf32, #tpu.memory_space<vmem>>, vector<16x8xf32>,
    %29 = vector.extract_strided_slice %19 {offsets = [3, 0, 0], sizes = [1, 16, 8], strides = [1, 1, 1]} : vector<24x16x8xf32> to vector<1x16x8xf32>
    %30 = vector.shape_cast %29 : vector<1x16x8xf32> to vector<16x8xf32>
    %c0_17 = arith.constant 0 : index
    %c24 = arith.constant 24 : index
    %31 = vector.load %arg5[%c0_17, %c24] : memref<32x96xf32, #tpu.memory_space<vmem>>, vector<16x8xf32>
    tpu.vector_store %arg5[%c0_17, %c24], %30 {strides = array<i32>} : memref<32x96xf32, #tpu.memory_space<vmem>>, vector<16x8xf32>,
    %32 = vector.extract_strided_slice %19 {offsets = [4, 0, 0], sizes = [1, 16, 8], strides = [1, 1, 1]} : vector<24x16x8xf32> to vector<1x16x8xf32>
    %33 = vector.shape_cast %32 : vector<1x16x8xf32> to vector<16x8xf32>
    %c0_18 = arith.constant 0 : index
    %c32 = arith.constant 32 : index
    %34 = vector.load %arg5[%c0_18, %c32] : memref<32x96xf32, #tpu.memory_space<vmem>>, vector<16x8xf32>
    tpu.vector_store %arg5[%c0_18, %c32], %33 {strides = array<i32>} : memref<32x96xf32, #tpu.memory_space<vmem>>, vector<16x8xf32>,
    %35 = vector.extract_strided_slice %19 {offsets = [5, 0, 0], sizes = [1, 16, 8], strides = [1, 1, 1]} : vector<24x16x8xf32> to vector<1x16x8xf32>
    %36 = vector.shape_cast %35 : vector<1x16x8xf32> to vector<16x8xf32>
    %c0_19 = arith.constant 0 : index
    %c40 = arith.constant 40 : index
    %37 = vector.load %arg5[%c0_19, %c40] : memref<32x96xf32, #tpu.memory_space<vmem>>, vector<16x8xf32>
    tpu.vector_store %arg5[%c0_19, %c40], %36 {strides = array<i32>} : memref<32x96xf32, #tpu.memory_space<vmem>>, vector<16x8xf32>,
    %38 = vector.extract_strided_slice %19 {offsets = [6, 0, 0], sizes = [1, 16, 8], strides = [1, 1, 1]} : vector<24x16x8xf32> to vector<1x16x8xf32>
    %39 = vector.shape_cast %38 : vector<1x16x8xf32> to vector<16x8xf32>
    %c0_20 = arith.constant 0 : index
    %c48 = arith.constant 48 : index
    %40 = vector.load %arg5[%c0_20, %c48] : memref<32x96xf32, #tpu.memory_space<vmem>>, vector<16x8xf32>
    tpu.vector_store %arg5[%c0_20, %c48], %39 {strides = array<i32>} : memref<32x96xf32, #tpu.memory_space<vmem>>, vector<16x8xf32>,
    %41 = vector.extract_strided_slice %19 {offsets = [7, 0, 0], sizes = [1, 16, 8], strides = [1, 1, 1]} : vector<24x16x8xf32> to vector<1x16x8xf32>
    %42 = vector.shape_cast %41 : vector<1x16x8xf32> to vector<16x8xf32>
    %c0_21 = arith.constant 0 : index
    %c56 = arith.constant 56 : index
    %43 = vector.load %arg5[%c0_21, %c56] : memref<32x96xf32, #tpu.memory_space<vmem>>, vector<16x8xf32>
    tpu.vector_store %arg5[%c0_21, %c56], %42 {strides = array<i32>} : memref<32x96xf32, #tpu.memory_space<vmem>>, vector<16x8xf32>,
    %44 = vector.extract_strided_slice %19 {offsets = [8, 0, 0], sizes = [1, 16, 8], strides = [1, 1, 1]} : vector<24x16x8xf32> to vector<1x16x8xf32>
    %45 = vector.shape_cast %44 : vector<1x16x8xf32> to vector<16x8xf32>
    %c0_22 = arith.constant 0 : index
    %c64 = arith.constant 64 : index
    %46 = vector.load %arg5[%c0_22, %c64] : memref<32x96xf32, #tpu.memory_space<vmem>>, vector<16x8xf32>
    tpu.vector_store %arg5[%c0_22, %c64], %45 {strides = array<i32>} : memref<32x96xf32, #tpu.memory_space<vmem>>, vector<16x8xf32>,
    %47 = vector.extract_strided_slice %19 {offsets = [9, 0, 0], sizes = [1, 16, 8], strides = [1, 1, 1]} : vector<24x16x8xf32> to vector<1x16x8xf32>
    %48 = vector.shape_cast %47 : vector<1x16x8xf32> to vector<16x8xf32>
    %c0_23 = arith.constant 0 : index
    %c72 = arith.constant 72 : index
    %49 = vector.load %arg5[%c0_23, %c72] : memref<32x96xf32, #tpu.memory_space<vmem>>, vector<16x8xf32>
    tpu.vector_store %arg5[%c0_23, %c72], %48 {strides = array<i32>} : memref<32x96xf32, #tpu.memory_space<vmem>>, vector<16x8xf32>,
    %50 = vector.extract_strided_slice %19 {offsets = [10, 0, 0], sizes = [1, 16, 8], strides = [1, 1, 1]} : vector<24x16x8xf32> to vector<1x16x8xf32>
    %51 = vector.shape_cast %50 : vector<1x16x8xf32> to vector<16x8xf32>
    %c0_24 = arith.constant 0 : index
    %c80 = arith.constant 80 : index
    %52 = vector.load %arg5[%c0_24, %c80] : memref<32x96xf32, #tpu.memory_space<vmem>>, vector<16x8xf32>
    tpu.vector_store %arg5[%c0_24, %c80], %51 {strides = array<i32>} : memref<32x96xf32, #tpu.memory_space<vmem>>, vector<16x8xf32>,
    %53 = vector.extract_strided_slice %19 {offsets = [11, 0, 0], sizes = [1, 16, 8], strides = [1, 1, 1]} : vector<24x16x8xf32> to vector<1x16x8xf32>
    %54 = vector.shape_cast %53 : vector<1x16x8xf32> to vector<16x8xf32>
    %c0_25 = arith.constant 0 : index
    %c88 = arith.constant 88 : index
    %55 = vector.load %arg5[%c0_25, %c88] : memref<32x96xf32, #tpu.memory_space<vmem>>, vector<16x8xf32>
    tpu.vector_store %arg5[%c0_25, %c88], %54 {strides = array<i32>} : memref<32x96xf32, #tpu.memory_space<vmem>>, vector<16x8xf32>,
    %56 = vector.extract_strided_slice %19 {offsets = [12, 0, 0], sizes = [1, 16, 8], strides = [1, 1, 1]} : vector<24x16x8xf32> to vector<1x16x8xf32>
    %57 = vector.shape_cast %56 : vector<1x16x8xf32> to vector<16x8xf32>
    %c16_26 = arith.constant 16 : index
    %c0_27 = arith.constant 0 : index
    %58 = vector.load %arg5[%c16_26, %c0_27] : memref<32x96xf32, #tpu.memory_space<vmem>>, vector<16x8xf32>
    tpu.vector_store %arg5[%c16_26, %c0_27], %57 {strides = array<i32>} : memref<32x96xf32, #tpu.memory_space<vmem>>, vector<16x8xf32>,
    %59 = vector.extract_strided_slice %19 {offsets = [13, 0, 0], sizes = [1, 16, 8], strides = [1, 1, 1]} : vector<24x16x8xf32> to vector<1x16x8xf32>
    %60 = vector.shape_cast %59 : vector<1x16x8xf32> to vector<16x8xf32>
    %c16_28 = arith.constant 16 : index
    %c8_29 = arith.constant 8 : index
    %61 = vector.load %arg5[%c16_28, %c8_29] : memref<32x96xf32, #tpu.memory_space<vmem>>, vector<16x8xf32>
    tpu.vector_store %arg5[%c16_28, %c8_29], %60 {strides = array<i32>} : memref<32x96xf32, #tpu.memory_space<vmem>>, vector<16x8xf32>,
    %62 = vector.extract_strided_slice %19 {offsets = [14, 0, 0], sizes = [1, 16, 8], strides = [1, 1, 1]} : vector<24x16x8xf32> to vector<1x16x8xf32>
    %63 = vector.shape_cast %62 : vector<1x16x8xf32> to vector<16x8xf32>
    %c16_30 = arith.constant 16 : index
    %c16_31 = arith.constant 16 : index
    %64 = vector.load %arg5[%c16_30, %c16_31] : memref<32x96xf32, #tpu.memory_space<vmem>>, vector<16x8xf32>
    tpu.vector_store %arg5[%c16_30, %c16_31], %63 {strides = array<i32>} : memref<32x96xf32, #tpu.memory_space<vmem>>, vector<16x8xf32>,
    %65 = vector.extract_strided_slice %19 {offsets = [15, 0, 0], sizes = [1, 16, 8], strides = [1, 1, 1]} : vector<24x16x8xf32> to vector<1x16x8xf32>
    %66 = vector.shape_cast %65 : vector<1x16x8xf32> to vector<16x8xf32>
    %c16_32 = arith.constant 16 : index
    %c24_33 = arith.constant 24 : index
    %67 = vector.load %arg5[%c16_32, %c24_33] : memref<32x96xf32, #tpu.memory_space<vmem>>, vector<16x8xf32>
    tpu.vector_store %arg5[%c16_32, %c24_33], %66 {strides = array<i32>} : memref<32x96xf32, #tpu.memory_space<vmem>>, vector<16x8xf32>,
    %68 = vector.extract_strided_slice %19 {offsets = [16, 0, 0], sizes = [1, 16, 8], strides = [1, 1, 1]} : vector<24x16x8xf32> to vector<1x16x8xf32>
    %69 = vector.shape_cast %68 : vector<1x16x8xf32> to vector<16x8xf32>
    %c16_34 = arith.constant 16 : index
    %c32_35 = arith.constant 32 : index
    %70 = vector.load %arg5[%c16_34, %c32_35] : memref<32x96xf32, #tpu.memory_space<vmem>>, vector<16x8xf32>
    tpu.vector_store %arg5[%c16_34, %c32_35], %69 {strides = array<i32>} : memref<32x96xf32, #tpu.memory_space<vmem>>, vector<16x8xf32>,
    %71 = vector.extract_strided_slice %19 {offsets = [17, 0, 0], sizes = [1, 16, 8], strides = [1, 1, 1]} : vector<24x16x8xf32> to vector<1x16x8xf32>
    %72 = vector.shape_cast %71 : vector<1x16x8xf32> to vector<16x8xf32>
    %c16_36 = arith.constant 16 : index
    %c40_37 = arith.constant 40 : index
    %73 = vector.load %arg5[%c16_36, %c40_37] : memref<32x96xf32, #tpu.memory_space<vmem>>, vector<16x8xf32>
    tpu.vector_store %arg5[%c16_36, %c40_37], %72 {strides = array<i32>} : memref<32x96xf32, #tpu.memory_space<vmem>>, vector<16x8xf32>,
    %74 = vector.extract_strided_slice %19 {offsets = [18, 0, 0], sizes = [1, 16, 8], strides = [1, 1, 1]} : vector<24x16x8xf32> to vector<1x16x8xf32>
    %75 = vector.shape_cast %74 : vector<1x16x8xf32> to vector<16x8xf32>
    %c16_38 = arith.constant 16 : index
    %c48_39 = arith.constant 48 : index
    %76 = vector.load %arg5[%c16_38, %c48_39] : memref<32x96xf32, #tpu.memory_space<vmem>>, vector<16x8xf32>
    tpu.vector_store %arg5[%c16_38, %c48_39], %75 {strides = array<i32>} : memref<32x96xf32, #tpu.memory_space<vmem>>, vector<16x8xf32>,
    %77 = vector.extract_strided_slice %19 {offsets = [19, 0, 0], sizes = [1, 16, 8], strides = [1, 1, 1]} : vector<24x16x8xf32> to vector<1x16x8xf32>
    %78 = vector.shape_cast %77 : vector<1x16x8xf32> to vector<16x8xf32>
    %c16_40 = arith.constant 16 : index
    %c56_41 = arith.constant 56 : index
    %79 = vector.load %arg5[%c16_40, %c56_41] : memref<32x96xf32, #tpu.memory_space<vmem>>, vector<16x8xf32>
    tpu.vector_store %arg5[%c16_40, %c56_41], %78 {strides = array<i32>} : memref<32x96xf32, #tpu.memory_space<vmem>>, vector<16x8xf32>,
    %80 = vector.extract_strided_slice %19 {offsets = [20, 0, 0], sizes = [1, 16, 8], strides = [1, 1, 1]} : vector<24x16x8xf32> to vector<1x16x8xf32>
    %81 = vector.shape_cast %80 : vector<1x16x8xf32> to vector<16x8xf32>
    %c16_42 = arith.constant 16 : index
    %c64_43 = arith.constant 64 : index
    %82 = vector.load %arg5[%c16_42, %c64_43] : memref<32x96xf32, #tpu.memory_space<vmem>>, vector<16x8xf32>
    tpu.vector_store %arg5[%c16_42, %c64_43], %81 {strides = array<i32>} : memref<32x96xf32, #tpu.memory_space<vmem>>, vector<16x8xf32>,
    %83 = vector.extract_strided_slice %19 {offsets = [21, 0, 0], sizes = [1, 16, 8], strides = [1, 1, 1]} : vector<24x16x8xf32> to vector<1x16x8xf32>
    %84 = vector.shape_cast %83 : vector<1x16x8xf32> to vector<16x8xf32>
    %c16_44 = arith.constant 16 : index
    %c72_45 = arith.constant 72 : index
    %85 = vector.load %arg5[%c16_44, %c72_45] : memref<32x96xf32, #tpu.memory_space<vmem>>, vector<16x8xf32>
    tpu.vector_store %arg5[%c16_44, %c72_45], %84 {strides = array<i32>} : memref<32x96xf32, #tpu.memory_space<vmem>>, vector<16x8xf32>,
    %86 = vector.extract_strided_slice %19 {offsets = [22, 0, 0], sizes = [1, 16, 8], strides = [1, 1, 1]} : vector<24x16x8xf32> to vector<1x16x8xf32>
    %87 = vector.shape_cast %86 : vector<1x16x8xf32> to vector<16x8xf32>
    %c16_46 = arith.constant 16 : index
    %c80_47 = arith.constant 80 : index
    %88 = vector.load %arg5[%c16_46, %c80_47] : memref<32x96xf32, #tpu.memory_space<vmem>>, vector<16x8xf32>
    tpu.vector_store %arg5[%c16_46, %c80_47], %87 {strides = array<i32>} : memref<32x96xf32, #tpu.memory_space<vmem>>, vector<16x8xf32>,
    %89 = vector.extract_strided_slice %19 {offsets = [23, 0, 0], sizes = [1, 16, 8], strides = [1, 1, 1]} : vector<24x16x8xf32> to vector<1x16x8xf32>
    %90 = vector.shape_cast %89 : vector<1x16x8xf32> to vector<16x8xf32>
    %c16_48 = arith.constant 16 : index
    %c88_49 = arith.constant 88 : index
    %91 = vector.load %arg5[%c16_48, %c88_49] : memref<32x96xf32, #tpu.memory_space<vmem>>, vector<16x8xf32>
    tpu.vector_store %arg5[%c16_48, %c88_49], %90 {strides = array<i32>} : memref<32x96xf32, #tpu.memory_space<vmem>>, vector<16x8xf32>,
    %c0_50 = arith.constant 0 : index
    %c0_51 = arith.constant 0 : index
    %92 = vector.load %arg5[%c0_50, %c0_51] : memref<32x96xf32, #tpu.memory_space<vmem>>, vector<32x96xf32>
    %c0_52 = arith.constant 0 : index
    %c0_53 = arith.constant 0 : index
    %93 = vector.load %arg2[%c0_52, %c0_53] : memref<96x96xf32, #tpu.memory_space<vmem>>, vector<96x96xf32>
    %cst_54 = arith.constant dense<0.000000e+00> : vector<32x96xf32>
    %94 = tpu.matmul %92, %93, %cst_54 {dimension_numbers = #tpu.dot_dimension_numbers<[1], [0], [0], [1], [0, 0, 1, 1], [], []>} : vector<32x96xf32>, vector<96x96xf32>, vector<32x96xf32> -> vector<32x96xf32>
    %c0_55 = arith.constant 0 : index
    %c0_56 = arith.constant 0 : index
    %95 = vector.load %arg3[%c0_55, %c0_56] : memref<1x96xf32, #tpu.memory_space<vmem>>, vector<1x96xf32>
    %96 = vector.broadcast %95 : vector<1x96xf32> to vector<32x96xf32>
    %97 = arith.addf %94, %96 : vector<32x96xf32>
    %98 = vector.extract_strided_slice %97 {offsets = [0, 0], sizes = [16, 96], strides = [1, 1]} : vector<32x96xf32> to vector<16x96xf32>
    %c0_57 = arith.constant 0 : index
    %c0_58 = arith.constant 0 : index
    %c0_59 = arith.constant 0 : index
    %99 = vector.load %arg4[%c0_57, %c0_58, %c0_59] : memref<2x16x96xf32, #tpu.memory_space<vmem>>, vector<1x16x96xf32>
    %100 = vector.shape_cast %99 : vector<1x16x96xf32> to vector<16x96xf32>
    %101 = vector.shape_cast %98 : vector<16x96xf32> to vector<1x16x96xf32>
    tpu.vector_store %arg4[%c0_57, %c0_58, %c0_59], %101 {strides = array<i32>} : memref<2x16x96xf32, #tpu.memory_space<vmem>>, vector<1x16x96xf32>,
    %102 = vector.extract_strided_slice %97 {offsets = [16, 0], sizes = [16, 96], strides = [1, 1]} : vector<32x96xf32> to vector<16x96xf32>
    %c1_60 = arith.constant 1 : index
    %c0_61 = arith.constant 0 : index
    %c0_62 = arith.constant 0 : index
    %103 = vector.load %arg4[%c1_60, %c0_61, %c0_62] : memref<2x16x96xf32, #tpu.memory_space<vmem>>, vector<1x16x96xf32>
    %104 = vector.shape_cast %103 : vector<1x16x96xf32> to vector<16x96xf32>
    %105 = vector.shape_cast %102 : vector<16x96xf32> to vector<1x16x96xf32>
    tpu.vector_store %arg4[%c1_60, %c0_61, %c0_62], %105 {strides = array<i32>} : memref<2x16x96xf32, #tpu.memory_space<vmem>>, vector<1x16x96xf32>,
    return
  }
  func.func @transform_0(%arg0: i32) -> (i32, i32, i32, i32) {
    %c0_i32 = arith.constant 0 : i32
    %c0_i32_0 = arith.constant 0 : i32
    %c0_i32_1 = arith.constant 0 : i32
    %c0_i32_2 = arith.constant 0 : i32
    %c0_i32_3 = arith.constant 0 : i32
    return %c0_i32, %c0_i32_0, %c0_i32_1, %c0_i32_2 : i32, i32, i32, i32
  }
  func.func @transform_1(%arg0: i32) -> (i32, i32) {
    %c0_i32 = arith.constant 0 : i32
    %c0_i32_0 = arith.constant 0 : i32
    %c0_i32_1 = arith.constant 0 : i32
    return %c0_i32, %c0_i32_0 : i32, i32
  }
  func.func @transform_2(%arg0: i32) -> (i32, i32) {
    %c0_i32 = arith.constant 0 : i32
    %c0_i32_0 = arith.constant 0 : i32
    %c0_i32_1 = arith.constant 0 : i32
    return %c0_i32, %c0_i32_0 : i32, i32
  }
  func.func @transform_3(%arg0: i32) -> (i32, i32, i32) {
    %c0_i32 = arith.constant 0 : i32
    %c0_i32_0 = arith.constant 0 : i32
    %c0_i32_1 = arith.constant 0 : i32
    %c0_i32_2 = arith.constant 0 : i32
    return %c0_i32, %c0_i32_0, %c0_i32_1 : i32, i32, i32
  }
}

module attributes {stable_mosaic.version = 11 : i64} {
  func.func @_qkv_kernel(%arg0: i32, %arg1: memref<32x96xf32, #tpu.memory_space<vmem>>, %arg2: memref<96x288xf32, #tpu.memory_space<vmem>>, %arg3: memref<32x288xf32, #tpu.memory_space<vmem>>) attributes {dimension_semantics = [#tpu.dimension_semantics<arbitrary>], iteration_bounds = array<i64: 1>, scalar_prefetch = 0 : i64, scratch_operands = 0 : i64, tpu.core_type = #tpu.core_type<tc>, window_params = [{pipeline_mode = #tpu.pipeline_mode<synchronous>, transform_indices = @transform_0, window_bounds = array<i64: 32, 96>}, {pipeline_mode = #tpu.pipeline_mode<synchronous>, transform_indices = @transform_1, window_bounds = array<i64: 96, 288>}, {pipeline_mode = #tpu.pipeline_mode<synchronous>, transform_indices = @transform_2, window_bounds = array<i64: 32, 288>}]} {
    %c0 = arith.constant 0 : index
    %c0_0 = arith.constant 0 : index
    %0 = vector.load %arg1[%c0, %c0_0] : memref<32x96xf32, #tpu.memory_space<vmem>>, vector<32x96xf32>
    %c0_1 = arith.constant 0 : index
    %c0_2 = arith.constant 0 : index
    %1 = vector.load %arg2[%c0_1, %c0_2] : memref<96x288xf32, #tpu.memory_space<vmem>>, vector<96x288xf32>
    %cst = arith.constant dense<0.000000e+00> : vector<32x288xf32>
    %2 = tpu.matmul %0, %1, %cst {dimension_numbers = #tpu.dot_dimension_numbers<[1], [0], [0], [1], [0, 0, 1, 1], [], []>} : vector<32x96xf32>, vector<96x288xf32>, vector<32x288xf32> -> vector<32x288xf32>
    %c0_3 = arith.constant 0 : index
    %c0_4 = arith.constant 0 : index
    %3 = vector.load %arg3[%c0_3, %c0_4] : memref<32x288xf32, #tpu.memory_space<vmem>>, vector<32x288xf32>
    tpu.vector_store %arg3[%c0_3, %c0_4], %2 {strides = array<i32>} : memref<32x288xf32, #tpu.memory_space<vmem>>, vector<32x288xf32>,
    return
  }
  func.func @transform_0(%arg0: i32) -> (i32, i32) {
    %c0_i32 = arith.constant 0 : i32
    %c0_i32_0 = arith.constant 0 : i32
    %c0_i32_1 = arith.constant 0 : i32
    return %c0_i32, %c0_i32_0 : i32, i32
  }
  func.func @transform_1(%arg0: i32) -> (i32, i32) {
    %c0_i32 = arith.constant 0 : i32
    %c0_i32_0 = arith.constant 0 : i32
    %c0_i32_1 = arith.constant 0 : i32
    return %c0_i32, %c0_i32_0 : i32, i32
  }
  func.func @transform_2(%arg0: i32) -> (i32, i32) {
    %c0_i32 = arith.constant 0 : i32
    %c0_i32_0 = arith.constant 0 : i32
    %c0_i32_1 = arith.constant 0 : i32
    return %c0_i32, %c0_i32_0 : i32, i32
  }
}

</mosaic_0001>

<bundles_post_ra>
// kernel: mhsa_forward.2
= control target key start
LH: loop header
LB: loop body
LE: loop exit
PB: predicated region body
PF: predicated region fallthrough
CT: control target
= control target key end

     0   :  { %7 = vsyncpa [#allocation3], 0  ;;  %s363_s0 = inlined_call_operand.hbm [shape: f32[32,96], index: 0, kind: input, shape index: {}]   ;;  %s364_s1 = inlined_call_operand.hbm [shape: f32[96,288], index: 1, kind: input, shape index: {}]   ;;  %s365_s2 = inlined_call_operand.vmem [shape: f32[32,288], index: 2, kind: output, shape index: {}]  }
   0x1   :  { %s13_s11 = sshll.u32 %s363_s0, 4  ;;  %s14_s11 = int_to_ptr.hbm [resolvable:$true] %s13_s11 }
   0x2   :  { %8 = vsyncpa [#allocation5], 0  ;;  %s284_s12 = smov [#allocation2]   ;;  %s26_s16 = sshll.u32 %s364_s1, 4  ;;  %s27_s16 = int_to_ptr.hbm [resolvable:$true] %s26_s16 }
   0x3   :  { %s15_s13 = sshll.u32 %s284_s12, 4  ;;  %s285_s17 = smov 128   ;;  %s16_s13 = int_to_ptr.vmem [resolvable:$true] %s15_s13 }
   0x4   :  { %s286_s18 = smov 8   ;;  %s287_s19 = smov [#allocation4]  }
   0x5   :  { %21 = dma.hbm_to_vmem [thread:$0]  %s14_s11, 512, %s16_s13, [#allocation3], %s285_s17, %s285_s17, %s286_s18  }
   0x6   :  { %s28_s20 = sshll.u32 %s287_s19, 4  ;;  %s288_s21 = smov 384   ;;  %s29_s20 = int_to_ptr.vmem [resolvable:$true] %s28_s20 }
   0x7   :  { %s289_s22 = smov 24  }
   0x8   :  { %34 = dma.hbm_to_vmem [thread:$0]  %s27_s16, 4608, %s29_s20, [#allocation5], %s288_s21, %s288_s21, %s289_s22  }
   0x9   :  { %280 = dma.done.wait [#allocation3], 512  }
   0xa   :  { %281 = vsyncadd [#allocation3], 4294966784 }
   0xb   :  { %282 = dma.done.wait [#allocation5], 4608  }
   0xc   :  { %283 = vsyncadd [#allocation5], 4294962688  ;;  %v82_v0 = vld [vmem:[#allocation4 + $0x118] sm:$0xff]  ;;  %v79_v1 = vld [vmem:[#allocation4 + $0x100] sm:$0xff]  ;;  %vm83_vm0 = vcmask 785408   ;;  %vm185_vm1 = vcmask 261120  }
   0xd   :  { %158 = vmatpush.msra.mxu2 %v82_v0  ;;  %v81_v2 = vld [vmem:[#allocation4 + $0x110] sm:$0xff]  ;;  %v80_v3 = vld [vmem:[#allocation4 + $0x108] sm:$0xff]  ;;  %v78_v5 = vld [vmem:[#allocation4 + $0xf8] sm:$0xff] }
   0xe   :  { %v76_v4 = vld [vmem:[#allocation4 + $0xe8] sm:$0xff]  ;;  %129 = vmatpush.msra.mxu1 %v81_v2  ;;  %214 = vmatpush.msra.mxu3 %v80_v3  ;;  %v77_v6 = vld [vmem:[#allocation4 + $0xf0] sm:$0xff]  ;;  %v75_v7 = vld [vmem:[#allocation4 + $0xe0] sm:$0xff] }
   0xf   :  { %159 = vmatpush.msra.mxu2 %v79_v1  ;;  %v74_v8 = vld [vmem:[#allocation4 + $0xd8] sm:$0xff]  ;;  %100 = vmatpush.msra.mxu0 %v80_v3  ;;  %v73_v9 = vld [vmem:[#allocation4 + $0xd0] sm:$0xff]  ;;  %v72_v10 = vld [vmem:[#allocation4 + $0xc8] sm:$0xff] }
  0x10   :  { %130 = vmatpush.msra.mxu1 %v78_v5  ;;  %215 = vmatpush.msra.mxu3 %v77_v6  ;;  %v71_v11 = vld [vmem:[#allocation4 + $0xc0] sm:$0xff]  ;;  %v70_v12 = vld [vmem:[#allocation4 + $0xb8] sm:$0xff]  ;;  %v69_v13 = vld [vmem:[#allocation4 + $0xb0] sm:$0xff] }
  0x11   :  { %160 = vmatpush.msra.mxu2 %v76_v4  ;;  %101 = vmatpush.msra.mxu0 %v77_v6  ;;  %v68_v14 = vld [vmem:[#allocation4 + $0xa8] sm:$0xff]  ;;  %v67_v15 = vld [vmem:[#allocation4 + $0xa0] sm:$0xff]  ;;  %v66_v16 = vld [vmem:[#allocation4 + $0x98] sm:$0xff] }
  0x12   :  { %131 = vmatpush.msra.mxu1 %v75_v7  ;;  %216 = vmatpush.msra.mxu3 %v74_v8  ;;  %v65_v17 = vld [vmem:[#allocation4 + $0x90] sm:$0xff]  ;;  %v64_v18 = vld [vmem:[#allocation4 + $0x88] sm:$0xff]  ;;  %v63_v19 = vld [vmem:[#allocation4 + $0x80] sm:$0xff] }
  0x13   :  { %161 = vmatpush.msra.mxu2 %v73_v9  ;;  %102 = vmatpush.msra.mxu0 %v74_v8  ;;  %v62_v20 = vld [vmem:[#allocation4 + $0x78] sm:$0xff]  ;;  %v61_v21 = vld [vmem:[#allocation4 + $0x70] sm:$0xff]  ;;  %v60_v22 = vld [vmem:[#allocation4 + $0x68] sm:$0xff] }
  0x14   :  { %132 = vmatpush.msra.mxu1 %v72_v10  ;;  %217 = vmatpush.msra.mxu3 %v71_v11  ;;  %v59_v23 = vld [vmem:[#allocation4 + $0x60] sm:$0xff]  ;;  %v58_v24 = vld [vmem:[#allocation4 + $0x58] sm:$0xff]  ;;  %v57_v25 = vld [vmem:[#allocation4 + $0x50] sm:$0xff] }
  0x15   :  { %162 = vmatpush.msra.mxu2 %v70_v12  ;;  %103 = vmatpush.msra.mxu0 %v71_v11  ;;  %v56_v26 = vld [vmem:[#allocation4 + $0x48] sm:$0xff]  ;;  %v55_v27 = vld [vmem:[#allocation4 + $0x40] sm:$0xff]  ;;  %v54_v28 = vld [vmem:[#allocation4 + $0x38] sm:$0xff] }
  0x16   :  { %133 = vmatpush.msra.mxu1 %v69_v13  ;;  %218 = vmatpush.msra.mxu3 %v68_v14  ;;  %v53_v29 = vld [vmem:[#allocation4 + $0x30] sm:$0xff]  ;;  %v52_v30 = vld [vmem:[#allocation4 + $0x28] sm:$0xff]  ;;  %v51_v31 = vld [vmem:[#allocation4 + $0x20] sm:$0xff] }
  0x17   :  { %163 = vmatpush.msra.mxu2 %v67_v15  ;;  %104 = vmatpush.msra.mxu0 %v68_v14  ;;  %v50_v32 = vld [vmem:[#allocation4 + $0x18] sm:$0xff]  ;;  %v49_v33 = vld [vmem:[#allocation4 + $0x10] sm:$0xff]  ;;  %v43_v34 = vld [vmem:[#allocation2] sm:$0xff] }
  0x18   :  { %134 = vmatpush.msra.mxu1 %v66_v16  ;;  %219 = vmatpush.msra.mxu3 %v65_v17  ;;  %v48_v35 = vld [vmem:[#allocation4 + $0x8] sm:$0xff]  ;;  %v47_v36 = vld [vmem:[#allocation4] sm:$0xff]  ;;  %v45_v38 = vld [vmem:[#allocation2 + $0x10] sm:$0xff] }
  0x19   :  { %164 = vmatpush.msra.mxu2 %v64_v18  ;;  %105 = vmatpush.msra.mxu0 %v65_v17  ;;  %v44_v37 = vld [vmem:[#allocation2 + $0x8] sm:$0xff]  ;;  %v46_v39 = vld [vmem:[#allocation2 + $0x18] sm:$0xff] }
  0x1a   :  { %135 = vmatpush.msra.mxu1 %v63_v19  ;;  %220 = vmatpush.msra.mxu3 %v62_v20 }
  0x1b   :  { %165 = vmatpush.msra.mxu2 %v61_v21  ;;  %106 = vmatpush.msra.mxu0 %v62_v20 }
  0x1c   :  { %136 = vmatpush.msra.mxu1 %v60_v22  ;;  %221 = vmatpush.msra.mxu3 %v59_v23 }
  0x1d   :  { %166 = vmatpush.msra.mxu2 %v58_v24  ;;  %107 = vmatpush.msra.mxu0 %v59_v23 }
  0x1e   :  { %137 = vmatpush.msra.mxu1 %v57_v25  ;;  %222 = vmatpush.msra.mxu3 %v56_v26 }
  0x1f   :  { %167 = vmatpush.msra.mxu2 %v55_v27  ;;  %108 = vmatpush.msra.mxu0 %v56_v26 }
  0x20   :  { %138 = vmatpush.msra.mxu1 %v54_v28  ;;  %223 = vmatpush.msra.mxu3 %v53_v29 }
  0x21   :  { %168 = vmatpush.msra.mxu2 %v52_v30  ;;  %109 = vmatpush.msra.mxu0 %v53_v29 }
  0x22   :  { %139 = vmatpush.msra.mxu1 %v51_v31  ;;  %224 = vmatpush.msra.mxu3 %v50_v32 }
  0x23   :  { %169 = vmatpush.msra.mxu2 %v49_v33  ;;  %110 = vmatpush.msra.mxu0 %v50_v32 }
  0x24   :  { %210 = vmatmul.msk.f32.vlgmr.msra.gmra.mxu2 %vm83_vm0, %v43_v34  ;;  %140 = vmatpush.msra.mxu1 %v48_v35 }
  0x25   :  { %206 = vmatmul.msk.f32.vlgmr.msra.gmra.mxu1 %vm83_vm0, %v43_v34  ;;  %225 = vmatpush.msra.mxu3 %v47_v36 }
  0x26   :  { %203 = vmatmul.msk.f32.vlgmr.msra.gmra.mxu3 %vm83_vm0, %v44_v37  ;;  %111 = vmatpush.msra.mxu0 %v47_v36 }
  0x27   :  { %202 = vmatmul.msk.f32.vlgmr.msra.gmra.mxu0 %vm83_vm0, %v43_v34 }
  0x2c   :  { %211 = vmatmul.msk.f32.gmra.mxu2 %vm83_vm0, %v44_v37 }
  0x2d   :  { %207 = vmatmul.msk.f32.gmra.mxu1 %vm83_vm0, %v44_v37 }
  0x2e   :  { %204 = vmatmul.msk.f32.gmra.mxu3 %vm83_vm0, %v45_v38 }
  0x34   :  { %212 = vmatmul.msk.f32.gmra.mxu2 %vm83_vm0, %v45_v38 }
  0x35   :  { %208 = vmatmul.msk.f32.gmra.mxu1 %vm83_vm0, %v45_v38 }
  0x36   :  { %205 = vmatmul.msk.f32.gmra.mxu3 %vm83_vm0, %v46_v39 }
  0x3c   :  { %213 = vmatmul.msk.f32.gmra.mxu2 %vm83_vm0, %v46_v39 }
  0x3d   :  { %209 = vmatmul.msk.f32.gmra.mxu1 %vm83_vm0, %v46_v39 }
  0xa2   :  { %v142_v40 = vpop.f32.mrf.mxu1 }
  0xa3   :  { %184 = vst [vmem:[%s365_s2 + $0x8] sm:$0xff] %v142_v40 }
  0xa4   :  { %v113_v41 = vpop.f32.mrf.mxu0 }
  0xa5   :  { %183 = vst [vmem:[%s365_s2] sm:$0xff] %v113_v41 }
  0xa7   :  { %v171_v42 = vpop.f32.mrf.mxu2 }
  0xa8   :  { %186 = vst.msk [vmem:[%s365_s2 + $0x10] sm:$0xff] %vm185_vm1, %v171_v42 }
  0xa9   :  { %v116_v43 = vpop.f32.mrf.mxu3 }
  0xaa   :  { %187 = vst [vmem:[%s365_s2 + $0x18] sm:$0xff] %v116_v43  ;;  %v145_v44 = vpop.f32.mrf.mxu1 }
  0xab   :  { %188 = vst [vmem:[%s365_s2 + $0x20] sm:$0xff] %v145_v44 }
  0xaf   :  { %v174_v45 = vpop.f32.mrf.mxu2 }
  0xb0   :  { %189 = vst.msk [vmem:[%s365_s2 + $0x28] sm:$0xff] %vm185_vm1, %v174_v45 }
  0xb1   :  { %v119_v46 = vpop.f32.mrf.mxu3 }
  0xb2   :  { %190 = vst [vmem:[%s365_s2 + $0x30] sm:$0xff] %v119_v46  ;;  %v148_v47 = vpop.f32.mrf.mxu1 }
  0xb3   :  { %191 = vst [vmem:[%s365_s2 + $0x38] sm:$0xff] %v148_v47 }
  0xb7   :  { %v177_v48 = vpop.f32.mrf.mxu2 }
  0xb8   :  { %192 = vst.msk [vmem:[%s365_s2 + $0x40] sm:$0xff] %vm185_vm1, %v177_v48 }
  0xb9   :  { %v122_v49 = vpop.f32.mrf.mxu3 }
  0xba   :  { %193 = vst [vmem:[%s365_s2 + $0x48] sm:$0xff] %v122_v49  ;;  %v151_v50 = vpop.f32.mrf.mxu1 }
  0xbb   :  { %194 = vst [vmem:[%s365_s2 + $0x50] sm:$0xff] %v151_v50 }
  0xbf   :  { %v180_v51 = vpop.f32.mrf.mxu2 }
  0xc0   :  { %195 = vst.msk [vmem:[%s365_s2 + $0x58] sm:$0xff] %vm185_vm1, %v180_v51 }
  0xc1   :  { %200 = vsyncpa [#allocation3], 1 }
  0xc2   :  { %201 = vsyncpa [#allocation5], 1 }

// kernel: mhsa_forward.3
= control target key start
LH: loop header
LB: loop body
LE: loop exit
PB: predicated region body
PF: predicated region fallthrough
CT: control target
= control target key end

     0   :  { %vm209_vm0 = vcmask 64512   ;;  %s6060_s0 = inlined_call_operand.vmem [shape: f32[3,24,16,8], index: 0, kind: input, shape index: {}]   ;;  %s6061_s1 = inlined_call_operand.vmem [shape: f32[96,96], index: 1, kind: input, shape index: {}]   ;;  %s6062_s2 = inlined_call_operand.vmem [shape: f32[1,96], index: 2, kind: input, shape index: {}]   ;;  %s6063_s3 = inlined_call_operand.hbm [shape: f32[2,16,96], index: 3, kind: output, shape index: {}]  }
   0x1   :  { %v3220_v0 = vld [vmem:[%s6060_s0 + $0x188] sm:$0xff]  ;;  %v3219_v3 = vld [vmem:[%s6060_s0 + $0x180] sm:$0xff]  ;;  %v3222_v11 = vld [vmem:[%s6060_s0 + $0x198] sm:$0xff] }
   0x2   :  { %v3224_v1 = vld [vmem:[%s6060_s0 + $0x1a8] sm:$0xff]  ;;  %3315 = vmatpush.xpose.msk.msra.mxu1 %vm209_vm0, %v3220_v0  ;;  %v3223_v4 = vld [vmem:[%s6060_s0 + $0x1a0] sm:$0xff]  ;;  %3463 = vmatpush.xpose.msk.msra.mxu3 %vm209_vm0, %v3220_v0  ;;  %v3226_v13 = vld [vmem:[%s6060_s0 + $0x1b8] sm:$0xff] }
   0x3   :  { %v3236_v2 = vld [vmem:[%s6060_s0 + $0x208] sm:$0xff]  ;;  %3323 = vmatpush.xpose.msk.msra.mxu2 %vm209_vm0, %v3224_v1  ;;  %v15_v5 = vld [vmem:[%s6060_s0] sm:$0xff]  ;;  %v3221_v16 = vld [vmem:[%s6060_s0 + $0x190] sm:$0xff] }
   0x4   :  { %3347 = vmatpush.xpose.msk.msra.mxu0 %vm209_vm0, %v3236_v2  ;;  %v19_v6 = vld [vmem:[%s6060_s0 + $0x20] sm:$0xff]  ;;  %v63_v9 = vmul.f32 0.35355338, %v15_v5  ;;  %v16_v12 = vld [vmem:[%s6060_s0 + $0x8] sm:$0xff]  ;;  %v3225_v18 = vld [vmem:[%s6060_s0 + $0x1b0] sm:$0xff] }
   0x5   :  { %v31_v7 = vld [vmem:[%s6060_s0 + $0x80] sm:$0xff]  ;;  %v67_v10 = vmul.f32 0.35355338, %v19_v6  ;;  %v64_v15 = vmul.f32 0.35355338, %v16_v12  ;;  %v3244_v17 = vld [vmem:[%s6060_s0 + $0x248] sm:$0xff] }
   0x6   :  { %v3235_v8 = vld [vmem:[%s6060_s0 + $0x200] sm:$0xff]  ;;  %3316 = vmatpush.xpose.msk.msra.mxu1 %vm209_vm0, %v3219_v3  ;;  %v79_v14 = vmul.f32 0.35355338, %v31_v7  ;;  %3464 = vmatpush.xpose.msk.msra.mxu3 %vm209_vm0, %v3219_v3  ;;  %v17_v19 = vld [vmem:[%s6060_s0 + $0x10] sm:$0xff]  ;;  %v3228_v20 = vld [vmem:[%s6060_s0 + $0x1c8] sm:$0xff] }
   0x7   :  { %3324 = vmatpush.xpose.msk.msra.mxu2 %vm209_vm0, %v3223_v4  ;;  %v20_v21 = vld [vmem:[%s6060_s0 + $0x28] sm:$0xff]  ;;  %v3234_v22 = vld [vmem:[%s6060_s0 + $0x1f8] sm:$0xff]  ;;  %v21_v24 = vld [vmem:[%s6060_s0 + $0x30] sm:$0xff]  ;;  %v65_v28 = vmul.f32 0.35355338, %v17_v19 }
   0x8   :  { %3348 = vmatpush.xpose.msk.msra.mxu0 %vm209_vm0, %v3235_v8  ;;  %v3230_v23 = vld [vmem:[%s6060_s0 + $0x1d8] sm:$0xff]  ;;  %v32_v25 = vld [vmem:[%s6060_s0 + $0x88] sm:$0xff]  ;;  %v3243_v26 = vld [vmem:[%s6060_s0 + $0x240] sm:$0xff]  ;;  %v68_v29 = vmul.f32 0.35355338, %v20_v21 }
   0x9   :  { %3317 = vmatmul.msk.f32.vlgmr.msra.gmra.mxu1 %vm209_vm0, %v63_v9  ;;  %3318 = vmatmul.msk.f32.vlgmr.msra.gmra.mxu3 %vm209_vm0, %v64_v15  ;;  %v3227_v27 = vld [vmem:[%s6060_s0 + $0x1c0] sm:$0xff]  ;;  %v69_v30 = vmul.f32 0.35355338, %v21_v24  ;;  %v80_v31 = vmul.f32 0.35355338, %v32_v25  ;;  %v3232_v32 = vld [vmem:[%s6060_s0 + $0x1e8] sm:$0xff] }
   0xa   :  { %3319 = vmatpush.xpose.msk.msrb.mxu1 %vm209_vm0, %v3222_v11  ;;  %3327 = vmatpush.xpose.msk.msrb.mxu3 %vm209_vm0, %v3226_v13  ;;  %v3252_v33 = vld [vmem:[%s6060_s0 + $0x288] sm:$0xff]  ;;  %v3233_v34 = vld [vmem:[%s6060_s0 + $0x1f0] sm:$0xff]  ;;  %v18_v36 = vld [vmem:[%s6060_s0 + $0x18] sm:$0xff] }
   0xb   :  { %3325 = vmatmul.msk.f32.vlgmr.msra.gmra.mxu2 %vm209_vm0, %v67_v10  ;;  %3349 = vmatmul.msk.f32.vlgmr.msra.gmra.mxu0 %vm209_vm0, %v79_v14  ;;  %v3229_v35 = vld [vmem:[%s6060_s0 + $0x1d0] sm:$0xff]  ;;  %v3231_v37 = vld [vmem:[%s6060_s0 + $0x1e0] sm:$0xff]  ;;  %v3242_v38 = vld [vmem:[%s6060_s0 + $0x238] sm:$0xff]  ;;  %v66_v44 = vmul.f32 0.35355338, %v18_v36 }
   0xc   :  { %3363 = vmatpush.xpose.msk.msrb.mxu0 %vm209_vm0, %v3244_v17  ;;  %3331 = vmatpush.xpose.msk.msrb.mxu2 %vm209_vm0, %v3228_v20  ;;  %v23_v39 = vld [vmem:[%s6060_s0 + $0x40] sm:$0xff]  ;;  %v3238_v41 = vld [vmem:[%s6060_s0 + $0x218] sm:$0xff]  ;;  %v3241_v46 = vld [vmem:[%s6060_s0 + $0x230] sm:$0xff] }
   0xd   :  { %v3251_v40 = vld [vmem:[%s6060_s0 + $0x280] sm:$0xff]  ;;  %v22_v42 = vld [vmem:[%s6060_s0 + $0x38] sm:$0xff]  ;;  %v71_v45 = vmul.f32 0.35355338, %v23_v39 }
   0xe   :  { %3320 = vmatpush.xpose.msk.msrb.mxu1 %vm209_vm0, %v3221_v16  ;;  %3328 = vmatpush.xpose.msk.msrb.mxu3 %vm209_vm0, %v3225_v18  ;;  %v39_v43 = vld [vmem:[%s6060_s0 + $0xc0] sm:$0xff]  ;;  %v70_v47 = vmul.f32 0.35355338, %v22_v42 }
   0xf   :  { %v87_v48 = vmul.f32 0.35355338, %v39_v43 }
  0x10   :  { %3364 = vmatpush.xpose.msk.msrb.mxu0 %vm209_vm0, %v3243_v26  ;;  %3332 = vmatpush.xpose.msk.msrb.mxu2 %vm209_vm0, %v3227_v27 }
  0x11   :  { %3321 = vmatmul.msk.f32.vlgmr.msrb.gmra.mxu1 %vm209_vm0, %v65_v28  ;;  %3329 = vmatmul.msk.f32.vlgmr.msrb.gmra.mxu3 %vm209_vm0, %v69_v30 }
  0x12   :  { %3343 = vmatpush.xpose.msk.msra.mxu3 %vm209_vm0, %v3234_v22  ;;  %3335 = vmatpush.xpose.msk.msra.mxu1 %vm209_vm0, %v3230_v23 }
  0x13   :  { %3326 = vmatmul.msk.f32.gmra.mxu2 %vm209_vm0, %v68_v29  ;;  %3350 = vmatmul.msk.f32.gmra.mxu0 %vm209_vm0, %v80_v31 }
  0x14   :  { %3339 = vmatpush.xpose.msk.msra.mxu2 %vm209_vm0, %v3232_v32  ;;  %3379 = vmatpush.xpose.msk.msra.mxu0 %vm209_vm0, %v3252_v33 }
  0x16   :  { %3344 = vmatpush.xpose.msk.msra.mxu3 %vm209_vm0, %v3233_v34  ;;  %3336 = vmatpush.xpose.msk.msra.mxu1 %vm209_vm0, %v3229_v35 }
  0x18   :  { %3340 = vmatpush.xpose.msk.msra.mxu2 %vm209_vm0, %v3231_v37  ;;  %3380 = vmatpush.xpose.msk.msra.mxu0 %vm209_vm0, %v3251_v40 }
  0x1a   :  { %3359 = vmatpush.xpose.msk.msrb.mxu3 %vm209_vm0, %v3242_v38  ;;  %3351 = vmatpush.xpose.msk.msrb.mxu1 %vm209_vm0, %v3238_v41 }
  0x1b   :  { %8 = vsyncpa [#allocation4], 0  ;;  %v3237_v49 = vld [vmem:[%s6060_s0 + $0x210] sm:$0xff]  ;;  %v3260_v50 = vld [vmem:[%s6060_s0 + $0x2c8] sm:$0xff]  ;;  %3322 = vmatmul.msk.f32.gmra.mxu1 %vm209_vm0, %v66_v44  ;;  %3333 = vmatmul.msk.f32.vlgmr.msrb.gmra.mxu2 %vm209_vm0, %v71_v45  ;;  %vm1050_vm1 = vcmask 130048   ;;  %s3698_s30 = smov 8  }
  0x1c   :  { %v3240_v51 = vld [vmem:[%s6060_s0 + $0x228] sm:$0xff]  ;;  %3330 = vmatmul.msk.f32.gmra.mxu3 %vm209_vm0, %v70_v47  ;;  %3365 = vmatmul.msk.f32.vlgmr.msrb.gmra.mxu0 %vm209_vm0, %v87_v48  ;;  %v25_v52 = vld [vmem:[%s6060_s0 + $0x50] sm:$0xff]  ;;  %v3259_v56 = vld [vmem:[%s6060_s0 + $0x2c0] sm:$0xff]  ;;  %s3699_s4 = smov 24   ;;  %s3700_s5 = smov 32  }
  0x1d   :  { %v24_v53 = vld [vmem:[%s6060_s0 + $0x48] sm:$0xff]  ;;  %v29_v54 = vld [vmem:[%s6060_s0 + $0x70] sm:$0xff]  ;;  %3395 = vmatpush.xpose.msk.msrb.mxu0 %vm209_vm0, %v3260_v50  ;;  %3355 = vmatpush.xpose.msk.msrb.mxu2 %vm209_vm0, %v3240_v51  ;;  %v73_v57 = vmul.f32 0.35355338, %v25_v52  ;;  %v3239_v59 = vld [vmem:[%s6060_s0 + $0x220] sm:$0xff]  ;;  %s3701_s6 = smov 40  }
  0x1e   :  { %3360 = vmatpush.xpose.msk.msrb.mxu3 %vm209_vm0, %v3241_v46  ;;  %v40_v55 = vld [vmem:[%s6060_s0 + $0xc8] sm:$0xff]  ;;  %3352 = vmatpush.xpose.msk.msrb.mxu1 %vm209_vm0, %v3237_v49  ;;  %v72_v58 = vmul.f32 0.35355338, %v24_v53  ;;  %v77_v60 = vmul.f32 0.35355338, %v29_v54  ;;  %v3246_v62 = vld [vmem:[%s6060_s0 + $0x258] sm:$0xff] }
  0x1f   :  { %v88_v61 = vmul.f32 0.35355338, %v40_v55  ;;  %v3250_v63 = vld [vmem:[%s6060_s0 + $0x278] sm:$0xff]  ;;  %v27_v1 = vld [vmem:[%s6060_s0 + $0x60] sm:$0xff]  ;;  %v3245_v4 = vld [vmem:[%s6060_s0 + $0x250] sm:$0xff]  ;;  %s3702_s7 = smov 48  }
  0x20   :  { %v26_v0 = vld [vmem:[%s6060_s0 + $0x58] sm:$0xff]  ;;  %v47_v3 = vld [vmem:[%s6060_s0 + $0x100] sm:$0xff]  ;;  %v3249_v5 = vld [vmem:[%s6060_s0 + $0x270] sm:$0xff]  ;;  %v75_v7 = vmul.f32 0.35355338, %v27_v1  ;;  %s3703_s8 = smov 64  }
  0x21   :  { %3396 = vmatpush.xpose.msk.msrb.mxu0 %vm209_vm0, %v3259_v56  ;;  %3356 = vmatpush.xpose.msk.msrb.mxu2 %vm209_vm0, %v3239_v59  ;;  %v30_v2 = vld [vmem:[%s6060_s0 + $0x78] sm:$0xff]  ;;  %v74_v6 = vmul.f32 0.35355338, %v26_v0  ;;  %v95_v9 = vmul.f32 0.35355338, %v47_v3  ;;  %v3248_v10 = vld [vmem:[%s6060_s0 + $0x268] sm:$0xff] }
  0x22   :  { %v78_v8 = vmul.f32 0.35355338, %v30_v2  ;;  %v28_v11 = vld [vmem:[%s6060_s0 + $0x68] sm:$0xff]  ;;  %v33_v12 = vld [vmem:[%s6060_s0 + $0x90] sm:$0xff]  ;;  %v3247_v15 = vld [vmem:[%s6060_s0 + $0x260] sm:$0xff]  ;;  %s3704_s9 = smov 56  }
  0x23   :  { %3337 = vmatmul.msk.f32.vlgmr.msra.gmra.mxu1 %vm209_vm0, %v73_v57  ;;  %3334 = vmatmul.msk.f32.gmra.mxu2 %vm209_vm0, %v72_v58  ;;  %v37_v13 = vld [vmem:[%s6060_s0 + $0xb0] sm:$0xff]  ;;  %v48_v14 = vld [vmem:[%s6060_s0 + $0x108] sm:$0xff]  ;;  %v76_v16 = vmul.f32 0.35355338, %v28_v11  ;;  %v81_v17 = vmul.f32 0.35355338, %v33_v12 }
  0x24   :  { %3345 = vmatmul.msk.f32.vlgmr.msra.gmra.mxu3 %vm209_vm0, %v77_v60  ;;  %3366 = vmatmul.msk.f32.gmra.mxu0 %vm209_vm0, %v88_v61  ;;  %v85_v18 = vmul.f32 0.35355338, %v37_v13  ;;  %v96_v19 = vmul.f32 0.35355338, %v48_v14  ;;  %v3258_v20 = vld [vmem:[%s6060_s0 + $0x2b8] sm:$0xff]  ;;  %v35_v23 = vld [vmem:[%s6060_s0 + $0xa0] sm:$0xff] }
  0x25   :  { %3367 = vmatpush.xpose.msk.msra.mxu1 %vm209_vm0, %v3246_v62  ;;  %3375 = vmatpush.xpose.msk.msra.mxu3 %vm209_vm0, %v3250_v63  ;;  %v3254_v21 = vld [vmem:[%s6060_s0 + $0x298] sm:$0xff]  ;;  %v55_v25 = vld [vmem:[%s6060_s0 + $0x140] sm:$0xff]  ;;  %v3257_v26 = vld [vmem:[%s6060_s0 + $0x2b0] sm:$0xff]  ;;  %v83_v29 = vmul.f32 0.35355338, %v35_v23  ;;  %s3705_s10 = smov 72  }
  0x26   :  { %v34_v22 = vld [vmem:[%s6060_s0 + $0x98] sm:$0xff]  ;;  %v3253_v27 = vld [vmem:[%s6060_s0 + $0x290] sm:$0xff]  ;;  %v103_v31 = vmul.f32 0.35355338, %v55_v25  ;;  %v3256_v32 = vld [vmem:[%s6060_s0 + $0x2a8] sm:$0xff]  ;;  %s3706_s11 = smov 88  }
  0x27   :  { %v38_v24 = vld [vmem:[%s6060_s0 + $0xb8] sm:$0xff]  ;;  %v82_v28 = vmul.f32 0.35355338, %v34_v22  ;;  %v41_v33 = vld [vmem:[%s6060_s0 + $0xd0] sm:$0xff]  ;;  %v36_v34 = vld [vmem:[%s6060_s0 + $0xa8] sm:$0xff]  ;;  %s3707_s12 = smov 80  }
  0x28   :  { %v86_v30 = vmul.f32 0.35355338, %v38_v24  ;;  %v56_v35 = vld [vmem:[%s6060_s0 + $0x148] sm:$0xff]  ;;  %v45_v36 = vld [vmem:[%s6060_s0 + $0xf0] sm:$0xff]  ;;  %v3255_v37 = vld [vmem:[%s6060_s0 + $0x2a0] sm:$0xff]  ;;  %s3207_s13 = sshll.u32 %s6063_s3, 4  ;;  %s3208_s13 = int_to_ptr.hbm [resolvable:$true] %s3207_s13 }
  0x29   :  { %3368 = vmatpush.xpose.msk.msra.mxu1 %vm209_vm0, %v3245_v4  ;;  %3376 = vmatpush.xpose.msk.msra.mxu3 %vm209_vm0, %v3249_v5  ;;  %v89_v38 = vmul.f32 0.35355338, %v41_v33  ;;  %v84_v39 = vmul.f32 0.35355338, %v36_v34  ;;  %v104_v40 = vmul.f32 0.35355338, %v56_v35 }
  0x2a   :  { %v93_v41 = vmul.f32 0.35355338, %v45_v36  ;;  %v3266_v42 = vld [vmem:[%s6060_s0 + $0x2f8] sm:$0xff]  ;;  %v43_v45 = vld [vmem:[%s6060_s0 + $0xe0] sm:$0xff]  ;;  %v3265_v47 = vld [vmem:[%s6060_s0 + $0x2f0] sm:$0xff]  ;;  %s3708_s14 = smov [#allocation3]  }
  0x2b   :  { %3338 = vmatmul.msk.f32.gmra.mxu1 %vm209_vm0, %v74_v6  ;;  %3341 = vmatmul.msk.f32.vlgmr.msra.gmra.mxu2 %vm209_vm0, %v75_v7  ;;  %v3262_v43 = vld [vmem:[%s6060_s0 + $0x2d8] sm:$0xff]  ;;  %v3261_v48 = vld [vmem:[%s6060_s0 + $0x2d0] sm:$0xff]  ;;  %v91_v50 = vmul.f32 0.35355338, %v43_v45  ;;  %v3264_v52 = vld [vmem:[%s6060_s0 + $0x2e8] sm:$0xff]  ;;  %s3205_s15 = sshll.u32 %s3708_s14, 4  ;;  %s3206_s15 = int_to_ptr.vmem [resolvable:$true] %s3205_s15 }
  0x2c   :  { %3346 = vmatmul.msk.f32.gmra.mxu3 %vm209_vm0, %v78_v8  ;;  %3381 = vmatmul.msk.f32.vlgmr.msra.gmra.mxu0 %vm209_vm0, %v95_v9  ;;  %v42_v44 = vld [vmem:[%s6060_s0 + $0xd8] sm:$0xff]  ;;  %v44_v53 = vld [vmem:[%s6060_s0 + $0xe8] sm:$0xff]  ;;  %v49_v54 = vld [vmem:[%s6060_s0 + $0x110] sm:$0xff] }
  0x2d   :  { %3371 = vmatpush.xpose.msk.msra.mxu2 %vm209_vm0, %v3248_v10  ;;  %v46_v46 = vld [vmem:[%s6060_s0 + $0xf8] sm:$0xff]  ;;  %v90_v49 = vmul.f32 0.35355338, %v42_v44  ;;  %v53_v55 = vld [vmem:[%s6060_s0 + $0x130] sm:$0xff]  ;;  %v3263_v56 = vld [vmem:[%s6060_s0 + $0x2e0] sm:$0xff] }
  0x2e   :  { %v94_v51 = vmul.f32 0.35355338, %v46_v46  ;;  %v92_v57 = vmul.f32 0.35355338, %v44_v53  ;;  %v97_v58 = vmul.f32 0.35355338, %v49_v54 }
  0x2f   :  { %v101_v59 = vmul.f32 0.35355338, %v53_v55  ;;  %v51_v60 = vld [vmem:[%s6060_s0 + $0x120] sm:$0xff]  ;;  %v50_v61 = vld [vmem:[%s6060_s0 + $0x118] sm:$0xff]  ;;  %v52_v2 = vld [vmem:[%s6060_s0 + $0x128] sm:$0xff] }
  0x30   :  { %v54_v62 = vld [vmem:[%s6060_s0 + $0x138] sm:$0xff]  ;;  %v99_v63 = vmul.f32 0.35355338, %v51_v60  ;;  %v98_v0 = vmul.f32 0.35355338, %v50_v61  ;;  %v57_v3 = vld [vmem:[%s6060_s0 + $0x150] sm:$0xff] }
  0x31   :  { %3372 = vmatpush.xpose.msk.msra.mxu2 %vm209_vm0, %v3247_v15  ;;  %v102_v1 = vmul.f32 0.35355338, %v54_v62  ;;  %v61_v4 = vld [vmem:[%s6060_s0 + $0x170] sm:$0xff]  ;;  %v100_v5 = vmul.f32 0.35355338, %v52_v2  ;;  %v59_v8 = vld [vmem:[%s6060_s0 + $0x160] sm:$0xff] }
  0x32   :  { %v105_v6 = vmul.f32 0.35355338, %v57_v3  ;;  %v109_v7 = vmul.f32 0.35355338, %v61_v4  ;;  %v62_v9 = vld [vmem:[%s6060_s0 + $0x178] sm:$0xff]  ;;  %v60_v14 = vld [vmem:[%s6060_s0 + $0x168] sm:$0xff] }
  0x33   :  { %3342 = vmatmul.msk.f32.gmra.mxu2 %vm209_vm0, %v76_v16  ;;  %3353 = vmatmul.msk.f32.vlgmr.msrb.gmra.mxu1 %vm209_vm0, %v81_v17  ;;  %v107_v10 = vmul.f32 0.35355338, %v59_v8  ;;  %v58_v11 = vld [vmem:[%s6060_s0 + $0x158] sm:$0xff]  ;;  %v110_v12 = vmul.f32 0.35355338, %v62_v9 }
  0x34   :  { %3361 = vmatmul.msk.f32.vlgmr.msrb.gmra.mxu3 %vm209_vm0, %v85_v18  ;;  %3382 = vmatmul.msk.f32.gmra.mxu0 %vm209_vm0, %v96_v19  ;;  %v106_v13 = vmul.f32 0.35355338, %v58_v11  ;;  %v108_v15 = vmul.f32 0.35355338, %v60_v14 }
  0x35   :  { %3391 = vmatpush.xpose.msk.msrb.mxu3 %vm209_vm0, %v3258_v20  ;;  %3383 = vmatpush.xpose.msk.msrb.mxu1 %vm209_vm0, %v3254_v21 }
  0x39   :  { %3392 = vmatpush.xpose.msk.msrb.mxu3 %vm209_vm0, %v3257_v26  ;;  %3384 = vmatpush.xpose.msk.msrb.mxu1 %vm209_vm0, %v3253_v27 }
  0x3b   :  { %3354 = vmatmul.msk.f32.gmra.mxu1 %vm209_vm0, %v82_v28  ;;  %3357 = vmatmul.msk.f32.vlgmr.msrb.gmra.mxu2 %vm209_vm0, %v83_v29 }
  0x3c   :  { %3362 = vmatmul.msk.f32.gmra.mxu3 %vm209_vm0, %v86_v30  ;;  %3397 = vmatmul.msk.f32.vlgmr.msrb.gmra.mxu0 %vm209_vm0, %v103_v31 }
  0x3d   :  { %3387 = vmatpush.xpose.msk.msrb.mxu2 %vm209_vm0, %v3256_v32 }
  0x41   :  { %3388 = vmatpush.xpose.msk.msrb.mxu2 %vm209_vm0, %v3255_v37 }
  0x43   :  { %3369 = vmatmul.msk.f32.vlgmr.msra.gmra.mxu1 %vm209_vm0, %v89_v38  ;;  %3358 = vmatmul.msk.f32.gmra.mxu2 %vm209_vm0, %v84_v39 }
  0x44   :  { %3398 = vmatmul.msk.f32.gmra.mxu0 %vm209_vm0, %v104_v40  ;;  %3377 = vmatmul.msk.f32.vlgmr.msra.gmra.mxu3 %vm209_vm0, %v93_v41 }
  0x45   :  { %3407 = vmatpush.xpose.msk.msra.mxu3 %vm209_vm0, %v3266_v42  ;;  %3399 = vmatpush.xpose.msk.msra.mxu1 %vm209_vm0, %v3262_v43 }
  0x49   :  { %3408 = vmatpush.xpose.msk.msra.mxu3 %vm209_vm0, %v3265_v47  ;;  %3400 = vmatpush.xpose.msk.msra.mxu1 %vm209_vm0, %v3261_v48 }
  0x4b   :  { %3370 = vmatmul.msk.f32.gmra.mxu1 %vm209_vm0, %v90_v49  ;;  %3373 = vmatmul.msk.f32.vlgmr.msra.gmra.mxu2 %vm209_vm0, %v91_v50 }
  0x4c   :  { %3378 = vmatmul.msk.f32.gmra.mxu3 %vm209_vm0, %v94_v51  ;;  %3403 = vmatpush.xpose.msk.msra.mxu2 %vm209_vm0, %v3264_v52 }
  0x50   :  { %3404 = vmatpush.xpose.msk.msra.mxu2 %vm209_vm0, %v3263_v56 }
  0x53   :  { %3374 = vmatmul.msk.f32.gmra.mxu2 %vm209_vm0, %v92_v57  ;;  %3385 = vmatmul.msk.f32.vlgmr.msrb.gmra.mxu1 %vm209_vm0, %v97_v58 }
  0x54   :  { %3393 = vmatmul.msk.f32.vlgmr.msrb.gmra.mxu3 %vm209_vm0, %v101_v59 }
  0x5b   :  { %3389 = vmatmul.msk.f32.vlgmr.msrb.gmra.mxu2 %vm209_vm0, %v99_v63  ;;  %3386 = vmatmul.msk.f32.gmra.mxu1 %vm209_vm0, %v98_v0 }
  0x5c   :  { %3394 = vmatmul.msk.f32.gmra.mxu3 %vm209_vm0, %v102_v1 }
  0x63   :  { %3390 = vmatmul.msk.f32.gmra.mxu2 %vm209_vm0, %v100_v5  ;;  %3401 = vmatmul.msk.f32.vlgmr.msra.gmra.mxu1 %vm209_vm0, %v105_v6 }
  0x64   :  { %3409 = vmatmul.msk.f32.vlgmr.msra.gmra.mxu3 %vm209_vm0, %v109_v7 }
  0x6b   :  { %3405 = vmatmul.msk.f32.vlgmr.msra.gmra.mxu2 %vm209_vm0, %v107_v10  ;;  %3402 = vmatmul.msk.f32.gmra.mxu1 %vm209_vm0, %v106_v13 }
  0x6c   :  { %3410 = vmatmul.msk.f32.gmra.mxu3 %vm209_vm0, %v110_v12 }
  0x73   :  { %3406 = vmatmul.msk.f32.gmra.mxu2 %vm209_vm0, %v108_v15 }
  0x86   :  { %v4116_v16 = vpop.f32.mrf.mxu1 }
  0x87   :  { %v1051_v18 = vsel %vm1050_vm1, %v4116_v16, -inf }
  0x88   :  { %v4118_v17 = vpop.f32.mrf.mxu0  ;;  %1052 = vmax.xlane.f32.xlu1 %v1051_v18 }
  0x89   :  { %v1099_v19 = vsel %vm1050_vm1, %v4118_v17, -inf }
  0x8a   :  { %1100 = vmax.xlane.f32.xlu0 %v1099_v19 }
  0x8c   :  { %v4126_v21 = vpop.f32.mrf.mxu3 }
  0x8d   :  { %v1054_v31 = vsel %vm1050_vm1, %v4126_v21, -inf }
  0x8e   :  { %v4124_v20 = vpop.f32.mrf.mxu2  ;;  %v4128_v22 = vpop.f32.mrf.mxu1 }
  0x8f   :  { %v1057_v23 = vsel %vm1050_vm1, %v4128_v22, -inf  ;;  %v1063_v25 = vsel %vm1050_vm1, %v4124_v20, -inf }
  0x90   :  { %v4132_v24 = vpop.f32.mrf.mxu0  ;;  %1058 = vmax.xlane.f32.xlu1 %v1057_v23 }
  0x91   :  { %v1102_v29 = vsel %vm1050_vm1, %v4132_v24, -inf }
  0x92   :  { %1064 = vmax.xlane.f32.xlu0 %v1063_v25 }
  0x94   :  { %v4140_v28 = vpop.f32.mrf.mxu3 }
  0x95   :  { %v1069_v37 = vsel %vm1050_vm1, %v4140_v28, -inf }
  0x96   :  { %v4136_v26 = vpop.f32.mrf.mxu2 }
  0x97   :  { %v1066_v27 = vsel %vm1050_vm1, %v4136_v26, -inf }
  0x98   :  { %1067 = vmax.xlane.f32.xlu2 %v1066_v27  ;;  %v4144_v30 = vpop.f32.mrf.mxu1  ;;  %1103 = vmax.xlane.f32.xlu1 %v1102_v29 }
  0x99   :  { %v4148_v32 = vpop.f32.mrf.mxu0  ;;  %v1060_v36 = vsel %vm1050_vm1, %v4144_v30, -inf }
  0x9a   :  { %1055 = vmax.xlane.f32.xlu0 %v1054_v31  ;;  %v1123_v33 = vsel %vm1050_vm1, %v4148_v32, -inf }
  0x9e   :  { %v4152_v34 = vpop.f32.mrf.mxu2 }
  0x9f   :  { %v4154_v35 = vpop.f32.mrf.mxu3  ;;  %v1075_v43 = vsel %vm1050_vm1, %v4152_v34, -inf }
  0xa0   :  { %1124 = vmax.xlane.f32.xlu2 %v1123_v33  ;;  %1061 = vmax.xlane.f32.xlu1 %v1060_v36  ;;  %v4160_v38 = vpop.f32.mrf.mxu1  ;;  %v1072_v40 = vsel %vm1050_vm1, %v4154_v35, -inf }
  0xa1   :  { %v4162_v39 = vpop.f32.mrf.mxu0  ;;  %v1081_v45 = vsel %vm1050_vm1, %v4160_v38, -inf }
  0xa2   :  { %1070 = vmax.xlane.f32.xlu0 %v1069_v37  ;;  %v1126_v48 = vsel %vm1050_vm1, %v4162_v39, -inf }
  0xa6   :  { %v4166_v41 = vpop.f32.mrf.mxu2 }
  0xa7   :  { %v4168_v42 = vpop.f32.mrf.mxu3  ;;  %v1078_v52 = vsel %vm1050_vm1, %v4166_v41, -inf }
  0xa8   :  { %1073 = vmax.xlane.f32.xlu2 %v1072_v40  ;;  %v1093_v44 = vsel %vm1050_vm1, %v4168_v42, -inf  ;;  %1076 = vmax.xlane.f32.xlu1 %v1075_v43  ;;  %v4176_v46 = vpop.f32.mrf.mxu1 }
  0xa9   :  { %v4178_v47 = vpop.f32.mrf.mxu0  ;;  %v1084_v51 = vsel %vm1050_vm1, %v4176_v46, -inf }
  0xaa   :  { %1094 = vmax.xlane.f32.xlu0 %v1093_v44  ;;  %v1147_v55 = vsel %vm1050_vm1, %v4178_v47, -inf }
  0xae   :  { %v4182_v49 = vpop.f32.mrf.mxu2 }
  0xaf   :  { %v4184_v50 = vpop.f32.mrf.mxu3  ;;  %v1087_v59 = vsel %vm1050_vm1, %v4182_v49, -inf }
  0xb0   :  { %1082 = vmax.xlane.f32.xlu2 %v1081_v45  ;;  %1127 = vmax.xlane.f32.xlu1 %v1126_v48  ;;  %v1096_v53 = vsel %vm1050_vm1, %v4184_v50, -inf  ;;  %v4192_v54 = vpop.f32.mrf.mxu1 }
  0xb1   :  { %v4200_v58 = vpop.f32.mrf.mxu0  ;;  %v1105_v60 = vsel %vm1050_vm1, %v4192_v54, -inf }
  0xb2   :  { %1085 = vmax.xlane.f32.xlu0 %v1084_v51  ;;  %v1150_v2 = vsel %vm1050_vm1, %v4200_v58, -inf }
  0xb6   :  { %v4198_v57 = vpop.f32.mrf.mxu2 }
  0xb7   :  { %v4196_v56 = vpop.f32.mrf.mxu3  ;;  %v1090_v61 = vsel %vm1050_vm1, %v4198_v57, -inf }
  0xb8   :  { %1079 = vmax.xlane.f32.xlu2 %v1078_v52  ;;  %1097 = vmax.xlane.f32.xlu1 %v1096_v53  ;;  %v4208_v62 = vpop.f32.mrf.mxu1  ;;  %v1117_v9 = vsel %vm1050_vm1, %v4196_v56, -inf }
  0xb9   :  { %v4214_v1 = vpop.f32.mrf.mxu0  ;;  %v1108_v15 = vsel %vm1050_vm1, %v4208_v62, -inf }
  0xba   :  { %1148 = vmax.xlane.f32.xlu0 %v1147_v55  ;;  %v1171_v3 = vsel %vm1050_vm1, %v4214_v1, -inf }
  0xbe   :  { %v4210_v63 = vpop.f32.mrf.mxu2 }
  0xbf   :  { %v4212_v0 = vpop.f32.mrf.mxu3  ;;  %v1111_v10 = vsel %vm1050_vm1, %v4210_v63, -inf }
  0xc0   :  { %1088 = vmax.xlane.f32.xlu2 %v1087_v59  ;;  %1106 = vmax.xlane.f32.xlu1 %v1105_v60  ;;  %v1120_v4 = vsel %vm1050_vm1, %v4212_v0, -inf  ;;  %v4224_v6 = vpop.f32.mrf.mxu1 }
  0xc1   :  { %v4228_v8 = vpop.f32.mrf.mxu0  ;;  %v1129_v19 = vsel %vm1050_vm1, %v4224_v6, -inf }
  0xc2   :  { %1091 = vmax.xlane.f32.xlu0 %v1090_v61  ;;  %v1174_v11 = vsel %vm1050_vm1, %v4228_v8, -inf }
  0xc6   :  { %v4226_v7 = vpop.f32.mrf.mxu2 }
  0xc7   :  { %v4222_v5 = vpop.f32.mrf.mxu3  ;;  %v1114_v23 = vsel %vm1050_vm1, %v4226_v7, -inf }
  0xc8   :  { %1151 = vmax.xlane.f32.xlu2 %v1150_v2  ;;  %1172 = vmax.xlane.f32.xlu1 %v1171_v3  ;;  %v4238_v13 = vpop.f32.mrf.mxu1  ;;  %v1141_v31 = vsel %vm1050_vm1, %v4222_v5, -inf }
  0xc9   :  { %v1132_v18 = vsel %vm1050_vm1, %v4238_v13, -inf }
  0xca   :  { %1121 = vmax.xlane.f32.xlu0 %v1120_v4 }
  0xce   :  { %v4240_v14 = vpop.f32.mrf.mxu2 }
  0xcf   :  { %v4236_v12 = vpop.f32.mrf.mxu3  ;;  %v1135_v29 = vsel %vm1050_vm1, %v4240_v14, -inf }
  0xd0   :  { %1118 = vmax.xlane.f32.xlu2 %v1117_v9  ;;  %1112 = vmax.xlane.f32.xlu1 %v1111_v10  ;;  %v4258_v33 = vpop.f32.mrf.mxu1  ;;  %v1144_v36 = vsel %vm1050_vm1, %v4236_v12, -inf }
  0xd1   :  { %v1153_v48 = vsel %vm1050_vm1, %v4258_v33, -inf }
  0xd2   :  { %1175 = vmax.xlane.f32.xlu0 %v1174_v11 }
  0xd6   :  { %v4252_v27 = vpop.f32.mrf.mxu2 }
  0xd7   :  { %v4250_v25 = vpop.f32.mrf.mxu3  ;;  %v1138_v40 = vsel %vm1050_vm1, %v4252_v27, -inf }
  0xd8   :  { %1109 = vmax.xlane.f32.xlu2 %v1108_v15  ;;  %1130 = vmax.xlane.f32.xlu1 %v1129_v19  ;;  %v1165_v37 = vsel %vm1050_vm1, %v4250_v25, -inf  ;;  %v4270_v45 = vpop.f32.mrf.mxu1 }
  0xd9   :  { %v1156_v51 = vsel %vm1050_vm1, %v4270_v45, -inf }
  0xda   :  { %1133 = vmax.xlane.f32.xlu0 %v1132_v18 }
  0xde   :  { %v4268_v44 = vpop.f32.mrf.mxu2 }
  0xdf   :  { %v4266_v43 = vpop.f32.mrf.mxu3  ;;  %v1159_v59 = vsel %vm1050_vm1, %v4268_v44, -inf }
  0xe0   :  { %1115 = vmax.xlane.f32.xlu2 %v1114_v23  ;;  %1142 = vmax.xlane.f32.xlu1 %v1141_v31  ;;  %v1168_v52 = vsel %vm1050_vm1, %v4266_v43, -inf  ;;  %v4284_v60 = vpop.f32.mrf.mxu1 }
  0xe1   :  { %v1177_v2 = vsel %vm1050_vm1, %v4284_v60, -inf }
  0xe2   :  { %1136 = vmax.xlane.f32.xlu0 %v1135_v29 }
  0xe6   :  { %v4280_v55 = vpop.f32.mrf.mxu2 }
  0xe7   :  { %v4278_v53 = vpop.f32.mrf.mxu3  ;;  %v1162_v61 = vsel %vm1050_vm1, %v4280_v55, -inf }
  0xe8   :  { %1145 = vmax.xlane.f32.xlu2 %v1144_v36  ;;  %1166 = vmax.xlane.f32.xlu1 %v1165_v37  ;;  %v1189_v10 = vsel %vm1050_vm1, %v4278_v53, -inf  ;;  %v4302_v36 = vpop.f32.mrf.mxu1 }
  0xea   :  { %1139 = vmax.xlane.f32.xlu0 %v1138_v40 }
  0xee   :  { %v4292_v9 = vpop.f32.mrf.mxu2 }
  0xef   :  { %v4290_v3 = vpop.f32.mrf.mxu3  ;;  %v1183_v29 = vsel %vm1050_vm1, %v4292_v9, -inf }
  0xf0   :  { %1154 = vmax.xlane.f32.xlu2 %v1153_v48  ;;  %1157 = vmax.xlane.f32.xlu1 %v1156_v51  ;;  %v1192_v19 = vsel %vm1050_vm1, %v4290_v3, -inf }
  0xf2   :  { %1169 = vmax.xlane.f32.xlu0 %v1168_v52 }
  0xf8   :  { %1160 = vmax.xlane.f32.xlu2 %v1159_v59  ;;  %1163 = vmax.xlane.f32.xlu1 %v1162_v61 }
  0xfa   :  { %1178 = vmax.xlane.f32.xlu0 %v1177_v2  ;;  %v4315_v2 = vpop.f32.mrf.mxu2 }
  0xfb   :  { %v1053_v4 = vpop.xlane.xlu1 %1052 }
  0xfc   :  { %v1195_v15 = vsub.f32 %v4116_v16, %v1053_v4  ;;  %v1180_v16 = vsel %vm1050_vm1, %v4302_v36, -inf }
  0xfd   :  { %v1101_v11 = vpop.xlane.xlu0 %1100 }
  0xfe   :  { %v1211_v18 = vsub.f32 %v4118_v17, %v1101_v11  ;;  %v1243_v23 = vmul.f32 1.442695, %v1195_v15 }
 0x100   :  { %1190 = vmax.xlane.f32.xlu2 %v1189_v10  ;;  %v1275_v31 = vmul.f32 1.442695, %v1211_v18  ;;  %3479 = vpow2.f32 %v1243_v23  ;;  %1193 = vmax.xlane.f32.xlu1 %v1192_v19 }
 0x102   :  { %3481 = vpow2.f32 %v1275_v31  ;;  %1184 = vmax.xlane.f32.xlu0 %v1183_v29 }
 0x103   :  { %v1059_v37 = vpop.xlane.xlu1 %1058 }
 0x104   :  { %v1197_v29 = vsub.f32 %v4128_v22, %v1059_v37 }
 0x105   :  { %v1065_v17 = vpop.xlane.xlu0 %1064 }
 0x106   :  { %v1199_v40 = vsub.f32 %v4124_v20, %v1065_v17  ;;  %v4307_v48 = vpop.eup %3479  ;;  %v1186_v20 = vsel %vm1050_vm1, %v4315_v2, -inf }
 0x107   :  { %v1339_v59 = vsel %vm1050_vm1, %v4307_v48, 0.0 }
 0x108   :  { %1181 = vmax.xlane.f32.xlu2 %v1180_v16  ;;  %v4309_v51 = vpop.eup %3481  ;;  %v1251_v52 = vmul.f32 1.442695, %v1199_v40  ;;  %1340 = vadd.xlane.f32.xlu1 %v1339_v59  ;;  %v1247_v40 = vmul.f32 1.442695, %v1197_v29 }
 0x109   :  { %v1387_v61 = vsel %vm1050_vm1, %v4309_v51, 0.0 }
 0x10a   :  { %3483 = vpow2.f32 %v1251_v52  ;;  %1388 = vadd.xlane.f32.xlu0 %v1387_v61 }
 0x10b   :  { %v1068_v4 = vpop.xlane.xlu2 %1067  ;;  %v1104_v10 = vpop.xlane.xlu1 %1103 }
 0x10c   :  { %v1212_v15 = vsub.f32 %v4132_v24, %v1104_v10  ;;  %v1200_v22 = vsub.f32 %v4136_v26, %v1068_v4 }
 0x10d   :  { %v1056_v11 = vpop.xlane.xlu0 %1055 }
 0x10e   :  { %v1196_v18 = vsub.f32 %v4126_v21, %v1056_v11  ;;  %v1277_v19 = vmul.f32 1.442695, %v1212_v15  ;;  %v1253_v15 = vmul.f32 1.442695, %v1200_v22 }
 0x110   :  { %1187 = vmax.xlane.f32.xlu2 %v1186_v20  ;;  %v4321_v23 = vpop.eup %3483  ;;  %v1245_v31 = vmul.f32 1.442695, %v1196_v18  ;;  %3485 = vpow2.f32 %v1277_v19 }
 0x111   :  { %v1351_v16 = vsel %vm1050_vm1, %v4321_v23, 0.0 }
 0x112   :  { %3487 = vpow2.f32 %v1245_v31  ;;  %1352 = vadd.xlane.f32.xlu0 %v1351_v16 }
 0x113   :  { %v4326_v17 = vpop.xlane.xlu2 %1124  ;;  %v1062_v52 = vpop.xlane.xlu1 %1061  ;;  %3489 = vpow2.f32 %v1247_v40 }
 0x114   :  { %v1198_v16 = vsub.f32 %v4144_v30, %v1062_v52 }
 0x115   :  { %v1071_v24 = vpop.xlane.xlu0 %1070 }
 0x116   :  { %v1201_v21 = vsub.f32 %v4140_v28, %v1071_v24  ;;  %v4329_v59 = vpop.eup %3485 }
 0x117   :  { %6084 = vst [vmem:[#allocation6_spill] sm:$0xff] %v4329_v59  ;;  %v1390_v10 = vsel %vm1050_vm1, %v4329_v59, 0.0 }
 0x118   :  { %v4331_v61 = vpop.eup %3487  ;;  %v1255_v37 = vmul.f32 1.442695, %v1201_v21  ;;  %1391 = vadd.xlane.f32.xlu1 %v1390_v10 }
 0x119   :  { %v1342_v20 = vsel %vm1050_vm1, %v4331_v61, 0.0  ;;  %v4339_v31 = vpop.eup %3489 }
 0x11a   :  { %3491 = vpow2.f32 %v1255_v37  ;;  %1343 = vadd.xlane.f32.xlu0 %v1342_v20  ;;  %v1345_v24 = vsel %vm1050_vm1, %v4339_v31, 0.0 }
 0x11b   :  { %v1074_v11 = vpop.xlane.xlu2 %1073  ;;  %v1077_v18 = vpop.xlane.xlu1 %1076 }
 0x11c   :  { %v1202_v28 = vsub.f32 %v4154_v35, %v1074_v11 }
 0x11d   :  { %v1095_v29 = vpop.xlane.xlu0 %1094 }
 0x11e   :  { %v1257_v19 = vmul.f32 1.442695, %v1202_v28  ;;  %v1209_v26 = vsub.f32 %v4168_v42, %v1095_v29  ;;  %v1249_v42 = vmul.f32 1.442695, %v1198_v16 }
 0x120   :  { %3493 = vpow2.f32 %v1257_v19  ;;  %v4342_v4 = vpop.eup %3491  ;;  %v1271_v40 = vmul.f32 1.442695, %v1209_v26 }
 0x121   :  { %3495 = vpow2.f32 %v1253_v15  ;;  %v1357_v35 = vsel %vm1050_vm1, %v4342_v4, 0.0 }
 0x122   :  { %3497 = vpow2.f32 %v1271_v40  ;;  %1346 = vadd.xlane.f32.xlu0 %v1345_v24  ;;  %1358 = vadd.xlane.f32.xlu2 %v1357_v35 }
 0x123   :  { %v1083_v21 = vpop.xlane.xlu2 %1082  ;;  %v4350_v37 = vpop.xlane.xlu1 %1127 }
 0x124   :  { %v1205_v22 = vsub.f32 %v4160_v38, %v1083_v21  ;;  %v1203_v38 = vsub.f32 %v4152_v34, %v1077_v18 }
 0x125   :  { %v1086_v30 = vpop.xlane.xlu0 %1085 }
 0x126   :  { %v4352_v10 = vpop.eup %3493  ;;  %v1263_v20 = vmul.f32 1.442695, %v1205_v22  ;;  %v1206_v11 = vsub.f32 %v4176_v46, %v1086_v30  ;;  %v1259_v40 = vmul.f32 1.442695, %v1203_v38 }
 0x127   :  { %v4354_v52 = vpop.eup %3495  ;;  %v1360_v28 = vsel %vm1050_vm1, %v4352_v10, 0.0 }
 0x128   :  { %3499 = vpow2.f32 %v1263_v20  ;;  %1361 = vadd.xlane.f32.xlu1 %v1360_v28  ;;  %v4359_v15 = vpop.eup %3497  ;;  %v1265_v19 = vmul.f32 1.442695, %v1206_v11  ;;  %v1354_v26 = vsel %vm1050_vm1, %v4354_v52, 0.0 }
 0x129   :  { %3501 = vpow2.f32 %v1249_v42  ;;  %v1381_v29 = vsel %vm1050_vm1, %v4359_v15, 0.0 }
 0x12a   :  { %3503 = vpow2.f32 %v1265_v19  ;;  %1382 = vadd.xlane.f32.xlu0 %v1381_v29  ;;  %1355 = vadd.xlane.f32.xlu2 %v1354_v26 }
 0x12b   :  { %v1080_v46 = vpop.xlane.xlu2 %1079  ;;  %v1098_v24 = vpop.xlane.xlu1 %1097 }
 0x12c   :  { %v1204_v16 = vsub.f32 %v4166_v41, %v1080_v46  ;;  %v1210_v20 = vsub.f32 %v4184_v50, %v1098_v24 }
 0x12d   :  { %v4369_v22 = vpop.xlane.xlu0 %1148 }
 0x12e   :  { %v4367_v35 = vpop.eup %3499  ;;  %v1261_v21 = vmul.f32 1.442695, %v1204_v16  ;;  %v1273_v38 = vmul.f32 1.442695, %v1210_v20 }
 0x12f   :  { %v4371_v34 = vpop.eup %3501  ;;  %v1369_v18 = vsel %vm1050_vm1, %v4367_v35, 0.0 }
 0x130   :  { %3505 = vpow2.f32 %v1261_v21  ;;  %1370 = vadd.xlane.f32.xlu1 %v1369_v18  ;;  %v4375_v42 = vpop.eup %3503  ;;  %v1348_v30 = vsel %vm1050_vm1, %v4371_v34, 0.0 }
 0x131   :  { %3507 = vpow2.f32 %v1259_v40  ;;  %v1372_v41 = vsel %vm1050_vm1, %v4375_v42, 0.0 }
 0x132   :  { %1373 = vadd.xlane.f32.xlu0 %v1372_v41  ;;  %1349 = vadd.xlane.f32.xlu2 %v1348_v30 }
 0x133   :  { %v1089_v11 = vpop.xlane.xlu2 %1088  ;;  %v1107_v19 = vpop.xlane.xlu1 %1106 }
 0x134   :  { %v1207_v28 = vsub.f32 %v4182_v49, %v1089_v11  ;;  %v1213_v21 = vsub.f32 %v4192_v54, %v1107_v19 }
 0x135   :  { %v1092_v46 = vpop.xlane.xlu0 %1091 }
 0x136   :  { %v4383_v29 = vpop.eup %3505  ;;  %v1267_v26 = vmul.f32 1.442695, %v1207_v28  ;;  %v1208_v50 = vsub.f32 %v4198_v57, %v1092_v46  ;;  %v1279_v20 = vmul.f32 1.442695, %v1213_v21 }
 0x137   :  { %v4385_v16 = vpop.eup %3507  ;;  %v1366_v40 = vsel %vm1050_vm1, %v4383_v29, 0.0 }
 0x138   :  { %3509 = vpow2.f32 %v1267_v26  ;;  %1367 = vadd.xlane.f32.xlu1 %v1366_v40  ;;  %v1269_v24 = vmul.f32 1.442695, %v1208_v50  ;;  %v1363_v49 = vsel %vm1050_vm1, %v4385_v16, 0.0 }
 0x139   :  { %3511 = vpow2.f32 %v1273_v38 }
 0x13a   :  { %3513 = vpow2.f32 %v1269_v24  ;;  %1364 = vadd.xlane.f32.xlu2 %v1363_v49 }
 0x13b   :  { %v4393_v18 = vpop.xlane.xlu2 %1151  ;;  %v4395_v41 = vpop.xlane.xlu1 %1172  ;;  %3515 = vpow2.f32 %v1279_v20 }
 0x13d   :  { %v1122_v30 = vpop.xlane.xlu0 %1121 }
 0x13e   :  { %v4397_v57 = vpop.eup %3509  ;;  %v1218_v28 = vsub.f32 %v4212_v0, %v1122_v30 }
 0x13f   :  { %v4399_v11 = vpop.eup %3511  ;;  %v1375_v54 = vsel %vm1050_vm1, %v4397_v57, 0.0 }
 0x140   :  { %1376 = vadd.xlane.f32.xlu1 %v1375_v54  ;;  %v4404_v38 = vpop.eup %3513  ;;  %v1289_v19 = vmul.f32 1.442695, %v1218_v28  ;;  %v1384_v46 = vsel %vm1050_vm1, %v4399_v11, 0.0 }
 0x141   :  { %v1378_v26 = vsel %vm1050_vm1, %v4404_v38, 0.0  ;;  %v4413_v49 = vpop.eup %3515 }
 0x142   :  { %3517 = vpow2.f32 %v1289_v19  ;;  %1379 = vadd.xlane.f32.xlu0 %v1378_v26  ;;  %1385 = vadd.xlane.f32.xlu2 %v1384_v46  ;;  %6085 = vst [vmem:[#allocation7_spill] sm:$0xff] %v4413_v49  ;;  %v1393_v28 = vsel %vm1050_vm1, %v4413_v49, 0.0 }
 0x143   :  { %v1119_v50 = vpop.xlane.xlu2 %1118  ;;  %v1113_v40 = vpop.xlane.xlu1 %1112 }
 0x144   :  { %v1217_v0 = vsub.f32 %v4196_v56, %v1119_v50  ;;  %v1215_v46 = vsub.f32 %v4210_v63, %v1113_v40 }
 0x145   :  { %v4411_v21 = vpop.xlane.xlu0 %1175 }
 0x146   :  { %v1287_v24 = vmul.f32 1.442695, %v1217_v0 }
 0x148   :  { %3519 = vpow2.f32 %v1287_v24  ;;  %v4415_v20 = vpop.eup %3517 }
 0x149   :  { %6086 = vst [vmem:[#allocation8_spill] sm:$0xff] %v4415_v20  ;;  %v1408_v30 = vsel %vm1050_vm1, %v4415_v20, 0.0 }
 0x14a   :  { %1409 = vadd.xlane.f32.xlu0 %v1408_v30  ;;  %1394 = vadd.xlane.f32.xlu2 %v1393_v28  ;;  %v1283_v30 = vmul.f32 1.442695, %v1215_v46 }
 0x14b   :  { %v1110_v54 = vpop.xlane.xlu2 %1109  ;;  %v1131_v19 = vpop.xlane.xlu1 %1130 }
 0x14c   :  { %v1214_v56 = vsub.f32 %v4208_v62, %v1110_v54  ;;  %v1221_v0 = vsub.f32 %v4224_v6, %v1131_v19  ;;  %v1219_v54 = vsub.f32 %v4148_v32, %v4326_v17  ;;  %v1220_v32 = vsub.f32 %v4162_v39, %v4350_v37 }
 0x14d   :  { %v1134_v24 = vpop.xlane.xlu0 %1133 }
 0x14e   :  { %v4422_v26 = vpop.eup %3519  ;;  %v1281_v50 = vmul.f32 1.442695, %v1214_v56  ;;  %v1295_v59 = vmul.f32 1.442695, %v1221_v0  ;;  %v1222_v0 = vsub.f32 %v4238_v13, %v1134_v24 }
 0x14f   :  { %v1405_v20 = vsel %vm1050_vm1, %v4422_v26, 0.0 }
 0x150   :  { %3521 = vpow2.f32 %v1281_v50  ;;  %1406 = vadd.xlane.f32.xlu1 %v1405_v20 }
 0x151   :  { %3523 = vpow2.f32 %v1295_v59 }
 0x152   :  { %3525 = vpow2.f32 %v1283_v30 }
 0x153   :  { %v1116_v28 = vpop.xlane.xlu2 %1115  ;;  %v1143_v49 = vpop.xlane.xlu1 %1142 }
 0x154   :  { %v1216_v62 = vsub.f32 %v4226_v7, %v1116_v28  ;;  %v1225_v40 = vsub.f32 %v4222_v5, %v1143_v49  ;;  %v1291_v7 = vmul.f32 1.442695, %v1219_v54  ;;  %v1293_v49 = vmul.f32 1.442695, %v1220_v32 }
 0x155   :  { %v1137_v56 = vpop.xlane.xlu0 %1136 }
 0x156   :  { %v4431_v63 = vpop.eup %3521  ;;  %v1285_v6 = vmul.f32 1.442695, %v1216_v62  ;;  %v1223_v19 = vsub.f32 %v4240_v14, %v1137_v56  ;;  %v1303_v50 = vmul.f32 1.442695, %v1225_v40  ;;  %v1297_v40 = vmul.f32 1.442695, %v1222_v0 }
 0x157   :  { %v1396_v20 = vsel %vm1050_vm1, %v4431_v63, 0.0  ;;  %v4437_v59 = vpop.eup %3523 }
 0x158   :  { %3527 = vpow2.f32 %v1285_v6  ;;  %1397 = vadd.xlane.f32.xlu2 %v1396_v20  ;;  %v1299_v17 = vmul.f32 1.442695, %v1223_v19  ;;  %v1417_v46 = vsel %vm1050_vm1, %v4437_v59, 0.0  ;;  %v4443_v14 = vpop.eup %3525 }
 0x159   :  { %1418 = vadd.xlane.f32.xlu0 %v1417_v46  ;;  %v1399_v54 = vsel %vm1050_vm1, %v4443_v14, 0.0 }
 0x15a   :  { %3529 = vpow2.f32 %v1299_v17 }
 0x15b   :  { %v1146_v5 = vpop.xlane.xlu2 %1145  ;;  %3531 = vpow2.f32 %v1291_v7  ;;  %v1167_v30 = vpop.xlane.xlu1 %1166 }
 0x15c   :  { %3533 = vpow2.f32 %v1303_v50  ;;  %v1226_v39 = vsub.f32 %v4236_v12, %v1146_v5  ;;  %v1233_v13 = vsub.f32 %v4250_v25, %v1167_v30 }
 0x15d   :  { %v1140_v37 = vpop.xlane.xlu0 %1139  ;;  %3535 = vpow2.f32 %v1293_v49 }
 0x15e   :  { %v4446_v28 = vpop.eup %3527  ;;  %v1305_v24 = vmul.f32 1.442695, %v1226_v39  ;;  %3537 = vpow2.f32 %v1297_v40  ;;  %v1319_v7 = vmul.f32 1.442695, %v1233_v13  ;;  %v1224_v32 = vsub.f32 %v4252_v27, %v1140_v37 }
 0x15f   :  { %v1402_v62 = vsel %vm1050_vm1, %v4446_v28, 0.0 }
 0x160   :  { %1403 = vadd.xlane.f32.xlu1 %v1402_v62  ;;  %1400 = vadd.xlane.f32.xlu2 %v1399_v54  ;;  %v4453_v6 = vpop.eup %3529  ;;  %3539 = vpow2.f32 %v1305_v24  ;;  %v1301_v0 = vmul.f32 1.442695, %v1224_v32  ;;  %v1227_v62 = vsub.f32 %v4178_v47, %v4369_v22  ;;  %v3268_v47 = vld [vmem:[%s6060_s0 + $0x308] sm:$0xff]  ;;  %v3267_v32 = vld [vmem:[%s6060_s0 + $0x300] sm:$0xff] }
 0x161   :  { %v1423_v56 = vsel %vm1050_vm1, %v4453_v6, 0.0  ;;  %v4458_v12 = vpop.eup %3531  ;;  %3541 = vpow2.f32 %v1319_v7  ;;  %2223 = vmatpush.msra.mxu0 %v3268_v47 }
 0x162   :  { %1424 = vadd.xlane.f32.xlu0 %v1423_v56  ;;  %v4460_v20 = vpop.eup %3533  ;;  %v1411_v49 = vsel %vm1050_vm1, %v4458_v12, 0.0  ;;  %3543 = vpow2.f32 %v1301_v0 }
 0x163   :  { %v1155_v19 = vpop.xlane.xlu2 %1154  ;;  %v1158_v17 = vpop.xlane.xlu1 %1157  ;;  %v1429_v5 = vsel %vm1050_vm1, %v4460_v20, 0.0  ;;  %2224 = vmatpush.msra.mxu0 %v3267_v32 }
 0x164   :  { %v1229_v46 = vsub.f32 %v4258_v33, %v1155_v19  ;;  %v4464_v25 = vpop.eup %3535 }
 0x165   :  { %v1170_v50 = vpop.xlane.xlu0 %1169  ;;  %v1414_v27 = vsel %vm1050_vm1, %v4464_v25, 0.0  ;;  %v4472_v39 = vpop.eup %3537 }
 0x166   :  { %v1311_v30 = vmul.f32 1.442695, %v1229_v46  ;;  %v4474_v37 = vpop.eup %3539  ;;  %v1420_v19 = vsel %vm1050_vm1, %v4472_v39, 0.0 }
 0x167   :  { %v4482_v56 = vpop.eup %3541  ;;  %v1432_v7 = vsel %vm1050_vm1, %v4474_v37, 0.0 }
 0x168   :  { %1430 = vadd.xlane.f32.xlu1 %v1429_v5  ;;  %1412 = vadd.xlane.f32.xlu2 %v1411_v49  ;;  %3545 = vpow2.f32 %v1311_v30  ;;  %6087 = vst [vmem:[#allocation9_spill] sm:$0xff] %v4482_v56  ;;  %v1453_v5 = vsel %vm1050_vm1, %v4482_v56, 0.0  ;;  %v4497_v49 = vpop.eup %3543 }
 0x169   :  { %6088 = vst [vmem:[#allocation10_spill] sm:$0xff] %v4497_v49 }
 0x16a   :  { %1415 = vadd.xlane.f32.xlu0 %v1414_v27 }
 0x16b   :  { %v1161_v33 = vpop.xlane.xlu2 %1160  ;;  %v1164_v54 = vpop.xlane.xlu1 %1163 }
 0x16c   :  { %v1231_v40 = vsub.f32 %v4268_v44, %v1161_v33  ;;  %v1232_v13 = vsub.f32 %v4280_v55, %v1164_v54  ;;  %v1307_v44 = vmul.f32 1.442695, %v1227_v62  ;;  %v1230_v55 = vsub.f32 %v4270_v45, %v1158_v17 }
 0x16d   :  { %v4480_v24 = vpop.xlane.xlu0 %1178  ;;  %v1228_v45 = vsub.f32 %v4200_v58, %v4393_v18  ;;  %v1234_v17 = vsub.f32 %v4266_v43, %v1170_v50  ;;  %v1426_v54 = vsel %vm1050_vm1, %v4497_v49, 0.0  ;;  %v3272_v58 = vld [vmem:[%s6060_s0 + $0x328] sm:$0xff]  ;;  %v1235_v43 = vsub.f32 %v4214_v1, %v4395_v41 }
 0x16e   :  { %v1317_v22 = vmul.f32 1.442695, %v1232_v13  ;;  %v1315_v46 = vmul.f32 1.442695, %v1231_v40  ;;  %v4499_v30 = vpop.eup %3545  ;;  %v1313_v27 = vmul.f32 1.442695, %v1230_v55  ;;  %2281 = vmatpush.msrb.mxu2 %v3272_v58 }
 0x16f   :  { %6089 = vst [vmem:[#allocation11_spill] sm:$0xff] %v4499_v30  ;;  %v1441_v40 = vsel %vm1050_vm1, %v4499_v30, 0.0  ;;  %v1321_v18 = vmul.f32 1.442695, %v1234_v17  ;;  %v1323_v41 = vmul.f32 1.442695, %v1235_v43  ;;  %v1237_v43 = vsub.f32 %v4284_v60, %v4480_v24 }
 0x170   :  { %1421 = vadd.xlane.f32.xlu1 %v1420_v19  ;;  %1433 = vadd.xlane.f32.xlu2 %v1432_v7  ;;  %3547 = vpow2.f32 %v1317_v22  ;;  %v1309_v19 = vmul.f32 1.442695, %v1228_v45  ;;  %v3271_v7 = vld [vmem:[%s6060_s0 + $0x320] sm:$0xff] }
 0x171   :  { %3549 = vpow2.f32 %v1307_v44  ;;  %2282 = vmatpush.msrb.mxu2 %v3271_v7  ;;  %v1327_v24 = vmul.f32 1.442695, %v1237_v43 }
 0x172   :  { %1454 = vadd.xlane.f32.xlu0 %v1453_v5  ;;  %3551 = vpow2.f32 %v1315_v46 }
 0x173   :  { %v1191_v0 = vpop.xlane.xlu2 %1190  ;;  %v1194_v33 = vpop.xlane.xlu1 %1193  ;;  %3553 = vpow2.f32 %v1313_v27 }
 0x174   :  { %3555 = vpow2.f32 %v1309_v19  ;;  %v1241_v1 = vsub.f32 %v4278_v53, %v1191_v0 }
 0x175   :  { %v1185_v62 = vpop.xlane.xlu0 %1184  ;;  %3557 = vpow2.f32 %v1321_v18 }
 0x176   :  { %v4508_v13 = vpop.eup %3547  ;;  %v1239_v32 = vsub.f32 %v4292_v9, %v1185_v62  ;;  %v1335_v27 = vmul.f32 1.442695, %v1241_v1 }
 0x177   :  { %6090 = vst [vmem:[#allocation12_spill] sm:$0xff] %v4508_v13  ;;  %v1450_v50 = vsel %vm1050_vm1, %v4508_v13, 0.0  ;;  %v4520_v47 = vpop.eup %3549 }
 0x178   :  { %1427 = vadd.xlane.f32.xlu1 %v1426_v54  ;;  %1442 = vadd.xlane.f32.xlu2 %v1441_v40  ;;  %6091 = vst [vmem:[#allocation13_spill] sm:$0xff] %v4520_v47  ;;  %v4524_v44 = vpop.eup %3551  ;;  %v1435_v45 = vsel %vm1050_vm1, %v4520_v47, 0.0  ;;  %v1242_v54 = vsub.f32 %v4290_v3, %v1194_v33  ;;  %v1331_v9 = vmul.f32 1.442695, %v1239_v32 }
 0x179   :  { %6092 = vst [vmem:[#allocation14_spill] sm:$0xff] %v4524_v44  ;;  %v4530_v5 = vpop.eup %3553  ;;  %v1447_v17 = vsel %vm1050_vm1, %v4524_v44, 0.0 }
 0x17a   :  { %1451 = vadd.xlane.f32.xlu0 %v1450_v50  ;;  %6093 = vst [vmem:[#allocation15_spill] sm:$0xff] %v4530_v5  ;;  %v4537_v53 = vpop.eup %3555  ;;  %v1444_v0 = vsel %vm1050_vm1, %v4530_v5, 0.0  ;;  %v1337_v58 = vmul.f32 1.442695, %v1242_v54 }
 0x17b   :  { %v4522_v22 = vpop.xlane.xlu2 %1181  ;;  %v1341_v55 = vpop.xlane.xlu1 %1340  ;;  %6094 = vst [vmem:[#allocation16_spill] sm:$0xff] %v4537_v53 }
 0x17c   :  { %3559 = vrcp.f32 %v1341_v55  ;;  %v4541_v62 = vpop.eup %3557  ;;  %v1494_v60 = vand.u32 2147483648, %v1341_v55  ;;  %vm1488_vm3 = vweird.f32 %v1341_v55 }
 0x17d   :  { %v4528_v46 = vpop.xlane.xlu0 %1388  ;;  %3561 = vpow2.f32 %v1323_v41  ;;  %6095 = vst [vmem:[#allocation17_spill] sm:$0xff] %v4541_v62  ;;  %v1456_v1 = vsel %vm1050_vm1, %v4541_v62, 0.0  ;;  %v1438_v41 = vsel %vm1050_vm1, %v4537_v53, 0.0  ;;  %v3275_v53 = vld [vmem:[%s6060_s0 + $0x340] sm:$0xff] }
 0x17e   :  { %3563 = vpow2.f32 %v1335_v27  ;;  %vm1712_vm11 = vweird.f32 %v4528_v46 }
 0x17f   :  { %3565 = vrcp.f32 %v4528_v46 }
 0x180   :  { %1436 = vadd.xlane.f32.xlu1 %v1435_v45  ;;  %1448 = vadd.xlane.f32.xlu2 %v1447_v17  ;;  %3567 = vpow2.f32 %v1331_v9  ;;  %v1236_v9 = vsub.f32 %v4228_v8, %v4411_v21  ;;  %v1238_v8 = vsub.f32 %v4302_v36, %v4522_v22 }
 0x182   :  { %1445 = vadd.xlane.f32.xlu0 %v1444_v0  ;;  %v3560_v19 = vpop.eup %3559  ;;  %v1325_v22 = vmul.f32 1.442695, %v1236_v9 }
 0x183   :  { %v1188_v40 = vpop.xlane.xlu2 %1187  ;;  %v1484_v3 = vmul.f32 %v3560_v19, %v1341_v55  ;;  %v4549_v50 = vpop.eup %3561  ;;  %vm1489_vm2 = vweird.f32 %v3560_v19 }
 0x184   :  { %v1240_v33 = vsub.f32 %v4315_v2, %v1188_v40  ;;  %6096 = vst [vmem:[#allocation18_spill] sm:$0xff] %v4549_v50  ;;  %v1492_v2 = vand.u32 2147483647, %v1341_v55  ;;  %v4556_v45 = vpop.eup %3563  ;;  %v1459_v27 = vsel %vm1050_vm1, %v4549_v50, 0.0  ;;  %v3270_v40 = vld [vmem:[%s6060_s0 + $0x318] sm:$0xff]  ;;  %vm1490_vm4 = vmor %vm1488_vm3, %vm1489_vm2  ;;  %v3269_v55 = vld [vmem:[%s6060_s0 + $0x310] sm:$0xff] }
 0x185   :  { %v4547_v18 = vpop.xlane.xlu0 %1352  ;;  %v1485_v7 = vsub.f32 1.0, %v1484_v3  ;;  %6097 = vst [vmem:[#allocation19_spill] sm:$0xff] %v4556_v45  ;;  %v4560_v54 = vpop.eup %3565  ;;  %v1495_v3 = vor.u32 1.1754944e-38, %v1494_v60  ;;  %2252 = vmatpush.msrb.mxu1 %v3270_v40 }
 0x186   :  { %3569 = vrcp.f32 %v4547_v18  ;;  %v1333_v17 = vmul.f32 1.442695, %v1240_v33  ;;  %v4570_v43 = vpop.eup %3567  ;;  %vm1493_vm5 = vcmp.eq.f32.partialorder %v1492_v2, 8.507059e+37  ;;  %v1708_v60 = vmul.f32 %v4560_v54, %v4528_v46 }
 0x187   :  { %3571 = vpow2.f32 %v1337_v58  ;;  %v1486_v32 = vmul.f32 %v3560_v19, %v1485_v7  ;;  %v3274_v58 = vld [vmem:[%s6060_s0 + $0x338] sm:$0xff]  ;;  %6098 = vst [vmem:[#allocation20_spill] sm:$0xff] %v4570_v43  ;;  %v3273_v7 = vld [vmem:[%s6060_s0 + $0x330] sm:$0xff]  ;;  %2253 = vmatpush.msrb.mxu1 %v3269_v55  ;;  %vm1544_vm7 = vweird.f32 %v4547_v18  ;;  %vm1713_vm10 = vweird.f32 %v4560_v54 }
 0x188   :  { %1457 = vadd.xlane.f32.xlu1 %v1456_v1  ;;  %1439 = vadd.xlane.f32.xlu2 %v1438_v41  ;;  %3573 = vpow2.f32 %v1327_v24  ;;  %vm4645_vm12 = vmor %vm1712_vm11, %vm1713_vm10 }
 0x189   :  { %v1487_v0 = vadd.f32 %v3560_v19, %v1486_v32  ;;  %2310 = vmatpush.msrb.mxu3 %v3274_v58  ;;  %3575 = vpow2.f32 %v1333_v17  ;;  %v1477_v32 = vsel %vm1050_vm1, %v4556_v45, 0.0  ;;  %v1550_v17 = vand.u32 2147483648, %v4547_v18 }
 0x18a   :  { %1460 = vadd.xlane.f32.xlu0 %v1459_v27  ;;  %v1329_v27 = vmul.f32 1.442695, %v1238_v8  ;;  %v1709_v58 = vsub.f32 1.0, %v1708_v60 }
 0x18b   :  { %v1491_v21 = vsel %vm1490_vm4, %v3560_v19, %v1487_v0  ;;  %2311 = vmatpush.msrb.mxu3 %v3273_v7  ;;  %v1471_v19 = vsel %vm1050_vm1, %v4570_v43, 0.0  ;;  %v4593_v0 = vpop.xlane.xlu1 %1391 }
 0x18c   :  { %v3570_v33 = vpop.eup %3569  ;;  %v1496_v41 = vsel %vm1493_vm5, %v1495_v3, %v1491_v21  ;;  %v1548_v21 = vand.u32 2147483647, %v4547_v18  ;;  %v1710_v60 = vmul.f32 %v4560_v54, %v1709_v58  ;;  %v1718_v58 = vand.u32 2147483648, %v4528_v46 }
 0x18d   :  { %v4580_v1 = vpop.eup %3571  ;;  %v1540_v24 = vmul.f32 %v3570_v33, %v4547_v18  ;;  %v4585_v36 = vpop.xlane.xlu0 %1343  ;;  %v2155_v40 = vmul.f32 %v4307_v48, %v1496_v41  ;;  %vm1545_vm6 = vweird.f32 %v3570_v33  ;;  %v1551_v48 = vor.u32 1.1754944e-38, %v1550_v17 }
 0x18e   :  { %6099 = vst [vmem:[#allocation21_spill] sm:$0xff] %v4580_v1  ;;  %3577 = vrcp.f32 %v4585_v36  ;;  %v1480_v9 = vsel %vm1050_vm1, %v4580_v1, 0.0  ;;  %v4599_v55 = vpop.eup %3573  ;;  %vm1546_vm8 = vmor %vm1544_vm7, %vm1545_vm6  ;;  %vm1549_vm9 = vcmp.eq.f32.partialorder %v1548_v21, 8.507059e+37  ;;  %vm1502_vm14 = vweird.f32 %v4585_v36 }
 0x18f   :  { %v1541_v2 = vsub.f32 1.0, %v1540_v24  ;;  %6100 = vst [vmem:[#allocation22_spill] sm:$0xff] %v4599_v55  ;;  %3579 = vpow2.f32 %v1325_v22  ;;  %3411 = vmatmul.msk.f32.vlgmr.msra.gmra.mxu0 %vm1050_vm1, %v2155_v40  ;;  %v4602_v8 = vpop.eup %3575 }
 0x190   :  { %1472 = vadd.xlane.f32.xlu1 %v1471_v19  ;;  %1478 = vadd.xlane.f32.xlu2 %v1477_v32  ;;  %6101 = vst [vmem:[#allocation23_spill] sm:$0xff] %v4602_v8  ;;  %3581 = vrcp.f32 %v4593_v0  ;;  %v1465_v32 = vsel %vm1050_vm1, %v4599_v55, 0.0 }
 0x191   :  { %v1542_v3 = vmul.f32 %v3570_v33, %v1541_v2  ;;  %3583 = vpow2.f32 %v1329_v27  ;;  %v1474_v27 = vsel %vm1050_vm1, %v4602_v8, 0.0 }
 0x192   :  { %1481 = vadd.xlane.f32.xlu0 %v1480_v9  ;;  %v4626_v9 = vadd.f32 %v4560_v54, %v1710_v60 }
 0x193   :  { %v1543_v7 = vadd.f32 %v3570_v33, %v1542_v3 }
 0x194   :  { %v4606_v41 = vpop.eup %3577  ;;  %v1715_v1 = vsel %vm4645_vm12, %v4560_v54, %v4626_v9 }
 0x195   :  { %v1547_v24 = vsel %vm1546_vm8, %v3570_v33, %v1543_v7  ;;  %v4609_v22 = vpop.xlane.xlu0 %1346  ;;  %v4611_v19 = vpop.xlane.xlu2 %1358  ;;  %v1498_v18 = vmul.f32 %v4606_v41, %v4585_v36  ;;  %vm1503_vm13 = vweird.f32 %v4606_v41 }
 0x196   :  { %v1552_v2 = vsel %vm1549_vm9, %v1551_v48, %v1547_v24  ;;  %3585 = vrcp.f32 %v4609_v22  ;;  %v4621_v33 = vpop.eup %3579  ;;  %v1508_v48 = vand.u32 2147483648, %v4585_v36  ;;  %vm1516_vm15 = vweird.f32 %v4609_v22  ;;  %vm1504_vm2 = vmor %vm1502_vm14, %vm1503_vm13 }
 0x197   :  { %3587 = vrcp.f32 %v4611_v19  ;;  %6102 = vst [vmem:[#allocation24_spill] sm:$0xff] %v4621_v33  ;;  %v1499_v17 = vsub.f32 1.0, %v1498_v18  ;;  %v4623_v40 = vpop.eup %3581  ;;  %v2159_v3 = vmul.f32 %v4321_v23, %v1552_v2  ;;  %v1462_v60 = vsel %vm1050_vm1, %v4621_v33, 0.0 }
 0x198   :  { %1466 = vadd.xlane.f32.xlu1 %v1465_v32  ;;  %1475 = vadd.xlane.f32.xlu2 %v1474_v27  ;;  %v4631_v21 = vpop.eup %3583  ;;  %v1506_v32 = vand.u32 2147483647, %v4585_v36  ;;  %v1716_v18 = vand.u32 2147483647, %v4528_v46  ;;  %v4652_v27 = vmul.f32 %v4623_v40, %v4593_v0  ;;  %v1719_v33 = vor.u32 1.1754944e-38, %v1718_v58 }
 0x199   :  { %6103 = vst [vmem:[#allocation25_spill] sm:$0xff] %v4631_v21  ;;  %v1500_v7 = vmul.f32 %v4606_v41, %v1499_v17  ;;  %3415 = vmatmul.msk.f32.vlgmr.msrb.gmra.mxu2 %vm1050_vm1, %v2159_v3  ;;  %v1509_v50 = vor.u32 1.1754944e-38, %v1508_v48  ;;  %v1522_v36 = vand.u32 2147483648, %v4609_v22  ;;  %vm1572_vm8 = vweird.f32 %v4611_v19 }
 0x19a   :  { %vm1507_vm3 = vcmp.eq.f32.partialorder %v1506_v32, 8.507059e+37  ;;  %v1723_v9 = vsub.f32 1.0, %v4652_v27  ;;  %v1578_v32 = vand.u32 2147483648, %v4611_v19  ;;  %vm1717_vm6 = vcmp.eq.f32.partialorder %v1716_v18, 8.507059e+37  ;;  %v3276_v18 = vld [vmem:[%s6060_s0 + $0x348] sm:$0xff] }
 0x19b   :  { %v4635_v24 = vpop.xlane.xlu1 %1361  ;;  %v1501_v17 = vadd.f32 %v4606_v41, %v1500_v7  ;;  %v1468_v7 = vsel %vm1050_vm1, %v4631_v21, 0.0  ;;  %v4721_v55 = vsel %vm1717_vm6, %v1719_v33, %v1715_v1  ;;  %2339 = vmatpush.msrb.mxu0 %v3276_v18 }
 0x19c   :  { %3589 = vrcp.f32 %v4635_v24  ;;  %v4643_v23 = vpop.eup %3585  ;;  %v1579_v62 = vor.u32 1.1754944e-38, %v1578_v32  ;;  %v4736_v33 = vmul.f32 %v4623_v40, %v1723_v9  ;;  %vm1586_vm12 = vweird.f32 %v4635_v24 }
 0x19d   :  { %v4656_v3 = vpop.eup %3587  ;;  %v1512_v8 = vmul.f32 %v4643_v23, %v4609_v22  ;;  %v4664_v46 = vpop.xlane.xlu0 %1382  ;;  %v1505_v48 = vsel %vm1504_vm2, %v4606_v41, %v1501_v17  ;;  %vm1517_vm4 = vweird.f32 %v4643_v23  ;;  %v1576_v17 = vand.u32 2147483647, %v4611_v19  ;;  %2340 = vmatpush.msrb.mxu0 %v3275_v53 }
 0x19e   :  { %v4666_v45 = vpop.xlane.xlu2 %1355  ;;  %v1568_v43 = vmul.f32 %v4656_v3, %v4611_v19  ;;  %3591 = vrcp.f32 %v4664_v46  ;;  %vm1573_vm5 = vweird.f32 %v4656_v3  ;;  %vm4706_vm7 = vmor %vm1516_vm15, %vm1517_vm4  ;;  %v1690_v9 = vand.u32 2147483648, %v4664_v46 }
 0x19f   :  { %v1513_v54 = vsub.f32 1.0, %v1512_v8  ;;  %3593 = vrcp.f32 %v4666_v45  ;;  %vm1574_vm10 = vmor %vm1572_vm8, %vm1573_vm5  ;;  %vm1577_vm11 = vcmp.eq.f32.partialorder %v1576_v17, 8.507059e+37  ;;  %vm1684_vm14 = vweird.f32 %v4664_v46 }
 0x1a0   :  { %1463 = vadd.xlane.f32.xlu1 %v1462_v60  ;;  %1469 = vadd.xlane.f32.xlu2 %v1468_v7  ;;  %v1569_v58 = vsub.f32 1.0, %v1568_v43  ;;  %v1520_v60 = vand.u32 2147483647, %v4609_v22  ;;  %v1510_v7 = vsel %vm1507_vm3, %v1509_v50, %v1505_v48  ;;  %v3282_v50 = vld [vmem:[%s6060_s0 + $0x378] sm:$0xff]  ;;  %v1523_v48 = vor.u32 1.1754944e-38, %v1522_v36  ;;  %v3281_v22 = vld [vmem:[%s6060_s0 + $0x370] sm:$0xff] }
 0x1a1   :  { %v1514_v8 = vmul.f32 %v4643_v23, %v1513_v54  ;;  %v2156_v27 = vmul.f32 %v4331_v61, %v1510_v7  ;;  %2426 = vmatpush.msra.mxu3 %v3282_v50  ;;  %vm1558_vm15 = vweird.f32 %v4666_v45 }
 0x1a2   :  { %v4681_v2 = vpop.eup %3589  ;;  %v1570_v21 = vmul.f32 %v4656_v3, %v1569_v58  ;;  %vm1521_vm9 = vcmp.eq.f32.partialorder %v1520_v60, 8.507059e+37  ;;  %v1592_v60 = vand.u32 2147483648, %v4635_v24 }
 0x1a3   :  { %v4690_v43 = vpop.xlane.xlu1 %1370  ;;  %v1515_v41 = vadd.f32 %v4643_v23, %v1514_v8  ;;  %v1582_v54 = vmul.f32 %v4681_v2, %v4635_v24  ;;  %3412 = vmatmul.msk.f32.gmra.mxu0 %vm1050_vm1, %v2156_v27  ;;  %2427 = vmatpush.msra.mxu3 %v3281_v22  ;;  %vm1587_vm8 = vweird.f32 %v4681_v2 }
 0x1a4   :  { %3595 = vrcp.f32 %v4690_v43  ;;  %v4700_v58 = vpop.eup %3591  ;;  %v1571_v8 = vadd.f32 %v4656_v3, %v1570_v21  ;;  %vm1628_vm6 = vweird.f32 %v4690_v43 }
 0x1a5   :  { %v4719_v7 = vpop.eup %3593  ;;  %v1519_v21 = vsel %vm4706_vm7, %v4643_v23, %v1515_v41  ;;  %v1680_v19 = vmul.f32 %v4700_v58, %v4664_v46  ;;  %v1583_v23 = vsub.f32 1.0, %v1582_v54  ;;  %v4739_v41 = vpop.xlane.xlu0 %1373  ;;  %vm1685_vm5 = vweird.f32 %v4700_v58 }
 0x1a6   :  { %v4730_v36 = vpop.xlane.xlu2 %1349  ;;  %v1524_v27 = vsel %vm1521_vm9, %v1523_v48, %v1519_v21  ;;  %v1575_v50 = vsel %vm1574_vm10, %v4656_v3, %v1571_v8  ;;  %v1554_v1 = vmul.f32 %v4719_v7, %v4666_v45  ;;  %v1590_v3 = vand.u32 2147483647, %v4635_v24  ;;  %vm1588_vm9 = vmor %vm1586_vm12, %vm1587_vm8  ;;  %v3279_v24 = vld [vmem:[%s6060_s0 + $0x360] sm:$0xff] }
 0x1a7   :  { %v1580_v61 = vsel %vm1577_vm11, %v1579_v62, %v1575_v50  ;;  %3597 = vrcp.f32 %v4730_v36  ;;  %v1681_v48 = vsub.f32 1.0, %v1680_v19  ;;  %v2157_v17 = vmul.f32 %v4339_v31, %v1524_v27  ;;  %vm4831_vm10 = vmor %vm1684_vm14, %vm1685_vm5 }
 0x1a8   :  { %v1555_v13 = vsub.f32 1.0, %v1554_v1  ;;  %v1564_v8 = vand.u32 2147483648, %v4666_v45  ;;  %3599 = vrcp.f32 %v4739_v41  ;;  %v1584_v22 = vmul.f32 %v4681_v2, %v1583_v23 }
 0x1a9   :  { %v1688_v21 = vand.u32 2147483647, %v4664_v46  ;;  %3413 = vmatmul.msk.f32.vlgmr.msrb.gmra.mxu1 %vm1050_vm1, %v2157_v17  ;;  %v2161_v19 = vmul.f32 %v4342_v4, %v1580_v61  ;;  %v1593_v31 = vor.u32 1.1754944e-38, %v1592_v60  ;;  %v1562_v27 = vand.u32 2147483647, %v4666_v45 }
 0x1aa   :  { %v4743_v32 = vpop.eup %3595  ;;  %v1556_v54 = vmul.f32 %v4719_v7, %v1555_v13  ;;  %vm4762_vm13 = vcmp.eq.f32.partialorder %v1590_v3, 8.507059e+37  ;;  %v1682_v1 = vmul.f32 %v4700_v58, %v1681_v48  ;;  %vm1559_vm2 = vweird.f32 %v4719_v7 }
 0x1ab   :  { %v1624_v62 = vmul.f32 %v4743_v32, %v4690_v43  ;;  %v4753_v18 = vpop.xlane.xlu1 %1367  ;;  %3417 = vmatmul.msk.f32.vlgmr.msrb.gmra.mxu3 %vm1050_vm1, %v2161_v19  ;;  %v4775_v60 = vor.u32 1.1754944e-38, %v1690_v9  ;;  %v1565_v61 = vor.u32 1.1754944e-38, %v1564_v8  ;;  %v1634_v17 = vand.u32 2147483648, %v4690_v43  ;;  %vm1560_vm4 = vmor %vm1558_vm15, %vm1559_vm2 }
 0x1ac   :  { %3601 = vrcp.f32 %v4753_v18  ;;  %v1557_v13 = vadd.f32 %v4719_v7, %v1556_v54  ;;  %vm4778_vm3 = vcmp.eq.f32.partialorder %v1688_v21, 8.507059e+37  ;;  %v1632_v45 = vand.u32 2147483647, %v4690_v43  ;;  %v3278_v21 = vld [vmem:[%s6060_s0 + $0x358] sm:$0xff] }
 0x1ad   :  { %v4773_v23 = vpop.eup %3597  ;;  %v1625_v3 = vsub.f32 1.0, %v1624_v62  ;;  %v1585_v19 = vadd.f32 %v4681_v2, %v1584_v22  ;;  %v1648_v8 = vand.u32 2147483648, %v4739_v41  ;;  %vm1563_vm7 = vcmp.eq.f32.partialorder %v1562_v27, 8.507059e+37  ;;  %v3277_v22 = vld [vmem:[%s6060_s0 + $0x350] sm:$0xff]  ;;  %2368 = vmatpush.msra.mxu1 %v3278_v21 }
 0x1ae   :  { %v4770_v4 = vpop.xlane.xlu2 %1364  ;;  %v1526_v54 = vmul.f32 %v4773_v23, %v4730_v36  ;;  %v4787_v9 = vpop.eup %3599  ;;  %v1561_v62 = vsel %vm1560_vm4, %v4719_v7, %v1557_v13  ;;  %v1683_v44 = vadd.f32 %v4700_v58, %v1682_v1  ;;  %v4807_v13 = vor.u32 1.1754944e-38, %v1634_v17  ;;  %v3280_v17 = vld [vmem:[%s6060_s0 + $0x368] sm:$0xff] }
 0x1af   :  { %3603 = vrcp.f32 %v4770_v4  ;;  %v1566_v56 = vsel %vm1563_vm7, %v1565_v61, %v1561_v62  ;;  %v1626_v7 = vmul.f32 %v4743_v32, %v1625_v3  ;;  %v1536_v27 = vand.u32 2147483648, %v4730_v36  ;;  %2369 = vmatpush.msra.mxu1 %v3277_v22  ;;  %2397 = vmatpush.msra.mxu2 %v3280_v17 }
 0x1b0   :  { %v1527_v47 = vsub.f32 1.0, %v1526_v54  ;;  %v1638_v1 = vmul.f32 %v4787_v9, %v4739_v41  ;;  %v2160_v53 = vmul.f32 %v4354_v52, %v1566_v56  ;;  %v1589_v3 = vsel %vm1588_vm9, %v4681_v2, %v1585_v19 }
 0x1b1   :  { %vm1629_vm11 = vweird.f32 %v4743_v32  ;;  %vm1530_vm12 = vweird.f32 %v4730_v36  ;;  %v1594_v52 = vsel %vm4762_vm13, %v1593_v31, %v1589_v3  ;;  %v4845_v46 = vor.u32 1.1754944e-38, %v1648_v8  ;;  %2398 = vmatpush.msra.mxu2 %v3279_v24 }
 0x1b2   :  { %v4802_v5 = vpop.eup %3601  ;;  %v1528_v61 = vmul.f32 %v4773_v23, %v1527_v47  ;;  %v1687_v47 = vsel %vm4831_vm10, %v4700_v58, %v1683_v44  ;;  %v1604_v2 = vand.u32 2147483647, %v4770_v4  ;;  %3416 = vmatmul.msk.f32.gmra.mxu2 %vm1050_vm1, %v2160_v53  ;;  %v2162_v19 = vmul.f32 %v4352_v10, %v1594_v52  ;;  %vm4874_vm14 = vmor %vm1628_vm6, %vm1629_vm11 }
 0x1b3   :  { %v1610_v49 = vmul.f32 %v4802_v5, %v4753_v18  ;;  %v4814_v30 = vpop.xlane.xlu1 %1376  ;;  %v1627_v50 = vadd.f32 %v4743_v32, %v1626_v7  ;;  %vm4858_vm13 = vcmp.eq.f32.partialorder %v1632_v45, 8.507059e+37  ;;  %v1639_v58 = vsub.f32 1.0, %v1638_v1 }
 0x1b4   :  { %3605 = vrcp.f32 %v4814_v30  ;;  %v1537_v8 = vor.u32 1.1754944e-38, %v1536_v27  ;;  %v1620_v10 = vand.u32 2147483648, %v4753_v18  ;;  %3418 = vmatmul.msk.f32.gmra.mxu3 %vm1050_vm1, %v2162_v19  ;;  %v1529_v53 = vadd.f32 %v4773_v23, %v1528_v61 }
 0x1b5   :  { %v4840_v56 = vpop.eup %3603  ;;  %v4850_v62 = vpop.xlane.xlu0 %1379  ;;  %v1611_v21 = vsub.f32 1.0, %v1610_v49  ;;  %v1692_v49 = vsel %vm4778_vm3, %v4775_v60, %v1687_v47  ;;  %v1606_v3 = vand.u32 2147483648, %v4770_v4  ;;  %vm1614_vm15 = vweird.f32 %v4753_v18 }
 0x1b6   :  { %v4852_v31 = vpop.xlane.xlu2 %1385  ;;  %v1596_v22 = vmul.f32 %v4840_v56, %v4770_v4  ;;  %3607 = vrcp.f32 %v4850_v62  ;;  %vm1600_vm2 = vweird.f32 %v4770_v4  ;;  %vm4880_vm4 = vcmp.eq.f32.partialorder %v1604_v2, 8.507059e+37  ;;  %v3286_v4 = vld [vmem:[%s6060_s0 + $0x398] sm:$0xff] }
 0x1b7   :  { %3609 = vrcp.f32 %v4852_v31  ;;  %vm1531_vm3 = vweird.f32 %v4773_v23  ;;  %v1534_v60 = vand.u32 2147483647, %v4730_v36  ;;  %v1631_v43 = vsel %vm4874_vm14, %v4743_v32, %v1627_v50  ;;  %2484 = vmatpush.msrb.mxu1 %v3286_v4 }
 0x1b8   :  { %v1597_v7 = vsub.f32 1.0, %v1596_v22  ;;  %v1612_v1 = vmul.f32 %v4802_v5, %v1611_v21  ;;  %vm1601_vm5 = vweird.f32 %v4840_v56  ;;  %vm1532_vm6 = vmor %vm1530_vm12, %vm1531_vm3  ;;  %v1640_v17 = vmul.f32 %v4787_v9, %v1639_v58 }
 0x1b9   :  { %v1533_v54 = vsel %vm1532_vm6, %v4773_v23, %v1529_v53  ;;  %vm1535_vm7 = vcmp.eq.f32.partialorder %v1534_v60, 8.507059e+37  ;;  %v1607_v47 = vor.u32 1.1754944e-38, %v1606_v3  ;;  %v1660_v2 = vand.u32 2147483647, %v4814_v30  ;;  %vm4907_vm9 = vmor %vm1600_vm2, %vm1601_vm5  ;;  %v3285_v3 = vld [vmem:[%s6060_s0 + $0x390] sm:$0xff] }
 0x1ba   :  { %v4886_v27 = vpop.eup %3605  ;;  %v1598_v61 = vmul.f32 %v4840_v56, %v1597_v7  ;;  %v1538_v19 = vsel %vm1535_vm7, %v1537_v8, %v1533_v54  ;;  %vm1642_vm8 = vweird.f32 %v4739_v41  ;;  %v1662_v23 = vand.u32 2147483648, %v4814_v30  ;;  %v3284_v8 = vld [vmem:[%s6060_s0 + $0x388] sm:$0xff]  ;;  %2485 = vmatpush.msrb.mxu1 %v3285_v3 }
 0x1bb   :  { %v1652_v24 = vmul.f32 %v4886_v27, %v4814_v30  ;;  %v2158_v21 = vmul.f32 %v4371_v34, %v1538_v19  ;;  %v2169_v22 = vmul.f32 %v4359_v15, %v1692_v49  ;;  %vm1657_vm10 = vweird.f32 %v4886_v27  ;;  %2455 = vmatpush.msra.mxu0 %v3284_v8  ;;  %v3283_v49 = vld [vmem:[%s6060_s0 + $0x380] sm:$0xff] }
 0x1bc   :  { %v4900_v52 = vpop.eup %3607  ;;  %v1599_v32 = vadd.f32 %v4840_v56, %v1598_v61  ;;  %v1613_v34 = vadd.f32 %v4802_v5, %v1612_v1  ;;  %vm1615_vm11 = vweird.f32 %v4802_v5  ;;  %v1636_v1 = vsel %vm4858_vm13, %v4807_v13, %v1631_v43 }
 0x1bd   :  { %v1653_v50 = vsub.f32 1.0, %v1652_v24  ;;  %v4922_v53 = vpop.eup %3609  ;;  %v1666_v15 = vmul.f32 %v4900_v52, %v4850_v62  ;;  %3414 = vmatmul.msk.f32.gmra.mxu1 %vm1050_vm1, %v2158_v21  ;;  %3425 = vmatmul.msk.f32.vlgmr.msra.gmra.mxu3 %vm1050_vm1, %v2169_v22  ;;  %vm1656_vm12 = vweird.f32 %v4814_v30  ;;  %vm4949_vm14 = vcmp.eq.f32.partialorder %v1660_v2, 8.507059e+37  ;;  %vm4971_vm13 = vmor %vm1614_vm15, %vm1615_vm11 }
 0x1be   :  { %v4914_v58 = vpop.xlane.xlu2 %1394  ;;  %v1603_v7 = vsel %vm4907_vm9, %v4840_v56, %v1599_v32  ;;  %v1694_v60 = vmul.f32 %v4922_v53, %v4852_v31  ;;  %2456 = vmatpush.msra.mxu0 %v3283_v49  ;;  %vm4957_vm2 = vmor %vm1656_vm12, %vm1657_vm10  ;;  %v1663_v44 = vor.u32 1.1754944e-38, %v1662_v23  ;;  %v1618_v30 = vand.u32 2147483647, %v4753_v18  ;;  %v3290_v18 = vld [vmem:[%s6060_s0 + $0x3b8] sm:$0xff] }
 0x1bf   :  { %v1608_v56 = vsel %vm4880_vm4, %v1607_v47, %v1603_v7  ;;  %v1654_v45 = vmul.f32 %v4886_v27, %v1653_v50  ;;  %3611 = vrcp.f32 %v4914_v58  ;;  %v1676_v43 = vand.u32 2147483648, %v4850_v62  ;;  %2542 = vmatpush.msrb.mxu3 %v3290_v18 }
 0x1c0   :  { %v1695_v13 = vsub.f32 1.0, %v1694_v60  ;;  %v1704_v54 = vand.u32 2147483648, %v4852_v31  ;;  %v2163_v32 = vmul.f32 %v4385_v16, %v1608_v56  ;;  %v1641_v19 = vadd.f32 %v4787_v9, %v1640_v17  ;;  %v4989_v17 = vpop.xlane.xlu0 %1409 }
 0x1c1   :  { %v1655_v61 = vadd.f32 %v4886_v27, %v1654_v45  ;;  %v1667_v50 = vsub.f32 1.0, %v1666_v15  ;;  %v1617_v16 = vsel %vm4971_vm13, %v4802_v5, %v1613_v34  ;;  %v1621_v23 = vor.u32 1.1754944e-38, %v1620_v10 }
 0x1c2   :  { %v1696_v22 = vmul.f32 %v4922_v53, %v1695_v13  ;;  %vm1698_vm15 = vweird.f32 %v4852_v31  ;;  %3419 = vmatmul.msk.f32.vlgmr.msrb.gmra.mxu0 %vm1050_vm1, %v2163_v32  ;;  %vm1670_vm4 = vweird.f32 %v4850_v62  ;;  %vm1619_vm3 = vcmp.eq.f32.partialorder %v1618_v30, 8.507059e+37 }
 0x1c3   :  { %v4965_v47 = vpop.xlane.xlu1 %1406  ;;  %v1659_v36 = vsel %vm4957_vm2, %v4886_v27, %v1655_v61  ;;  %v2165_v27 = vmul.f32 %v4367_v35, %v1636_v1  ;;  %vm1643_vm5 = vweird.f32 %v4787_v9  ;;  %v4999_v8 = vor.u32 1.1754944e-38, %v1676_v43 }
 0x1c4   :  { %3613 = vrcp.f32 %v4965_v47  ;;  %v1664_v21 = vsel %vm4949_vm14, %v1663_v44, %v1659_v36  ;;  %v1705_v4 = vor.u32 1.1754944e-38, %v1704_v54  ;;  %v1622_v7 = vsel %vm1619_vm3, %v1621_v23, %v1617_v16  ;;  %vm5003_vm6 = vmor %vm1642_vm8, %vm1643_vm5  ;;  %v3294_v23 = vld [vmem:[%s6060_s0 + $0x3d8] sm:$0xff] }
 0x1c5   :  { %v2167_v5 = vmul.f32 %v4397_v57, %v1664_v21  ;;  %v3612_v10 = vpop.eup %3611  ;;  %v1646_v35 = vand.u32 2147483647, %v4739_v41  ;;  %v3289_v57 = vld [vmem:[%s6060_s0 + $0x3b0] sm:$0xff]  ;;  %v1668_v34 = vmul.f32 %v4900_v52, %v1667_v50  ;;  %3615 = vrcp.f32 %v4989_v17  ;;  %3421 = vmatmul.msk.f32.vlgmr.msra.gmra.mxu1 %vm1050_vm1, %v2165_v27 }
 0x1c6   :  { %v1736_v49 = vmul.f32 %v3612_v10, %v4914_v58  ;;  %v1645_v3 = vsel %vm5003_vm6, %v4787_v9, %v1641_v19  ;;  %v1744_v41 = vand.u32 2147483647, %v4914_v58  ;;  %v1697_v56 = vadd.f32 %v4922_v53, %v1696_v22  ;;  %2543 = vmatpush.msrb.mxu3 %v3289_v57  ;;  %2600 = vmatpush.msra.mxu1 %v3294_v23 }
 0x1c7   :  { %3423 = vmatmul.msk.f32.vlgmr.msra.gmra.mxu2 %vm1050_vm1, %v2167_v5  ;;  %vm1699_vm7 = vweird.f32 %v4922_v53  ;;  %v1702_v45 = vand.u32 2147483647, %v4852_v31  ;;  %v1746_v48 = vand.u32 2147483648, %v4914_v58  ;;  %v2164_v61 = vmul.f32 %v4383_v29, %v1622_v7  ;;  %v3291_v7 = vld [vmem:[%s6060_s0 + $0x3c0] sm:$0xff] }
 0x1c8   :  { %v1737_v1 = vsub.f32 1.0, %v1736_v49  ;;  %vm1647_vm8 = vcmp.eq.f32.partialorder %v1646_v35, 8.507059e+37  ;;  %vm1700_vm9 = vmor %vm1698_vm15, %vm1699_vm7  ;;  %vm1741_vm10 = vweird.f32 %v3612_v10  ;;  %v1669_v29 = vadd.f32 %v4900_v52, %v1668_v34 }
 0x1c9   :  { %v1650_v24 = vsel %vm1647_vm8, %v4845_v46, %v1645_v3  ;;  %v1701_v44 = vsel %vm1700_vm9, %v4922_v53, %v1697_v56  ;;  %vm1703_vm11 = vcmp.eq.f32.partialorder %v1702_v45, 8.507059e+37  ;;  %vm1740_vm12 = vweird.f32 %v4914_v58  ;;  %v6138_v3 = vld [vmem:[#allocation7_spill] sm:$0xff] }
 0x1ca   :  { %v5023_v60 = vpop.eup %3613  ;;  %v1738_v30 = vmul.f32 %v3612_v10, %v1737_v1  ;;  %3420 = vmatmul.msk.f32.gmra.mxu0 %vm1050_vm1, %v2164_v61  ;;  %v1706_v43 = vsel %vm1703_vm11, %v1705_v4, %v1701_v44  ;;  %vm1671_vm14 = vweird.f32 %v4900_v52  ;;  %vm5045_vm2 = vmor %vm1740_vm12, %vm1741_vm10  ;;  %vm5049_vm13 = vcmp.eq.f32.partialorder %v1744_v41, 8.507059e+37 }
 0x1cb   :  { %v1792_v9 = vmul.f32 %v5023_v60, %v4965_v47  ;;  %v5033_v13 = vpop.xlane.xlu2 %1397  ;;  %v5042_v46 = vpop.eup %3615  ;;  %v2166_v58 = vmul.f32 %v4375_v42, %v1650_v24  ;;  %v2170_v19 = vmul.f32 %v4399_v11, %v1706_v43  ;;  %v1747_v36 = vor.u32 1.1754944e-38, %v1746_v48  ;;  %vm5060_vm3 = vmor %vm1670_vm4, %vm1671_vm14  ;;  %v3288_v42 = vld [vmem:[%s6060_s0 + $0x3a8] sm:$0xff]  ;;  %v3293_v43 = vld [vmem:[%s6060_s0 + $0x3d0] sm:$0xff] }
 0x1cc   :  { %3617 = vrcp.f32 %v5033_v13  ;;  %v5039_v54 = vpop.xlane.xlu0 %1418  ;;  %v1739_v53 = vadd.f32 %v3612_v10, %v1738_v30  ;;  %vm1797_vm15 = vweird.f32 %v5023_v60  ;;  %v1802_v21 = vand.u32 2147483648, %v4965_v47  ;;  %2513 = vmatpush.msrb.mxu2 %v3288_v42  ;;  %2601 = vmatpush.msra.mxu1 %v3293_v43 }
 0x1cd   :  { %v1793_v31 = vsub.f32 1.0, %v1792_v9  ;;  %3619 = vrcp.f32 %v5039_v54  ;;  %3422 = vmatmul.msk.f32.gmra.mxu1 %vm1050_vm1, %v2166_v58  ;;  %3426 = vmatmul.msk.f32.gmra.mxu3 %vm1050_vm1, %v2170_v19  ;;  %v1673_v22 = vsel %vm5060_vm3, %v4900_v52, %v1669_v29  ;;  %v1674_v27 = vand.u32 2147483647, %v4850_v62  ;;  %v3298_v19 = vld [vmem:[%s6060_s0 + $0x3f8] sm:$0xff] }
 0x1ce   :  { %v1743_v11 = vsel %vm5045_vm2, %v3612_v10, %v1739_v53  ;;  %vm1796_vm4 = vweird.f32 %v4965_v47  ;;  %v1800_v10 = vand.u32 2147483647, %v4965_v47  ;;  %v2171_v62 = vmul.f32 %v4309_v51, %v4721_v55  ;;  %v3292_v53 = vld [vmem:[%s6060_s0 + $0x3c8] sm:$0xff]  ;;  %2658 = vmatpush.msra.mxu3 %v3298_v19 }
 0x1cf   :  { %v1794_v50 = vmul.f32 %v5023_v60, %v1793_v31  ;;  %v1748_v5 = vsel %vm5049_vm13, %v1747_v36, %v1743_v11  ;;  %vm5088_vm5 = vmor %vm1796_vm4, %vm1797_vm15  ;;  %vm1675_vm6 = vcmp.eq.f32.partialorder %v1674_v27, 8.507059e+37  ;;  %vm1727_vm7 = vweird.f32 %v4623_v40  ;;  %2571 = vmatpush.msrb.mxu0 %v3292_v53 }
 0x1d0   :  { %v1678_v15 = vsel %vm1675_vm6, %v4999_v8, %v1673_v22  ;;  %v1725_v34 = vadd.f32 %v4623_v40, %v4736_v33  ;;  %v1732_v51 = vand.u32 2147483648, %v4593_v0  ;;  %v1803_v55 = vor.u32 1.1754944e-38, %v1802_v21 }
 0x1d1   :  { %v1795_v18 = vadd.f32 %v5023_v60, %v1794_v50  ;;  %v2168_v49 = vmul.f32 %v4404_v38, %v1678_v15  ;;  %v2173_v41 = vmul.f32 %v6138_v3, %v1748_v5  ;;  %vm1726_vm8 = vweird.f32 %v4593_v0  ;;  %2572 = vmatpush.msrb.mxu0 %v3291_v7 }
 0x1d2   :  { %v5084_v4 = vpop.eup %3617  ;;  %vm1801_vm9 = vcmp.eq.f32.partialorder %v1800_v10, 8.507059e+37  ;;  %3427 = vmatmul.msk.f32.vlgmr.msra.gmra.mxu0 %vm1050_vm1, %v2171_v62  ;;  %v1730_v8 = vand.u32 2147483647, %v4593_v0  ;;  %vm1728_vm10 = vmor %vm1726_vm8, %vm1727_vm7  ;;  %v1733_v1 = vor.u32 1.1754944e-38, %v1732_v51  ;;  %v1806_v48 = vmul.f32 %v5042_v46, %v4989_v17  ;;  %v3297_v62 = vld [vmem:[%s6060_s0 + $0x3f0] sm:$0xff] }
 0x1d3   :  { %v1799_v52 = vsel %vm5088_vm5, %v5023_v60, %v1795_v18  ;;  %v1750_v47 = vmul.f32 %v5084_v4, %v5033_v13  ;;  %v5101_v35 = vpop.xlane.xlu1 %1403  ;;  %v5103_v57 = vpop.xlane.xlu2 %1400  ;;  %3424 = vmatmul.msk.f32.gmra.mxu2 %vm1050_vm1, %v2168_v49  ;;  %v1729_v38 = vsel %vm1728_vm10, %v4623_v40, %v1725_v34  ;;  %v1816_v44 = vand.u32 2147483648, %v4989_v17  ;;  %v6139_v40 = vld [vmem:[#allocation6_spill] sm:$0xff]  ;;  %2659 = vmatpush.msra.mxu3 %v3297_v62  ;;  %v3296_v34 = vld [vmem:[%s6060_s0 + $0x3e8] sm:$0xff] }
 0x1d4   :  { %v5110_v56 = vpop.eup %3619  ;;  %v1804_v45 = vsel %vm1801_vm9, %v1803_v55, %v1799_v52  ;;  %3621 = vrcp.f32 %v5103_v57  ;;  %vm1731_vm11 = vcmp.eq.f32.partialorder %v1730_v8, 8.507059e+37  ;;  %v1807_v2 = vsub.f32 1.0, %v1806_v48  ;;  %v3295_v62 = vld [vmem:[%s6060_s0 + $0x3e0] sm:$0xff] }
 0x1d5   :  { %v1751_v60 = vsub.f32 1.0, %v1750_v47  ;;  %v5117_v33 = vpop.xlane.xlu0 %1424  ;;  %v1848_v0 = vmul.f32 %v5110_v56, %v5039_v54  ;;  %3429 = vmatmul.msk.f32.vlgmr.msrb.gmra.mxu1 %vm1050_vm1, %v2173_v41  ;;  %v2177_v61 = vmul.f32 %v4422_v26, %v1804_v45  ;;  %v1734_v24 = vsel %vm1731_vm11, %v1733_v1, %v1729_v38  ;;  %v3287_v26 = vld [vmem:[%s6060_s0 + $0x3a0] sm:$0xff] }
 0x1d6   :  { %3623 = vrcp.f32 %v5117_v33  ;;  %v2172_v30 = vmul.f32 %v6139_v40, %v1734_v24  ;;  %2514 = vmatpush.msrb.mxu2 %v3287_v26  ;;  %v1760_v36 = vand.u32 2147483648, %v5033_v13  ;;  %v1858_v50 = vand.u32 2147483648, %v5039_v54 }
 0x1d7   :  { %v1752_v9 = vmul.f32 %v5084_v4, %v1751_v60  ;;  %3433 = vmatmul.msk.f32.vlgmr.msrb.gmra.mxu3 %vm1050_vm1, %v2177_v61  ;;  %v1849_v58 = vsub.f32 1.0, %v1848_v0  ;;  %vm1810_vm12 = vweird.f32 %v4989_v17  ;;  %v1856_v23 = vand.u32 2147483647, %v5039_v54 }
 0x1d8   :  { %vm1755_vm14 = vweird.f32 %v5084_v4  ;;  %v1817_v21 = vor.u32 1.1754944e-38, %v1816_v44  ;;  %v1758_v27 = vand.u32 2147483647, %v5033_v13  ;;  %v1808_v18 = vmul.f32 %v5042_v46, %v1807_v2  ;;  %2629 = vmatpush.msra.mxu2 %v3296_v34  ;;  %v3306_v34 = vld [vmem:[%s6060_s0 + $0x438] sm:$0xff] }
 0x1d9   :  { %v1753_v11 = vadd.f32 %v5084_v4, %v1752_v9  ;;  %vm1754_vm2 = vweird.f32 %v5033_v13  ;;  %v1850_v10 = vmul.f32 %v5110_v56, %v1849_v58  ;;  %vm1852_vm13 = vweird.f32 %v5039_v54  ;;  %v3302_v13 = vld [vmem:[%s6060_s0 + $0x418] sm:$0xff]  ;;  %2774 = vmatpush.msrb.mxu3 %v3306_v34 }
 0x1da   :  { %v5146_v32 = vpop.eup %3621  ;;  %3428 = vmatmul.msk.f32.gmra.mxu0 %vm1050_vm1, %v2172_v30  ;;  %v1761_v52 = vor.u32 1.1754944e-38, %v1760_v36  ;;  %vm1853_vm15 = vweird.f32 %v5110_v56  ;;  %v1859_v47 = vor.u32 1.1754944e-38, %v1858_v50  ;;  %vm5182_vm3 = vmor %vm1754_vm2, %vm1755_vm14  ;;  %vm5191_vm4 = vcmp.eq.f32.partialorder %v1856_v23, 8.507059e+37  ;;  %2630 = vmatpush.msra.mxu2 %v3295_v62 }
 0x1db   :  { %v5133_v29 = vpop.xlane.xlu1 %1430  ;;  %v5135_v31 = vpop.xlane.xlu2 %1412  ;;  %v1764_v16 = vmul.f32 %v5146_v32, %v5103_v57  ;;  %vm1768_vm5 = vweird.f32 %v5103_v57  ;;  %vm1769_vm6 = vweird.f32 %v5146_v32  ;;  %v1774_v49 = vand.u32 2147483648, %v5103_v57  ;;  %vm5239_vm11 = vmor %vm1852_vm13, %vm1853_vm15  ;;  %2716 = vmatpush.msrb.mxu1 %v3302_v13 }
 0x1dc   :  { %3625 = vrcp.f32 %v5133_v29  ;;  %v5166_v5 = vpop.eup %3623  ;;  %v1757_v3 = vsel %vm5182_vm3, %v5084_v4, %v1753_v11  ;;  %vm1759_vm7 = vcmp.eq.f32.partialorder %v1758_v27, 8.507059e+37  ;;  %v1851_v48 = vadd.f32 %v5110_v56, %v1850_v10  ;;  %vm5221_vm9 = vmor %vm1768_vm5, %vm1769_vm6 }
 0x1dd   :  { %3627 = vrcp.f32 %v5101_v35  ;;  %v5160_v42 = vpop.xlane.xlu0 %1415  ;;  %v1765_v22 = vsub.f32 1.0, %v1764_v16  ;;  %v1876_v45 = vmul.f32 %v5166_v5, %v5117_v33  ;;  %v1762_v0 = vsel %vm1759_vm7, %v1761_v52, %v1757_v3 }
 0x1de   :  { %3629 = vrcp.f32 %v5135_v31  ;;  %v1809_v4 = vadd.f32 %v5042_v46, %v1808_v18  ;;  %vm1811_vm8 = vweird.f32 %v5042_v46  ;;  %v1772_v24 = vand.u32 2147483647, %v5103_v57 }
 0x1df   :  { %v1766_v15 = vmul.f32 %v5146_v32, %v1765_v22  ;;  %v2174_v40 = vmul.f32 %v4431_v63, %v1762_v0  ;;  %v1814_v30 = vand.u32 2147483647, %v4989_v17  ;;  %v1788_v43 = vand.u32 2147483648, %v5101_v35  ;;  %vm1812_vm10 = vmor %vm1810_vm12, %vm1811_vm8 }
 0x1e0   :  { %v1775_v53 = vor.u32 1.1754944e-38, %v1774_v49  ;;  %v1877_v58 = vsub.f32 1.0, %v1876_v45  ;;  %v1813_v19 = vsel %vm1812_vm10, %v5042_v46, %v1809_v4  ;;  %v1855_v17 = vsel %vm5239_vm11, %v5110_v56, %v1851_v48 }
 0x1e1   :  { %v1767_v8 = vadd.f32 %v5146_v32, %v1766_v15  ;;  %3430 = vmatmul.msk.f32.gmra.mxu1 %vm1050_vm1, %v2174_v40  ;;  %vm1815_vm14 = vcmp.eq.f32.partialorder %v1814_v30, 8.507059e+37  ;;  %vm1773_vm12 = vcmp.eq.f32.partialorder %v1772_v24, 8.507059e+37  ;;  %v1884_v23 = vand.u32 2147483647, %v5117_v33  ;;  %v3300_v15 = vld [vmem:[%s6060_s0 + $0x408] sm:$0xff] }
 0x1e2   :  { %v5189_v51 = vpop.eup %3625  ;;  %v1818_v50 = vsel %vm1815_vm14, %v1817_v21, %v1813_v19  ;;  %3631 = vrcp.f32 %v5160_v42  ;;  %v1914_v27 = vand.u32 2147483648, %v5133_v29  ;;  %v1860_v56 = vsel %vm5191_vm4, %v1859_v47, %v1855_v17  ;;  %2687 = vmatpush.msra.mxu0 %v3300_v15 }
 0x1e3   :  { %v5201_v41 = vpop.eup %3627  ;;  %v1904_v60 = vmul.f32 %v5189_v51, %v5133_v29  ;;  %v5208_v38 = vpop.xlane.xlu1 %1421  ;;  %v1771_v57 = vsel %vm5221_vm9, %v5146_v32, %v1767_v8  ;;  %v6148_v32 = vld [vmem:[#allocation8_spill] sm:$0xff]  ;;  %v1878_v21 = vmul.f32 %v5166_v5, %v1877_v58  ;;  %v1830_v10 = vand.u32 2147483648, %v5135_v31 }
 0x1e4   :  { %v5210_v1 = vpop.xlane.xlu2 %1433  ;;  %v5215_v61 = vpop.eup %3629  ;;  %v1778_v26 = vmul.f32 %v5201_v41, %v5101_v35  ;;  %v2178_v11 = vmul.f32 %v6148_v32, %v1818_v50  ;;  %v1776_v46 = vsel %vm1773_vm12, %v1775_v53, %v1771_v57  ;;  %vm1909_vm13 = vweird.f32 %v5189_v51 }
 0x1e5   :  { %v1905_v44 = vsub.f32 1.0, %v1904_v60  ;;  %v1820_v2 = vmul.f32 %v5215_v61, %v5135_v31  ;;  %v5252_v16 = vpop.xlane.xlu0 %1454  ;;  %vm1825_vm2 = vweird.f32 %v5215_v61  ;;  %3633 = vrcp.f32 %v5208_v38 }
 0x1e6   :  { %v1779_v22 = vsub.f32 1.0, %v1778_v26  ;;  %3434 = vmatmul.msk.f32.gmra.mxu3 %vm1050_vm1, %v2178_v11  ;;  %vm1824_vm15 = vweird.f32 %v5135_v31  ;;  %v1828_v55 = vand.u32 2147483647, %v5135_v31  ;;  %3635 = vrcp.f32 %v5210_v1 }
 0x1e7   :  { %v1906_v54 = vmul.f32 %v5189_v51, %v1905_v44  ;;  %v1821_v36 = vsub.f32 1.0, %v1820_v2  ;;  %v2175_v49 = vmul.f32 %v4443_v14, %v1776_v46  ;;  %vm1908_vm3 = vweird.f32 %v5133_v29  ;;  %vm5293_vm4 = vmor %vm1824_vm15, %vm1825_vm2 }
 0x1e8   :  { %v1912_v8 = vand.u32 2147483647, %v5133_v29  ;;  %3637 = vrcp.f32 %v5252_v16  ;;  %v2181_v31 = vmul.f32 %v4437_v59, %v1860_v56  ;;  %v5299_v14 = vpop.eup %3631  ;;  %v1780_v60 = vmul.f32 %v5201_v41, %v1779_v22  ;;  %vm5306_vm6 = vmor %vm1908_vm3, %vm1909_vm13 }
 0x1e9   :  { %v1822_v18 = vmul.f32 %v5215_v61, %v1821_v36  ;;  %v1907_v52 = vadd.f32 %v5189_v51, %v1906_v54  ;;  %vm1881_vm5 = vweird.f32 %v5166_v5  ;;  %v1886_v48 = vand.u32 2147483648, %v5117_v33  ;;  %3431 = vmatmul.msk.f32.vlgmr.msrb.gmra.mxu2 %vm1050_vm1, %v2175_v49  ;;  %v3301_v49 = vld [vmem:[%s6060_s0 + $0x410] sm:$0xff]  ;;  %v3303_v36 = vld [vmem:[%s6060_s0 + $0x420] sm:$0xff] }
 0x1ea   :  { %v1879_v59 = vadd.f32 %v5166_v5, %v1878_v21  ;;  %v1831_v9 = vor.u32 1.1754944e-38, %v1830_v10  ;;  %3437 = vmatmul.msk.f32.vlgmr.msra.gmra.mxu1 %vm1050_vm1, %v2181_v31  ;;  %vm1782_vm7 = vweird.f32 %v5101_v35  ;;  %v1789_v24 = vor.u32 1.1754944e-38, %v1788_v43 }
 0x1eb   :  { %v5265_v7 = vpop.xlane.xlu1 %1427  ;;  %v1823_v47 = vadd.f32 %v5215_v61, %v1822_v18  ;;  %v1911_v4 = vsel %vm5306_vm6, %v5189_v51, %v1907_v52  ;;  %v1915_v44 = vor.u32 1.1754944e-38, %v1914_v27  ;;  %vm1829_vm8 = vcmp.eq.f32.partialorder %v1828_v55, 8.507059e+37  ;;  %2717 = vmatpush.msrb.mxu1 %v3301_v49 }
 0x1ec   :  { %v5287_v3 = vpop.xlane.xlu2 %1442  ;;  %vm1880_vm9 = vweird.f32 %v5117_v33  ;;  %vm1913_vm10 = vcmp.eq.f32.partialorder %v1912_v8, 8.507059e+37  ;;  %v1834_v51 = vmul.f32 %v5299_v14, %v5160_v42  ;;  %vm5338_vm14 = vcmp.eq.f32.partialorder %v1884_v23, 8.507059e+37  ;;  %v3305_v8 = vld [vmem:[%s6060_s0 + $0x430] sm:$0xff] }
 0x1ed   :  { %v1827_v0 = vsel %vm5293_vm4, %v5215_v61, %v1823_v47  ;;  %3639 = vrcp.f32 %v5287_v3  ;;  %v5323_v61 = vpop.eup %3633  ;;  %v5328_v30 = vpop.xlane.xlu0 %1451  ;;  %vm5334_vm11 = vmor %vm1880_vm9, %vm1881_vm5  ;;  %v1887_v33 = vor.u32 1.1754944e-38, %v1886_v48  ;;  %v1916_v2 = vsel %vm1913_vm10, %v1915_v44, %v1911_v4  ;;  %v3304_v48 = vld [vmem:[%s6060_s0 + $0x428] sm:$0xff]  ;;  %2775 = vmatpush.msrb.mxu3 %v3305_v8 }
 0x1ee   :  { %v1832_v40 = vsel %vm1829_vm8, %v1831_v9, %v1827_v0  ;;  %v5330_v26 = vpop.eup %3635  ;;  %3641 = vrcp.f32 %v5265_v7  ;;  %v1883_v57 = vsel %vm5334_vm11, %v5166_v5, %v1879_v59  ;;  %v1844_v58 = vand.u32 2147483648, %v5160_v42  ;;  %2745 = vmatpush.msrb.mxu2 %v3304_v48 }
 0x1ef   :  { %v5343_v63 = vpop.eup %3637  ;;  %v1781_v19 = vadd.f32 %v5201_v41, %v1780_v60  ;;  %vm1783_vm12 = vweird.f32 %v5201_v41  ;;  %v1862_v17 = vmul.f32 %v5323_v61, %v5208_v38  ;;  %v1872_v54 = vand.u32 2147483648, %v5208_v38  ;;  %v3299_v60 = vld [vmem:[%s6060_s0 + $0x400] sm:$0xff] }
 0x1f0   :  { %vm5356_vm2 = vmor %vm1782_vm7, %vm1783_vm12  ;;  %v1786_v50 = vand.u32 2147483647, %v5101_v35  ;;  %v2179_v5 = vmul.f32 %v4458_v12, %v1832_v40  ;;  %v1835_v11 = vsub.f32 1.0, %v1834_v51  ;;  %vm1838_vm13 = vweird.f32 %v5160_v42  ;;  %2688 = vmatpush.msra.mxu0 %v3299_v60  ;;  %2746 = vmatpush.msrb.mxu2 %v3303_v36  ;;  %v6173_v36 = vld [vmem:[#allocation11_spill] sm:$0xff] }
 0x1f1   :  { %v1928_v22 = vand.u32 2147483648, %v5210_v1  ;;  %v1785_v46 = vsel %vm5356_vm2, %v5201_v41, %v1781_v19  ;;  %v2185_v27 = vmul.f32 %v4460_v20, %v1916_v2  ;;  %v1918_v35 = vmul.f32 %v5330_v26, %v5210_v1 }
 0x1f2   :  { %v2016_v12 = vmul.f32 %v5343_v63, %v5252_v16  ;;  %vm1787_vm15 = vcmp.eq.f32.partialorder %v1786_v50, 8.507059e+37  ;;  %3435 = vmatmul.msk.f32.vlgmr.msrb.gmra.mxu0 %vm1050_vm1, %v2179_v5  ;;  %v5379_v56 = vor.u32 1.1754944e-38, %v1844_v58  ;;  %v2026_v21 = vand.u32 2147483648, %v5252_v16  ;;  %v3308_v50 = vld [vmem:[%s6060_s0 + $0x448] sm:$0xff]  ;;  %v3313_v58 = vld [vmem:[%s6060_s0 + $0x470] sm:$0xff] }
 0x1f3   :  { %v5362_v23 = vpop.xlane.xlu1 %1436  ;;  %v5364_v32 = vpop.eup %3639  ;;  %v1790_v10 = vsel %vm1787_vm15, %v1789_v24, %v1785_v46  ;;  %3441 = vmatmul.msk.f32.vlgmr.msra.gmra.mxu3 %vm1050_vm1, %v2185_v27  ;;  %v1888_v62 = vsel %vm5338_vm14, %v1887_v33, %v1883_v57  ;;  %v1863_v52 = vsub.f32 1.0, %v1862_v17  ;;  %v1836_v13 = vmul.f32 %v5299_v14, %v1835_v11  ;;  %2803 = vmatpush.msrb.mxu0 %v3308_v50 }
 0x1f4   :  { %v1960_v18 = vmul.f32 %v5364_v32, %v5287_v3  ;;  %3643 = vrcp.f32 %v5362_v23  ;;  %v5384_v20 = vpop.xlane.xlu2 %1448  ;;  %v5386_v41 = vpop.eup %3641  ;;  %v2176_v15 = vmul.f32 %v4446_v28, %v1790_v10  ;;  %vm1866_vm3 = vweird.f32 %v5208_v38 }
 0x1f5   :  { %v5393_v34 = vor.u32 1.1754944e-38, %v1872_v54  ;;  %v5395_v55 = vor.u32 1.1754944e-38, %v1928_v22  ;;  %v1919_v45 = vsub.f32 1.0, %v1918_v35  ;;  %v2017_v31 = vsub.f32 1.0, %v2016_v12  ;;  %v5420_v4 = vpop.xlane.xlu0 %1445 }
 0x1f6   :  { %v1961_v47 = vsub.f32 1.0, %v1960_v18  ;;  %v1900_v28 = vand.u32 2147483648, %v5265_v7  ;;  %3432 = vmatmul.msk.f32.gmra.mxu2 %vm1050_vm1, %v2176_v15  ;;  %3645 = vrcp.f32 %v5384_v20  ;;  %v2024_v29 = vand.u32 2147483647, %v5252_v16 }
 0x1f7   :  { %v5413_v0 = vor.u32 1.1754944e-38, %v2026_v21  ;;  %v5417_v59 = vmul.f32 %v5386_v41, %v5265_v7  ;;  %3647 = vrcp.f32 %v5328_v30  ;;  %v1864_v9 = vmul.f32 %v5323_v61, %v1863_v52 }
 0x1f8   :  { %vm1922_vm4 = vweird.f32 %v5210_v1  ;;  %v1962_v24 = vmul.f32 %v5364_v32, %v1961_v47  ;;  %vm1964_vm5 = vweird.f32 %v5287_v3  ;;  %v1968_v44 = vand.u32 2147483647, %v5287_v3 }
 0x1f9   :  { %vm2020_vm6 = vweird.f32 %v5252_v16  ;;  %vm2021_vm7 = vweird.f32 %v5343_v63  ;;  %v1970_v51 = vand.u32 2147483648, %v5287_v3  ;;  %v1837_v53 = vadd.f32 %v5299_v14, %v1836_v13 }
 0x1fa   :  { %v5427_v40 = vpop.eup %3643  ;;  %vm1839_vm8 = vweird.f32 %v5299_v14  ;;  %v1920_v43 = vmul.f32 %v5330_v26, %v1919_v45  ;;  %v2018_v33 = vmul.f32 %v5343_v63, %v2017_v31  ;;  %v5436_v2 = vor.u32 1.1754944e-38, %v1900_v28 }
 0x1fb   :  { %v1932_v57 = vmul.f32 %v5427_v40, %v5362_v23  ;;  %vm5442_vm9 = vmor %vm1838_vm13, %vm1839_vm8  ;;  %v1891_v19 = vsub.f32 1.0, %v5417_v59  ;;  %vm1965_vm10 = vweird.f32 %v5364_v32  ;;  %v1842_v54 = vand.u32 2147483647, %v5160_v42  ;;  %v5464_v46 = vpop.xlane.xlu1 %1457  ;;  %v3314_v42 = vld [vmem:[%s6060_s0 + $0x478] sm:$0xff] }
 0x1fc   :  { %v1841_v17 = vsel %vm5442_vm9, %v5299_v14, %v1837_v53  ;;  %v5458_v5 = vpop.eup %3645  ;;  %v1963_v11 = vadd.f32 %v5364_v32, %v1962_v24  ;;  %v1865_v22 = vadd.f32 %v5323_v61, %v1864_v9  ;;  %vm1867_vm11 = vweird.f32 %v5323_v61  ;;  %2890 = vmatpush.msra.mxu3 %v3314_v42  ;;  %v5479_v52 = vpop.xlane.xlu2 %1439  ;;  %vm5492_vm15 = vmor %vm1964_vm5, %vm1965_vm10 }
 0x1fd   :  { %v1870_v14 = vand.u32 2147483647, %v5208_v38  ;;  %v5469_v27 = vpop.eup %3647  ;;  %v1988_v35 = vmul.f32 %v5458_v5, %v5384_v20  ;;  %3649 = vrcp.f32 %v5420_v4  ;;  %vm1843_vm14 = vcmp.eq.f32.partialorder %v1842_v54, 8.507059e+37  ;;  %vm1868_vm12 = vmor %vm1866_vm3, %vm1867_vm11  ;;  %v5520_v45 = vpop.xlane.xlu0 %1460 }
 0x1fe   :  { %v2183_v12 = vmul.f32 %v4453_v6, %v1888_v62  ;;  %v1933_v18 = vsub.f32 1.0, %v1932_v57  ;;  %v1846_v21 = vsel %vm1843_vm14, %v5379_v56, %v1841_v17  ;;  %v1869_v10 = vsel %vm1868_vm12, %v5323_v61, %v1865_v22  ;;  %vm5526_vm10 = vmor %vm2020_vm6, %vm2021_vm7  ;;  %v3307_v57 = vld [vmem:[%s6060_s0 + $0x440] sm:$0xff]  ;;  %2891 = vmatpush.msra.mxu3 %v3313_v58 }
 0x1ff   :  { %vm1871_vm2 = vcmp.eq.f32.partialorder %v1870_v14, 8.507059e+37  ;;  %v5482_v47 = vadd.f32 %v5343_v63, %v2018_v33  ;;  %vm1894_vm13 = vweird.f32 %v5265_v7  ;;  %v1989_v15 = vsub.f32 1.0, %v1988_v35  ;;  %2804 = vmatpush.msrb.mxu0 %v3307_v57  ;;  %v3309_v57 = vld [vmem:[%s6060_s0 + $0x450] sm:$0xff] }
 0x200   :  { %v2180_v38 = vmul.f32 %v4464_v25, %v1846_v21  ;;  %v1874_v13 = vsel %vm1871_vm2, %v5393_v34, %v1869_v10  ;;  %3439 = vmatmul.msk.f32.vlgmr.msra.gmra.mxu2 %vm1050_vm1, %v2183_v12  ;;  %v5498_v61 = vmul.f32 %v5469_v27, %v5328_v30  ;;  %v1921_v25 = vadd.f32 %v5330_v26, %v1920_v43  ;;  %v6178_v21 = vld [vmem:[#allocation10_spill] sm:$0xff] }
 0x201   :  { %v2182_v56 = vmul.f32 %v4472_v39, %v1874_v13  ;;  %vm1923_vm3 = vweird.f32 %v5330_v26  ;;  %vm5503_vm8 = vcmp.eq.f32.partialorder %v2024_v29, 8.507059e+37  ;;  %vm5507_vm9 = vcmp.eq.f32.partialorder %v1968_v44, 8.507059e+37 }
 0x202   :  { %v1971_v34 = vor.u32 1.1754944e-38, %v1970_v51  ;;  %v2012_v49 = vand.u32 2147483648, %v5328_v30  ;;  %3436 = vmatmul.msk.f32.gmra.mxu0 %vm1050_vm1, %v2180_v38  ;;  %vm5515_vm5 = vmor %vm1922_vm4, %vm1923_vm3  ;;  %v1926_v8 = vand.u32 2147483647, %v5210_v1  ;;  %v1967_v28 = vsel %vm5492_vm15, %v5364_v32, %v1963_v11 }
 0x203   :  { %v1934_v60 = vmul.f32 %v5427_v40, %v1933_v18  ;;  %v1990_v48 = vmul.f32 %v5458_v5, %v1989_v15  ;;  %3438 = vmatmul.msk.f32.gmra.mxu1 %vm1050_vm1, %v2182_v56  ;;  %v1925_v1 = vsel %vm5515_vm5, %v5330_v26, %v1921_v25  ;;  %v5539_v29 = vpop.eup %3649  ;;  %v2023_v16 = vsel %vm5526_vm10, %v5343_v63, %v5482_v47  ;;  %v5561_v33 = vpop.xlane.xlu1 %1472  ;;  %v6179_v56 = vld [vmem:[#allocation9_spill] sm:$0xff] }
 0x204   :  { %v1892_v59 = vmul.f32 %v5386_v41, %v1891_v19  ;;  %vm1936_vm4 = vweird.f32 %v5362_v23  ;;  %vm1927_vm6 = vcmp.eq.f32.partialorder %v1926_v8, 8.507059e+37  ;;  %v2003_v32 = vsub.f32 1.0, %v5498_v61  ;;  %v3312_v19 = vld [vmem:[%s6060_s0 + $0x468] sm:$0xff]  ;;  %v5587_v11 = vpop.xlane.xlu2 %1478 }
 0x205   :  { %v1940_v9 = vand.u32 2147483647, %v5362_v23  ;;  %v1942_v24 = vand.u32 2147483648, %v5362_v23  ;;  %v1930_v26 = vsel %vm1927_vm6, %v5395_v55, %v1925_v1  ;;  %v1972_v44 = vsel %vm5507_vm9, %v1971_v34, %v1967_v28  ;;  %2861 = vmatpush.msra.mxu2 %v3312_v19  ;;  %v5626_v47 = vpop.xlane.xlu0 %1481 }
 0x206   :  { %vm1937_vm7 = vweird.f32 %v5427_v40  ;;  %v2186_v63 = vmul.f32 %v4474_v37, %v1930_v26  ;;  %3651 = vrcp.f32 %v5520_v45  ;;  %v1935_v51 = vadd.f32 %v5427_v40, %v1934_v60  ;;  %v6181_v26 = vld [vmem:[#allocation14_spill] sm:$0xff] }
 0x207   :  { %v1991_v53 = vadd.f32 %v5458_v5, %v1990_v48  ;;  %vm1993_vm11 = vweird.f32 %v5458_v5  ;;  %v1974_v43 = vmul.f32 %v5539_v29, %v5420_v4  ;;  %3653 = vrcp.f32 %v5479_v52  ;;  %vm5593_vm15 = vmor %vm1936_vm4, %vm1937_vm7 }
 0x208   :  { %3442 = vmatmul.msk.f32.gmra.mxu3 %vm1050_vm1, %v2186_v63  ;;  %v1893_v55 = vadd.f32 %v5386_v41, %v1892_v59  ;;  %vm1895_vm14 = vweird.f32 %v5386_v41  ;;  %v1898_v37 = vand.u32 2147483647, %v5265_v7  ;;  %vm1992_vm12 = vweird.f32 %v5384_v20  ;;  %v3311_v63 = vld [vmem:[%s6060_s0 + $0x460] sm:$0xff] }
 0x209   :  { %v1998_v17 = vand.u32 2147483648, %v5384_v20  ;;  %3655 = vrcp.f32 %v5464_v46  ;;  %vm5582_vm2 = vmor %vm1894_vm13, %vm1895_vm14  ;;  %v2189_v50 = vmul.f32 %v6173_v36, %v1972_v44  ;;  %v1996_v7 = vand.u32 2147483647, %v5384_v20  ;;  %2862 = vmatpush.msra.mxu2 %v3311_v63 }
 0x20a   :  { %v1897_v14 = vsel %vm5582_vm2, %v5386_v41, %v1893_v55  ;;  %vm1899_vm13 = vcmp.eq.f32.partialorder %v1898_v37, 8.507059e+37  ;;  %3657 = vrcp.f32 %v5561_v33  ;;  %v2028_v42 = vsel %vm5503_vm8, %v5413_v0, %v2023_v16  ;;  %vm5609_vm3 = vmor %vm1992_vm12, %vm1993_vm11 }
 0x20b   :  { %v1975_v35 = vsub.f32 1.0, %v1974_v43  ;;  %v1984_v12 = vand.u32 2147483648, %v5420_v4  ;;  %v1902_v41 = vsel %vm1899_vm13, %v5436_v2, %v1897_v14  ;;  %3445 = vmatmul.msk.f32.vlgmr.msrb.gmra.mxu1 %vm1050_vm1, %v2189_v50  ;;  %v1939_v0 = vsel %vm5593_vm15, %v5427_v40, %v1935_v51  ;;  %v5660_v16 = vpop.xlane.xlu1 %1466  ;;  %v3310_v51 = vld [vmem:[%s6060_s0 + $0x458] sm:$0xff]  ;;  %s3697_s0 = smov 16  }
 0x20c   :  { %v5616_v18 = vpop.eup %3651  ;;  %v1995_v20 = vsel %vm5609_vm3, %v5458_v5, %v1991_v53  ;;  %v2184_v10 = vmul.f32 %v6178_v21, %v1902_v41  ;;  %3659 = vrcp.f32 %v5587_v11  ;;  %v2226_v15 = vpop.f32.mrf.mxu0  ;;  %v1943_v2 = vor.u32 1.1754944e-38, %v1942_v24  ;;  %2832 = vmatpush.msra.mxu1 %v3310_v51 }
 0x20d   :  { %v1999_v38 = vor.u32 1.1754944e-38, %v1998_v17  ;;  %v2040_v13 = vand.u32 2147483648, %v5464_v46  ;;  %v2044_v6 = vmul.f32 %v5616_v18, %v5520_v45  ;;  %2899 = vst.msk [vmem:[#allocation2] sm:$0xff] %vm209_vm0, %v2226_v15  ;;  %v5632_v40 = vpop.eup %3653  ;;  %v5636_v5 = vor.u32 1.1754944e-38, %v2012_v49  ;;  %v5700_v14 = vpop.xlane.xlu2 %1475 }
 0x20e   :  { %vm1941_vm8 = vcmp.eq.f32.partialorder %v1940_v9, 8.507059e+37  ;;  %vm1997_vm9 = vcmp.eq.f32.partialorder %v1996_v7, 8.507059e+37  ;;  %3440 = vmatmul.msk.f32.gmra.mxu2 %vm1050_vm1, %v2184_v10  ;;  %v2193_v25 = vmul.f32 %v6179_v56, %v2028_v42  ;;  %3661 = vrcp.f32 %v5626_v47  ;;  %v6180_v9 = vld [vmem:[#allocation13_spill] sm:$0xff]  ;;  %2833 = vmatpush.msra.mxu1 %v3309_v57  ;;  %v6184_v10 = vld [vmem:[#allocation15_spill] sm:$0xff] }
 0x20f   :  { %v5640_v62 = vpop.eup %3655  ;;  %v1944_v3 = vsel %vm1941_vm8, %v1943_v2, %v1939_v0  ;;  %v2000_v34 = vsel %vm1997_vm9, %v1999_v38, %v1995_v20  ;;  %v2045_v39 = vsub.f32 1.0, %v2044_v6  ;;  %v5648_v49 = vmul.f32 %v5469_v27, %v2003_v32 }
 0x210   :  { %v5643_v8 = vpop.eup %3657  ;;  %v1976_v31 = vmul.f32 %v5539_v29, %v1975_v35  ;;  %vm1978_vm5 = vweird.f32 %v5420_v4  ;;  %v1985_v28 = vor.u32 1.1754944e-38, %v1984_v12  ;;  %3449 = vmatmul.msk.f32.vlgmr.msrb.gmra.mxu3 %vm1050_vm1, %v2193_v25  ;;  %v5653_v60 = vor.u32 1.1754944e-38, %v2040_v13  ;;  %v6203_v13 = vld [vmem:[#allocation20_spill] sm:$0xff] }
 0x211   :  { %v1946_v48 = vmul.f32 %v5632_v40, %v5479_v52  ;;  %v1956_v1 = vand.u32 2147483648, %v5479_v52  ;;  %v2100_v61 = vmul.f32 %v5643_v8, %v5561_v33  ;;  %v2030_v32 = vmul.f32 %v5640_v62, %v5464_v46 }
 0x212   :  { %v5662_v59 = vpop.eup %3659  ;;  %vm2048_vm10 = vweird.f32 %v5520_v45  ;;  %v2187_v24 = vmul.f32 %v6180_v9, %v1944_v3  ;;  %v2191_v44 = vmul.f32 %v6181_v26, %v2000_v34  ;;  %v2046_v53 = vmul.f32 %v5616_v18, %v2045_v39 }
 0x213   :  { %v2052_v43 = vand.u32 2147483647, %v5520_v45  ;;  %v2101_v55 = vsub.f32 1.0, %v2100_v61  ;;  %v2128_v37 = vmul.f32 %v5662_v59, %v5587_v11  ;;  %v1977_v58 = vadd.f32 %v5539_v29, %v1976_v31 }
 0x214   :  { %3443 = vmatmul.msk.f32.vlgmr.msra.gmra.mxu0 %vm1050_vm1, %v2187_v24  ;;  %vm1979_vm4 = vweird.f32 %v5539_v29  ;;  %v1982_v19 = vand.u32 2147483647, %v5420_v4  ;;  %3663 = vrcp.f32 %v5660_v16  ;;  %v5687_v17 = vpop.eup %3661  ;;  %v1947_v54 = vsub.f32 1.0, %v1946_v48 }
 0x215   :  { %vm1950_vm6 = vweird.f32 %v5479_v52  ;;  %v5690_v36 = vor.u32 1.1754944e-38, %v1956_v1  ;;  %v2054_v50 = vand.u32 2147483648, %v5520_v45  ;;  %v2102_v22 = vmul.f32 %v5643_v8, %v2101_v55  ;;  %vm5696_vm7 = vmor %vm1978_vm5, %vm1979_vm4 }
 0x216   :  { %vm2006_vm11 = vweird.f32 %v5328_v30  ;;  %v2031_v42 = vsub.f32 1.0, %v2030_v32  ;;  %vm2104_vm14 = vweird.f32 %v5561_v33  ;;  %v2129_v23 = vsub.f32 1.0, %v2128_v37  ;;  %3447 = vmatmul.msk.f32.vlgmr.msrb.gmra.mxu2 %vm1050_vm1, %v2191_v44  ;;  %v6207_v44 = vld [vmem:[#allocation19_spill] sm:$0xff] }
 0x217   :  { %v1981_v35 = vsel %vm5696_vm7, %v5539_v29, %v1977_v58  ;;  %v5709_v4 = vadd.f32 %v5616_v18, %v2046_v53  ;;  %vm2049_vm12 = vweird.f32 %v5616_v18  ;;  %vm2105_vm2 = vweird.f32 %v5643_v8 }
 0x218   :  { %vm1983_vm15 = vcmp.eq.f32.partialorder %v1982_v19, 8.507059e+37  ;;  %v5714_v12 = vadd.f32 %v5643_v8, %v2102_v22  ;;  %v5718_v41 = vmul.f32 %v5687_v17, %v5626_v47  ;;  %3665 = vrcp.f32 %v5700_v14  ;;  %vm5729_vm3 = vmor %vm2048_vm10, %vm2049_vm12  ;;  %v5793_v19 = vpop.xlane.xlu1 %1463 }
 0x219   :  { %v1986_v0 = vsel %vm1983_vm15, %v1985_v28, %v1981_v35  ;;  %vm2034_vm13 = vweird.f32 %v5464_v46  ;;  %v1948_v29 = vmul.f32 %v5632_v40, %v1947_v54  ;;  %v2108_v20 = vand.u32 2147483647, %v5561_v33  ;;  %vm5744_vm8 = vmor %vm2104_vm14, %vm2105_vm2 }
 0x21a   :  { %v2110_v21 = vand.u32 2147483648, %v5561_v33  ;;  %v2190_v15 = vmul.f32 %v6184_v10, %v1986_v0  ;;  %v3664_v2 = vpop.eup %3663  ;;  %v2032_v38 = vmul.f32 %v5640_v62, %v2031_v42  ;;  %v2130_v6 = vmul.f32 %v5662_v59, %v2129_v23  ;;  %v6195_v23 = vld [vmem:[#allocation16_spill] sm:$0xff] }
 0x21b   :  { %v2136_v56 = vand.u32 2147483647, %v5587_v11  ;;  %v2138_v25 = vand.u32 2147483648, %v5587_v11  ;;  %v2051_v3 = vsel %vm5729_vm3, %v5616_v18, %v5709_v4  ;;  %vm2133_vm9 = vweird.f32 %v5662_v59 }
 0x21c   :  { %3446 = vmatmul.msk.f32.gmra.mxu1 %vm1050_vm1, %v2190_v15  ;;  %v2072_v39 = vmul.f32 %v3664_v2, %v5660_v16  ;;  %v2082_v31 = vand.u32 2147483648, %v5660_v16  ;;  %v2284_v28 = vpop.f32.mrf.mxu2  ;;  %v2107_v48 = vsel %vm5744_vm8, %v5643_v8, %v5714_v12  ;;  %vm2132_vm5 = vweird.f32 %v5587_v11 }
 0x21d   :  { %v2143_v1 = vsub.f32 1.0, %v5718_v41  ;;  %vm2076_vm10 = vweird.f32 %v5660_v16  ;;  %v2080_v61 = vand.u32 2147483647, %v5660_v16  ;;  %2914 = vrot.lane.b32.xlu1 %v2284_v28, %s3697_s0  ;;  %v1949_v9 = vadd.f32 %v5632_v40, %v1948_v29  ;;  %v5815_v16 = vpop.xlane.xlu2 %1469 }
 0x21e   :  { %v2073_v32 = vsub.f32 1.0, %v2072_v39  ;;  %vm1951_vm4 = vweird.f32 %v5632_v40  ;;  %v1954_v24 = vand.u32 2147483647, %v5479_v52  ;;  %v5764_v26 = vpop.eup %3665  ;;  %vm5768_vm7 = vcmp.eq.f32.partialorder %v2052_v43, 8.507059e+37 }
 0x21f   :  { %v2131_v63 = vadd.f32 %v5662_v59, %v2130_v6  ;;  %vm2077_vm14 = vweird.f32 %v3664_v2  ;;  %vm5775_vm12 = vmor %vm1950_vm6, %vm1951_vm4  ;;  %v2005_v53 = vadd.f32 %v5469_v27, %v5648_v49  ;;  %vm2007_vm2 = vweird.f32 %v5469_v27 }
 0x220   :  { %v2229_v55 = vpop.f32.mrf.mxu0  ;;  %v2074_v37 = vmul.f32 %v3664_v2, %v2073_v32  ;;  %v2083_v43 = vor.u32 1.1754944e-38, %v2082_v31  ;;  %v2114_v57 = vmul.f32 %v5764_v26, %v5700_v14  ;;  %v1953_v58 = vsel %vm5775_vm12, %v5632_v40, %v1949_v9  ;;  %vm5789_vm6 = vmor %vm2006_vm11, %vm2007_vm2 }
 0x221   :  { %2900 = vst.msk [vmem:[#allocation2 + $0x8] sm:$0xff] %vm209_vm0, %v2229_v55  ;;  %vm1955_vm15 = vcmp.eq.f32.partialorder %v1954_v24, 8.507059e+37  ;;  %v2009_v49 = vsel %vm5789_vm6, %v5469_v27, %v2005_v53  ;;  %v2010_v54 = vand.u32 2147483647, %v5328_v30  ;;  %v2033_v22 = vadd.f32 %v5640_v62, %v2032_v38  ;;  %vm2078_vm11 = vmor %vm2076_vm10, %vm2077_vm14  ;;  %v6198_v38 = vld [vmem:[#allocation12_spill] sm:$0xff] }
 0x222   :  { %v2075_v40 = vadd.f32 %v3664_v2, %v2074_v37  ;;  %v2115_v7 = vsub.f32 1.0, %v2114_v57  ;;  %v1958_v42 = vsel %vm1955_vm15, %v5690_v36, %v1953_v58  ;;  %vm2035_vm4 = vweird.f32 %v5640_v62  ;;  %vm5832_vm14 = vmor %vm2132_vm5, %vm2133_vm9 }
 0x223   :  { %v2188_v35 = vmul.f32 %v6195_v23, %v1958_v42  ;;  %vm2011_vm12 = vcmp.eq.f32.partialorder %v2010_v54, 8.507059e+37  ;;  %vm5809_vm2 = vmor %vm2034_vm13, %vm2035_vm4  ;;  %v2038_v30 = vand.u32 2147483647, %v5464_v46  ;;  %3667 = vrcp.f32 %v5793_v19 }
 0x224   :  { %v2079_v0 = vsel %vm2078_vm11, %v3664_v2, %v2075_v40  ;;  %vm2081_vm10 = vcmp.eq.f32.partialorder %v2080_v61, 8.507059e+37  ;;  %v2014_v36 = vsel %vm2011_vm12, %v5636_v5, %v2009_v49  ;;  %v2037_v29 = vsel %vm5809_vm2, %v5640_v62, %v2033_v22 }
 0x225   :  { %v2084_v10 = vsel %vm2081_vm10, %v2083_v43, %v2079_v0  ;;  %v2116_v15 = vmul.f32 %v5764_v26, %v2115_v7  ;;  %3444 = vmatmul.msk.f32.gmra.mxu0 %vm1050_vm1, %v2188_v35  ;;  %v2192_v6 = vmul.f32 %v6198_v38, %v2014_v36  ;;  %vm2039_vm13 = vcmp.eq.f32.partialorder %v2038_v30, 8.507059e+37  ;;  %v6210_v35 = vld [vmem:[#allocation23_spill] sm:$0xff]  ;;  %v6212_v38 = vld [vmem:[#allocation21_spill] sm:$0xff] }
 0x226   :  { %v2055_v46 = vor.u32 1.1754944e-38, %v2054_v50  ;;  %v2111_v2 = vor.u32 1.1754944e-38, %v2110_v21  ;;  %v2042_v62 = vsel %vm2039_vm13, %v5653_v60, %v2037_v29  ;;  %3669 = vrcp.f32 %v5815_v16  ;;  %v2255_v39 = vpop.f32.mrf.mxu1  ;;  %v6201_v21 = vld [vmem:[#allocation17_spill] sm:$0xff]  ;;  %v6211_v29 = vld [vmem:[#allocation24_spill] sm:$0xff] }
 0x227   :  { %vm2109_vm6 = vcmp.eq.f32.partialorder %v2108_v20, 8.507059e+37  ;;  %v2135_v45 = vsel %vm5832_vm14, %v5662_v59, %v2131_v63  ;;  %v2139_v50 = vor.u32 1.1754944e-38, %v2138_v25  ;;  %3448 = vmatmul.msk.f32.gmra.mxu2 %vm1050_vm1, %v2192_v6  ;;  %v2194_v31 = vmul.f32 %v6201_v21, %v2042_v62  ;;  %2903 = vrot.lane.b32.xlu0 %v2255_v39, %s3698_s30  ;;  %v6202_v20 = vld [vmem:[#allocation22_spill] sm:$0xff] }
 0x228   :  { %v2056_v33 = vsel %vm5768_vm7, %v2055_v46, %v2051_v3  ;;  %v2112_v60 = vsel %vm2109_vm6, %v2111_v2, %v2107_v48  ;;  %v2144_v59 = vmul.f32 %v5687_v17, %v2143_v1  ;;  %v2197_v25 = vmul.f32 %v6202_v20, %v2084_v10  ;;  %v6213_v46 = vld [vmem:[#allocation25_spill] sm:$0xff] }
 0x229   :  { %v3668_v28 = vpop.eup %3667  ;;  %vm2137_vm9 = vcmp.eq.f32.partialorder %v2136_v56, 8.507059e+37  ;;  %v2117_v18 = vadd.f32 %v5764_v26, %v2116_v15  ;;  %vm2119_vm3 = vweird.f32 %v5764_v26  ;;  %3450 = vmatmul.msk.f32.gmra.mxu3 %vm1050_vm1, %v2194_v31  ;;  %v2150_v8 = vand.u32 2147483647, %v5626_v47  ;;  %v6204_v56 = vld [vmem:[#allocation18_spill] sm:$0xff] }
 0x22a   :  { %v2140_v4 = vsel %vm2137_vm9, %v2139_v50, %v2135_v45  ;;  %v2124_v12 = vand.u32 2147483648, %v5700_v14  ;;  %v2058_v41 = vmul.f32 %v3668_v28, %v5793_v19  ;;  %3453 = vmatmul.msk.f32.vlgmr.msra.gmra.mxu1 %vm1050_vm1, %v2197_v25  ;;  %v2199_v3 = vmul.f32 %v6203_v13, %v2112_v60 }
 0x22b   :  { %vm2118_vm8 = vweird.f32 %v5700_v14  ;;  %v2122_v11 = vand.u32 2147483647, %v5700_v14  ;;  %v2195_v34 = vmul.f32 %v6204_v56, %v2056_v33  ;;  %v2145_v1 = vadd.f32 %v5687_v17, %v2144_v59 }
 0x22c   :  { %v3670_v48 = vpop.eup %3669  ;;  %vm2147_vm5 = vweird.f32 %v5687_v17  ;;  %v2152_v61 = vand.u32 2147483648, %v5626_v47  ;;  %vm5882_vm7 = vmor %vm2118_vm8, %vm2119_vm3  ;;  %v2059_v9 = vsub.f32 1.0, %v2058_v41  ;;  %v2068_v24 = vand.u32 2147483648, %v5793_v19 }
 0x22d   :  { %v2086_v14 = vmul.f32 %v3670_v48, %v5815_v16  ;;  %3451 = vmatmul.msk.f32.vlgmr.msrb.gmra.mxu0 %vm1050_vm1, %v2195_v34  ;;  %v2201_v63 = vmul.f32 %v6207_v44, %v2140_v4  ;;  %v2121_v51 = vsel %vm5882_vm7, %v5764_v26, %v2117_v18  ;;  %v2125_v53 = vor.u32 1.1754944e-38, %v2124_v12 }
 0x22e   :  { %v2060_v55 = vmul.f32 %v3668_v28, %v2059_v9  ;;  %vm2063_vm15 = vweird.f32 %v3668_v28  ;;  %v2066_v37 = vand.u32 2147483647, %v5793_v19  ;;  %v2313_v43 = vpop.f32.mrf.mxu3  ;;  %vm2146_vm11 = vweird.f32 %v5626_v47 }
 0x22f   :  { %vm2123_vm4 = vcmp.eq.f32.partialorder %v2122_v11, 8.507059e+37  ;;  %vm2062_vm12 = vweird.f32 %v5793_v19  ;;  %v2087_v57 = vsub.f32 1.0, %v2086_v14  ;;  %3455 = vmatmul.msk.f32.vlgmr.msra.gmra.mxu2 %vm1050_vm1, %v2199_v3  ;;  %2925 = vrot.lane.b32.xlu2 %v2313_v43, %s3699_s4  ;;  %vm5900_vm2 = vmor %vm2146_vm11, %vm2147_vm5  ;;  %v2094_v58 = vand.u32 2147483647, %v5815_v16 }
 0x230   :  { %v2096_v52 = vand.u32 2147483648, %v5815_v16  ;;  %v2126_v47 = vsel %vm2123_vm4, %v2125_v53, %v2121_v51  ;;  %v2061_v49 = vadd.f32 %v3668_v28, %v2060_v55  ;;  %v2069_v54 = vor.u32 1.1754944e-38, %v2068_v24  ;;  %vm2064_vm13 = vmor %vm2062_vm12, %vm2063_vm15 }
 0x231   :  { %v2088_v22 = vmul.f32 %v3670_v48, %v2087_v57  ;;  %vm2091_vm10 = vweird.f32 %v3670_v48  ;;  %3457 = vmatmul.msk.f32.vlgmr.msra.gmra.mxu3 %vm1050_vm1, %v2201_v63  ;;  %v2149_v40 = vsel %vm5900_vm2, %v5687_v17, %v2145_v1  ;;  %vm2151_vm14 = vcmp.eq.f32.partialorder %v2150_v8, 8.507059e+37 }
 0x232   :  { %v2153_v7 = vor.u32 1.1754944e-38, %v2152_v61  ;;  %v2065_v42 = vsel %vm2064_vm13, %v3668_v28, %v2061_v49  ;;  %vm2067_vm6 = vcmp.eq.f32.partialorder %v2066_v37, 8.507059e+37  ;;  %vm2090_vm9 = vweird.f32 %v5815_v16  ;;  %v3148_v49 = vld [vmem:[%s6061_s1 + $0x50] sm:$0xff] }
 0x233   :  { %v2089_v23 = vadd.f32 %v3670_v48, %v2088_v22  ;;  %v2200_v27 = vmul.f32 %v6210_v35, %v2126_v47  ;;  %v2070_v30 = vsel %vm2067_vm6, %v2069_v54, %v2065_v42  ;;  %vm2092_vm3 = vmor %vm2090_vm9, %vm2091_vm10  ;;  %v2097_v0 = vor.u32 1.1754944e-38, %v2096_v52  ;;  %v3149_v47 = vld [vmem:[%s6061_s1 + $0x58] sm:$0xff] }
 0x234   :  { %v2154_v36 = vsel %vm2151_vm14, %v2153_v7, %v2149_v40  ;;  %v2196_v10 = vmul.f32 %v6211_v29, %v2070_v30  ;;  %vm2095_vm8 = vcmp.eq.f32.partialorder %v2094_v58, 8.507059e+37  ;;  %vm2931_vm5 = vcmask 261312   ;;  %3171 = vmatpush.msra.mxu0 %v3149_v47  ;;  %v3147_v40 = vld [vmem:[%s6061_s1 + $0x48] sm:$0xff]  ;;  %v3146_v30 = vld [vmem:[%s6061_s1 + $0x40] sm:$0xff] }
 0x235   :  { %v2093_v17 = vsel %vm2092_vm3, %v3670_v48, %v2089_v23  ;;  %v2287_v15 = vpop.f32.mrf.mxu2  ;;  %v2202_v6 = vmul.f32 %v6212_v38, %v2154_v36  ;;  %vm2942_vm7 = vcmask 326912   ;;  %vm2953_vm15 = vcmask 392512   ;;  %v3144_v36 = vld [vmem:[%s6061_s1 + $0x30] sm:$0xff] }
 0x236   :  { %3452 = vmatmul.msk.f32.gmra.mxu0 %vm1050_vm1, %v2196_v10  ;;  %v2098_v19 = vsel %vm2095_vm8, %v2097_v0, %v2093_v17  ;;  %v3145_v0 = vld [vmem:[%s6061_s1 + $0x38] sm:$0xff]  ;;  %vm2964_vm11 = vcmask 458112   ;;  %v3143_v17 = vld [vmem:[%s6061_s1 + $0x28] sm:$0xff]  ;;  %vm2975_vm4 = vcmask 523712   ;;  %vm2986_vm12 = vcmask 589312  }
 0x237   :  { %3456 = vmatmul.msk.f32.gmra.mxu2 %vm1050_vm1, %v2200_v27  ;;  %v2198_v16 = vmul.f32 %v6213_v46, %v2098_v19  ;;  %2916 = vrot.lane.b32.xlu2 %v2287_v15, %s3697_s0  ;;  %v2316_v39 = vpop.f32.mrf.mxu3  ;;  %vm2997_vm2 = vcmask 654912   ;;  %vm3008_vm10 = vcmask 720512   ;;  %vm3019_vm13 = vcmask 786112  }
 0x238   :  { %3172 = vmatpush.msra.mxu0 %v3148_v49  ;;  %vm3154_vm14 = vcmask 785408  }
 0x239   :  { %3458 = vmatmul.msk.f32.gmra.mxu3 %vm1050_vm1, %v2202_v6  ;;  %3454 = vmatmul.msk.f32.gmra.mxu1 %vm1050_vm1, %v2198_v16  ;;  %vm2909_vm1 = vcmask 130112  }
 0x23a   :  { %v2258_v2 = vpop.f32.mrf.mxu1  ;;  %3173 = vmatpush.msra.mxu0 %v3147_v40 }
 0x23b   :  { %2905 = vrot.lane.b32.xlu1 %v2258_v2, %s3698_s30 }
 0x23c   :  { %3174 = vmatpush.msra.mxu0 %v3146_v30 }
 0x23e   :  { %3175 = vmatpush.msra.mxu0 %v3145_v0 }
 0x23f   :  { %v2342_v5 = vpop.f32.mrf.mxu0 }
 0x240   :  { %2936 = vrot.lane.b32.xlu0 %v2342_v5, %s3700_s5  ;;  %v2429_v50 = vpop.f32.mrf.mxu3  ;;  %3176 = vmatpush.msra.mxu0 %v3144_v36 }
 0x242   :  { %v2371_v62 = vpop.f32.mrf.mxu1  ;;  %3177 = vmatpush.msra.mxu0 %v3143_v17 }
 0x243   :  { %2947 = vrot.lane.b32.xlu2 %v2371_v62, %s3701_s6  ;;  %v3142_v62 = vld [vmem:[%s6061_s1 + $0x20] sm:$0xff] }
 0x244   :  { %3178 = vmatpush.msra.mxu0 %v3142_v62 }
 0x247   :  { %v2345_v45 = vpop.f32.mrf.mxu0 }
 0x248   :  { %2927 = vrot.lane.b32.xlu0 %v2316_v39, %s3699_s4  ;;  %2938 = vrot.lane.b32.xlu1 %v2345_v45, %s3700_s5  ;;  %v3141_v39 = vld [vmem:[%s6061_s1 + $0x18] sm:$0xff]  ;;  %v3140_v45 = vld [vmem:[%s6061_s1 + $0x10] sm:$0xff] }
 0x249   :  { %3179 = vmatpush.msra.mxu0 %v3141_v39 }
 0x24a   :  { %v2400_v21 = vpop.f32.mrf.mxu2  ;;  %v2374_v31 = vpop.f32.mrf.mxu1 }
 0x24b   :  { %3180 = vmatpush.msra.mxu0 %v3140_v45 }
 0x24f   :  { %v2458_v33 = vpop.f32.mrf.mxu0 }
 0x250   :  { %2949 = vrot.lane.b32.xlu0 %v2374_v31, %s3701_s6  ;;  %2958 = vrot.lane.b32.xlu1 %v2400_v21, %s3702_s7  ;;  %v2432_v60 = vpop.f32.mrf.mxu3  ;;  %v3138_v31 = vld [vmem:[%s6061_s1] sm:$0xff] }
 0x251   :  { %2980 = vrot.lane.b32.xlu2 %v2458_v33, %s3703_s8 }
 0x252   :  { %v2487_v59 = vpop.f32.mrf.mxu1 }
 0x256   :  { %v2403_v18 = vpop.f32.mrf.mxu2 }
 0x257   :  { %v2461_v25 = vpop.f32.mrf.mxu0 }
 0x258   :  { %2969 = vrot.lane.b32.xlu0 %v2429_v50, %s3704_s9  ;;  %2971 = vrot.lane.b32.xlu1 %v2432_v60, %s3704_s9  ;;  %v3139_v50 = vld [vmem:[%s6061_s1 + $0x8] sm:$0xff] }
 0x259   :  { %3181 = vmatpush.msra.mxu0 %v3139_v50 }
 0x25a   :  { %v2545_v28 = vpop.f32.mrf.mxu3 }
 0x25b   :  { %3182 = vmatpush.msra.mxu0 %v3138_v31 }
 0x25e   :  { %v2490_v20 = vpop.f32.mrf.mxu1 }
 0x25f   :  { %2993 = vrot.lane.b32.xlu2 %v2490_v20, %s3705_s10 }
 0x260   :  { %2991 = vrot.lane.b32.xlu0 %v2487_v59, %s3705_s10 }
 0x267   :  { %v2603_v4 = vpop.f32.mrf.mxu1  ;;  %3013 = vrot.lane.b32.xlu2 %v2545_v28, %s3706_s11 }
 0x268   :  { %2982 = vrot.lane.b32.xlu0 %v2461_v25, %s3703_s8  ;;  %3026 = vrot.lane.b32.xlu1 %v2603_v4, %s3698_s30 }
 0x269   :  { %v2548_v41 = vpop.f32.mrf.mxu3 }
 0x26c   :  { %v2516_v12 = vpop.f32.mrf.mxu2 }
 0x26f   :  { %v2574_v8 = vpop.f32.mrf.mxu0  ;;  %2960 = vrot.lane.b32.xlu2 %v2403_v18, %s3702_s7 }
 0x270   :  { %3022 = vst.msk [vmem:[#allocation2 + $0x10] sm:$0xff] %vm209_vm0, %v2574_v8  ;;  %3002 = vrot.lane.b32.xlu1 %v2516_v12, %s3707_s12 }
 0x276   :  { %v2661_v48 = vpop.f32.mrf.mxu3 }
 0x278   :  { %3015 = vrot.lane.b32.xlu1 %v2548_v41, %s3706_s11 }
 0x279   :  { %v2519_v13 = vpop.f32.mrf.mxu2 }
 0x27f   :  { %v2577_v3 = vpop.f32.mrf.mxu0 }
 0x280   :  { %3023 = vst.msk [vmem:[#allocation2 + $0x18] sm:$0xff] %vm209_vm0, %v2577_v3  ;;  %v2606_v11 = vpop.f32.mrf.mxu1  ;;  %vm2920_vm0 = vcmask 195712  }
 0x281   :  { %3028 = vrot.lane.b32.xlu0 %v2606_v11, %s3698_s30 }
 0x283   :  { %v2632_v56 = vpop.f32.mrf.mxu2 }
 0x288   :  { %v2719_v34 = vpop.f32.mrf.mxu1 }
 0x289   :  { %3004 = vrot.lane.b32.xlu0 %v2519_v13, %s3707_s12  ;;  %3066 = vrot.lane.b32.xlu1 %v2719_v34, %s3701_s6  ;;  %v2926_v32 = vpop.permute.xlu2 %2925 }
 0x28b   :  { %v2664_v24 = vpop.f32.mrf.mxu3 }
 0x28f   :  { %v2915_v14 = vpop.permute.xlu1 %2914 }
 0x291   :  { %v2635_v1 = vpop.f32.mrf.mxu2  ;;  %v2690_v61 = vpop.f32.mrf.mxu0  ;;  %3046 = vrot.lane.b32.xlu0 %v2661_v48, %s3699_s4 }
 0x292   :  { %3056 = vrot.lane.b32.xlu2 %v2690_v61, %s3700_s5  ;;  %3038 = vrot.lane.b32.xlu1 %v2635_v1, %s3697_s0  ;;  %v2917_v63 = vpop.permute.xlu2 %2916 }
 0x293   :  { %v2777_v51 = vpop.f32.mrf.mxu3 }
 0x299   :  { %v2904_v9 = vpop.permute.xlu0 %2903  ;;  %v2748_v53 = vpop.f32.mrf.mxu2 }
 0x29a   :  { %2910 = vst.msk [vmem:[#allocation2] sm:$0xff] %vm2909_vm1, %v2904_v9  ;;  %3036 = vrot.lane.b32.xlu2 %v2632_v56, %s3697_s0  ;;  %v2722_v37 = vpop.f32.mrf.mxu1 }
 0x29b   :  { %2921 = vst.msk [vmem:[#allocation2] sm:$0xff] %vm2920_vm0, %v2915_v14 }
 0x29c   :  { %2932 = vst.msk [vmem:[#allocation2] sm:$0xff] %vm2931_vm5, %v2926_v32 }
 0x29d   :  { %v2948_v57 = vpop.permute.xlu2 %2947 }
 0x2a2   :  { %v2693_v44 = vpop.f32.mrf.mxu0  ;;  %3048 = vrot.lane.b32.xlu2 %v2664_v24, %s3699_s4 }
 0x2a3   :  { %3058 = vrot.lane.b32.xlu0 %v2693_v44, %s3700_s5 }
 0x2a7   :  { %v2835_v42 = vpop.f32.mrf.mxu1 }
 0x2aa   :  { %v2806_v55 = vpop.f32.mrf.mxu0  ;;  %3068 = vrot.lane.b32.xlu2 %v2722_v37, %s3701_s6  ;;  %v2751_v58 = vpop.f32.mrf.mxu2 }
 0x2ab   :  { %3076 = vrot.lane.b32.xlu0 %v2748_v53, %s3702_s7  ;;  %3096 = vrot.lane.b32.xlu1 %v2806_v55, %s3703_s8  ;;  %v2981_v22 = vpop.permute.xlu2 %2980 }
 0x2ac   :  { %v2780_v43 = vpop.f32.mrf.mxu3 }
 0x2ad   :  { %v2906_v26 = vpop.permute.xlu1 %2905 }
 0x2ae   :  { %2911 = vst.msk [vmem:[#allocation2 + $0x8] sm:$0xff] %vm2909_vm1, %v2906_v26 }
 0x2af   :  { %2922 = vst.msk [vmem:[#allocation2 + $0x8] sm:$0xff] %vm2920_vm0, %v2917_v63 }
 0x2b2   :  { %v2937_v52 = vpop.permute.xlu0 %2936  ;;  %3086 = vrot.lane.b32.xlu2 %v2777_v51, %s3704_s9  ;;  %v2864_v7 = vpop.f32.mrf.mxu2 }
 0x2b3   :  { %3088 = vrot.lane.b32.xlu0 %v2780_v43, %s3704_s9  ;;  %2943 = vst.msk [vmem:[#allocation2] sm:$0xff] %vm2942_vm7, %v2937_v52  ;;  %v2809_v19 = vpop.f32.mrf.mxu0 }
 0x2b4   :  { %v2893_v54 = vpop.f32.mrf.mxu3  ;;  %2954 = vst.msk [vmem:[#allocation2] sm:$0xff] %vm2953_vm15, %v2948_v57  ;;  %v3478_v57 = vld [vmem:[%s6062_s2] ss:$0 sm:$0xff]  ;;  %s3709_s2 = smov 128  }
 0x2b5   :  { %3126 = vrot.lane.b32.xlu1 %v2893_v54, %s3706_s11 }
 0x2b6   :  { %v2838_v38 = vpop.f32.mrf.mxu1 }
 0x2b9   :  { %v2994_v27 = vpop.permute.xlu2 %2993 }
 0x2ba   :  { %v2928_v23 = vpop.permute.xlu0 %2927  ;;  %v2939_v35 = vpop.permute.xlu1 %2938  ;;  %3106 = vrot.lane.b32.xlu2 %v2835_v42, %s3705_s10 }
 0x2bb   :  { %3116 = vrot.lane.b32.xlu0 %v2864_v7, %s3707_s12  ;;  %2933 = vst.msk [vmem:[#allocation2 + $0x8] sm:$0xff] %vm2931_vm5, %v2928_v23  ;;  %v2867_v29 = vpop.f32.mrf.mxu2 }
 0x2bc   :  { %2944 = vst.msk [vmem:[#allocation2 + $0x8] sm:$0xff] %vm2942_vm7, %v2939_v35  ;;  %v2896_v16 = vpop.f32.mrf.mxu3 }
 0x2bd   :  { %3078 = vrot.lane.b32.xlu1 %v2751_v58, %s3702_s7 }
 0x2c1   :  { %v3014_v6 = vpop.permute.xlu2 %3013 }
 0x2c2   :  { %v2950_v10 = vpop.permute.xlu0 %2949  ;;  %v2959_v15 = vpop.permute.xlu1 %2958  ;;  %3098 = vrot.lane.b32.xlu2 %v2809_v19, %s3703_s8 }
 0x2c3   :  { %3118 = vrot.lane.b32.xlu0 %v2867_v29, %s3707_s12  ;;  %2955 = vst.msk [vmem:[#allocation2 + $0x8] sm:$0xff] %vm2953_vm15, %v2950_v10 }
 0x2c4   :  { %2965 = vst.msk [vmem:[#allocation2] sm:$0xff] %vm2964_vm11, %v2959_v15 }
 0x2c5   :  { %3108 = vrot.lane.b32.xlu1 %v2838_v38, %s3705_s10 }
 0x2c9   :  { %v2961_v5 = vpop.permute.xlu2 %2960 }
 0x2ca   :  { %v2970_v46 = vpop.permute.xlu0 %2969  ;;  %v2972_v2 = vpop.permute.xlu1 %2971  ;;  %3128 = vrot.lane.b32.xlu2 %v2896_v16, %s3706_s11  ;;  %2966 = vst.msk [vmem:[#allocation2 + $0x8] sm:$0xff] %vm2964_vm11, %v2961_v5 }
 0x2cb   :  { %2976 = vst.msk [vmem:[#allocation2] sm:$0xff] %vm2975_vm4, %v2970_v46 }
 0x2cc   :  { %2987 = vst.msk [vmem:[#allocation2] sm:$0xff] %vm2986_vm12, %v2981_v22 }
 0x2cd   :  { %2977 = vst.msk [vmem:[#allocation2 + $0x8] sm:$0xff] %vm2975_vm4, %v2972_v2 }
 0x2d2   :  { %v2992_v21 = vpop.permute.xlu0 %2991 }
 0x2d3   :  { %2998 = vst.msk [vmem:[#allocation2] sm:$0xff] %vm2997_vm2, %v2992_v21 }
 0x2da   :  { %v2983_v33 = vpop.permute.xlu0 %2982  ;;  %v3027_v60 = vpop.permute.xlu1 %3026 }
 0x2db   :  { %2988 = vst.msk [vmem:[#allocation2 + $0x8] sm:$0xff] %vm2986_vm12, %v2983_v33 }
 0x2dc   :  { %2999 = vst.msk [vmem:[#allocation2 + $0x8] sm:$0xff] %vm2997_vm2, %v2994_v27 }
 0x2dd   :  { %3032 = vst.msk [vmem:[#allocation2 + $0x10] sm:$0xff] %vm2909_vm1, %v3027_v60 }
 0x2e2   :  { %v3003_v59 = vpop.permute.xlu1 %3002 }
 0x2e3   :  { %3009 = vst.msk [vmem:[#allocation2] sm:$0xff] %vm3008_vm10, %v3003_v59 }
 0x2e4   :  { %3020 = vst.msk [vmem:[#allocation2] sm:$0xff] %vm3019_vm13, %v3014_v6 }
 0x2ea   :  { %v3016_v28 = vpop.permute.xlu1 %3015 }
 0x2eb   :  { %v3134_v25 = vld [vmem:[#allocation2] sm:$0xff] }
 0x2ec   :  { %v3057_v20 = vpop.permute.xlu2 %3056  ;;  %3459 = vmatmul.msk.f32.vlgmr.msra.gmra.mxu0 %vm3154_vm14, %v3134_v25 }
 0x2f3   :  { %v3029_v18 = vpop.permute.xlu0 %3028 }
 0x2f4   :  { %3033 = vst.msk [vmem:[#allocation2 + $0x18] sm:$0xff] %vm2909_vm1, %v3029_v18  ;;  %v3037_v4 = vpop.permute.xlu2 %3036 }
 0x2f5   :  { %3042 = vst.msk [vmem:[#allocation2 + $0x10] sm:$0xff] %vm2920_vm0, %v3037_v4 }
 0x2fb   :  { %v3005_v8 = vpop.permute.xlu0 %3004  ;;  %v3067_v12 = vpop.permute.xlu1 %3066 }
 0x2fc   :  { %3010 = vst.msk [vmem:[#allocation2 + $0x8] sm:$0xff] %vm3008_vm10, %v3005_v8  ;;  %v3049_v41 = vpop.permute.xlu2 %3048 }
 0x2fd   :  { %3021 = vst.msk [vmem:[#allocation2 + $0x8] sm:$0xff] %vm3019_vm13, %v3016_v28 }
 0x303   :  { %v3047_v13 = vpop.permute.xlu0 %3046 }
 0x304   :  { %3052 = vst.msk [vmem:[#allocation2 + $0x10] sm:$0xff] %vm2931_vm5, %v3047_v13  ;;  %v3039_v3 = vpop.permute.xlu1 %3038  ;;  %v3135_v11 = vld [vmem:[#allocation2 + $0x8] sm:$0xff]  ;;  %v3069_v56 = vpop.permute.xlu2 %3068 }
 0x305   :  { %3062 = vst.msk [vmem:[#allocation2 + $0x10] sm:$0xff] %vm2942_vm7, %v3057_v20  ;;  %3460 = vmatmul.msk.f32.gmra.mxu0 %vm3154_vm14, %v3135_v11 }
 0x306   :  { %3072 = vst.msk [vmem:[#allocation2 + $0x10] sm:$0xff] %vm2953_vm15, %v3067_v12 }
 0x307   :  { %3043 = vst.msk [vmem:[#allocation2 + $0x18] sm:$0xff] %vm2920_vm0, %v3039_v3 }
 0x308   :  { %3053 = vst.msk [vmem:[#allocation2 + $0x18] sm:$0xff] %vm2931_vm5, %v3049_v41 }
 0x30c   :  { %v3087_v48 = vpop.permute.xlu2 %3086 }
 0x314   :  { %v3107_v32 = vpop.permute.xlu2 %3106 }
 0x315   :  { %v3059_v34 = vpop.permute.xlu0 %3058 }
 0x316   :  { %3063 = vst.msk [vmem:[#allocation2 + $0x18] sm:$0xff] %vm2942_vm7, %v3059_v34 }
 0x317   :  { %3073 = vst.msk [vmem:[#allocation2 + $0x18] sm:$0xff] %vm2953_vm15, %v3069_v56 }
 0x31c   :  { %v3099_v44 = vpop.permute.xlu2 %3098 }
 0x31d   :  { %v3077_v1 = vpop.permute.xlu0 %3076  ;;  %v3097_v61 = vpop.permute.xlu1 %3096 }
 0x31e   :  { %3082 = vst.msk [vmem:[#allocation2 + $0x10] sm:$0xff] %vm2964_vm11, %v3077_v1 }
 0x31f   :  { %3092 = vst.msk [vmem:[#allocation2 + $0x10] sm:$0xff] %vm2975_vm4, %v3087_v48 }
 0x320   :  { %3102 = vst.msk [vmem:[#allocation2 + $0x10] sm:$0xff] %vm2986_vm12, %v3097_v61 }
 0x321   :  { %3112 = vst.msk [vmem:[#allocation2 + $0x10] sm:$0xff] %vm2997_vm2, %v3107_v32 }
 0x324   :  { %v3129_v37 = vpop.permute.xlu2 %3128 }
 0x325   :  { %v3089_v9 = vpop.permute.xlu0 %3088 }
 0x327   :  { %v3127_v24 = vpop.permute.xlu1 %3126 }
 0x32d   :  { %v3117_v14 = vpop.permute.xlu0 %3116 }
 0x32e   :  { %3122 = vst.msk [vmem:[#allocation2 + $0x10] sm:$0xff] %vm3008_vm10, %v3117_v14 }
 0x32f   :  { %3132 = vst.msk [vmem:[#allocation2 + $0x10] sm:$0xff] %vm3019_vm13, %v3127_v24  ;;  %v3079_v63 = vpop.permute.xlu1 %3078 }
 0x330   :  { %3083 = vst.msk [vmem:[#allocation2 + $0x18] sm:$0xff] %vm2964_vm11, %v3079_v63 }
 0x331   :  { %3093 = vst.msk [vmem:[#allocation2 + $0x18] sm:$0xff] %vm2975_vm4, %v3089_v9 }
 0x332   :  { %3103 = vst.msk [vmem:[#allocation2 + $0x18] sm:$0xff] %vm2986_vm12, %v3099_v44 }
 0x335   :  { %v3119_v51 = vpop.permute.xlu0 %3118 }
 0x336   :  { %v3136_v53 = vld [vmem:[#allocation2 + $0x10] sm:$0xff] }
 0x337   :  { %v3109_v55 = vpop.permute.xlu1 %3108  ;;  %3461 = vmatmul.msk.f32.gmra.mxu0 %vm3154_vm14, %v3136_v53 }
 0x338   :  { %3113 = vst.msk [vmem:[#allocation2 + $0x18] sm:$0xff] %vm2997_vm2, %v3109_v55 }
 0x339   :  { %3123 = vst.msk [vmem:[#allocation2 + $0x18] sm:$0xff] %vm3008_vm10, %v3119_v51 }
 0x33a   :  { %3133 = vst.msk [vmem:[#allocation2 + $0x18] sm:$0xff] %vm3019_vm13, %v3129_v37 }
 0x341   :  { %v3137_v43 = vld [vmem:[#allocation2 + $0x18] sm:$0xff] }
 0x342   :  { %3462 = vmatmul.msk.f32.gmra.mxu0 %vm3154_vm14, %v3137_v43 }
 0x369   :  { %v3184_v26 = vpop.f32.mrf.mxu0 }
 0x36a   :  { %v3185_v58 = vadd.f32 %v3478_v57, %v3184_v26 }
 0x36c   :  { %3196 = vst.msk [vmem:[#allocation3] sm:$0xff] %vm3154_vm14, %v3185_v58 }
 0x382   :  { %v3187_v52 = vpop.f32.mrf.mxu0 }
 0x383   :  { %v3188_v47 = vadd.f32 %v3478_v57, %v3187_v52 }
 0x385   :  { %3197 = vst.msk [vmem:[#allocation3 + $0x8] sm:$0xff] %vm3154_vm14, %v3188_v47 }
 0x3b4   :  { %v3190_v49 = vpop.f32.mrf.mxu0 }
 0x3b5   :  { %v3191_v54 = vadd.f32 %v3478_v57, %v3190_v49 }
 0x3b7   :  { %3199 = vst.msk [vmem:[#allocation3 + $0x10] sm:$0xff] %vm3154_vm14, %v3191_v54 }
 0x3bf   :  { %v3193_v22 = vpop.f32.mrf.mxu0 }
 0x3c0   :  { %v3194_v40 = vadd.f32 %v3478_v57, %v3193_v22 }
 0x3c2   :  { %3200 = vst.msk [vmem:[#allocation3 + $0x18] sm:$0xff] %vm3154_vm14, %v3194_v40 }
 0x3c3   :  { %3213 = dma.vmem_to_hbm [thread:$0]  %s3206_s15, 512, %s3208_s13, [#allocation4], %s3709_s2, %s3709_s2, %s3698_s30  }
 0x3c4   :  { %3695 = dma.done.wait [#allocation4], 512  }
 0x3c5   :  { %3696 = vsyncadd [#allocation4], 4294966784 }
 0x3c6   :  { %3218 = vsyncpa [#allocation4], 1 }

</bundles_post_ra>
